<compile_context>
chip_gen: v7x
topology: tpu7x:2x2x1
jax: 0.10.0
libtpu: 0.0.40
codegen_flags: <defaults>
</compile_context>

<pallas_src>
import jax
import jax.numpy as jnp
from jax.experimental import pallas as pl
from jax.experimental.pallas import tpu as pltpu


# ----------------------------- conv(+pool) kernel --------------------------- #

def _conv_tile(x_ref, w_ref, b_ref, th, W, Cin, Cout):
    """3x3 SAME conv + bias + ReLU for one (th, W) row tile -> (th*W, Cout) f32."""
    i = pl.program_id(1)
    row0 = pl.multiple_of(i * th, th)   # top output row of this tile (padded coords)
    M = th * W
    # Seed the accumulator with the (broadcast) bias: one fewer M*Cout VPU add.
    acc = jnp.broadcast_to(b_ref[...], (M, Cout)).astype(jnp.float32)
    for t in range(9):                  # in-kernel im2col: 9 shifted slices of the
        dy, dx = divmod(t, 3)           # halo'd tile -> 9 accumulating MXU matmuls
        xt = x_ref[0, pl.ds(row0 + dy, th), dx:dx + W, :]          # (th, W, Cin) bf16
        acc = acc + jnp.dot(xt.reshape(M, Cin), w_ref[t],
                            preferred_element_type=jnp.float32)
    return jnp.maximum(acc, 0.0)                                   # ReLU (f32, VPU)


def _make_conv_kernel(th, W, Cin, Cout, fuse_pool):
    M = th * W

    if not fuse_pool:
        def kernel(x_ref, w_ref, b_ref, o_ref):
            acc = _conv_tile(x_ref, w_ref, b_ref, th, W, Cin, Cout)
            o_ref[0] = acc.astype(o_ref.dtype)                     # (th*W, Cout)
        return kernel

    def kernel(x_ref, w_ref, b_ref, o_ref, ps_ref):
        acc = _conv_tile(x_ref, w_ref, b_ref, th, W, Cin, Cout)
        # Fused 2x2 / stride-2 max pool, entirely in VMEM (no HBM round trip).
        ps_ref[...] = acc                                          # (th*W, Cout) f32
        half = M // 2
        even = ps_ref[pl.ds(0, half, 2), :]                        # columns w even
        odd = ps_ref[pl.ds(1, half, 2), :]                         # columns w odd
        y = jnp.maximum(even, odd)                                 # W-pool: rows (r, w2)
        z = y.reshape(th // 2, W, Cout)                            # [T, (r-2T)*(W//2)+w2, c]
        z = jnp.maximum(z[:, :W // 2, :], z[:, W // 2:, :])        # H-pool over row parity
        o_ref[0] = z.astype(o_ref.dtype)                           # (th//2, W//2, Cout)
    return kernel


def _pick_row_tile(H, W):
    """Even row tile dividing H; ~512 im2col rows (th*W) per grid step, at least
    two row tiles per image so the auto-pipeline has steps to overlap, and
    (when possible) a sublane-aligned th*W so the output slab block is %8."""
    cap = max(2, H // 2)
    target = max(2, min(cap, max(2, 512 // max(W, 1))))
    th = max(2, target - (target % 2))
    while th > 2 and H % th:
        th -= 2
    # Prefer an even divisor whose (th*W) is a multiple of 8 (lane/sublane tiling
    # of the (th*W, Cout) output block); fall back to any even divisor.
    t = th
    while t > 2 and (H % t or (t * W) % 8):
        t -= 2
    if H % t == 0 and (t * W) % 8 == 0:
        return t
    return th


def conv3x3_bias_relu(x_nhwc, w_oihw, b, *, fuse_pool):
    """x: (N,H,W,Cin); w: (Cout,Cin,3,3); b: (Cout,).
    Returns (N, H*W, Cout) bf16, or (N, H//2, W//2, Cout) f32 when fuse_pool."""
    N, H, W, Cin = x_nhwc.shape
    Cout = w_oihw.shape[0]
    th = _pick_row_tile(H, W)

    # Glue: 1-px halo pad + bf16 cast + tap-major weight re-layout (tiny vs a
    # 9x im2col). The conv itself reads xp once and writes the output once.
    xp = jnp.pad(x_nhwc.astype(jnp.bfloat16), ((0, 0), (1, 1), (1, 1), (0, 0)))
    w9 = jnp.transpose(w_oihw, (2, 3, 1, 0)).reshape(9, Cin, Cout).astype(jnp.bfloat16)
    b2 = b.reshape(1, Cout).astype(jnp.float32)

    if fuse_pool:
        out_shape = jax.ShapeDtypeStruct((N, H // 2, W // 2, Cout), jnp.float32)
        out_spec = pl.BlockSpec((1, th // 2, W // 2, Cout), lambda n, i: (n, i, 0, 0))
        scratch = [pltpu.VMEM((th * W, Cout), jnp.float32)]
    else:
        # Row-major slab == NHWC bytes; last dim Cout (>=128 at real VGG widths
        # -> unmasked lane-dense stores). Reshaped back to NHWC for free in XLA.
        out_shape = jax.ShapeDtypeStruct((N, H * W, Cout), jnp.bfloat16)
        out_spec = pl.BlockSpec((1, th * W, Cout), lambda n, i: (n, i, 0))
        scratch = []

    # VMEM budget: 2x-buffered bf16 image + resident weights + out tiles + f32 acc.
    vmem_est = (2 * (H + 2) * (W + 2) * Cin * 2 + 2 * 9 * Cin * Cout * 2
                + 4 * th * W * Cout * 4 + (2 << 20))
    vmem_limit = int(min(32 << 20, max(4 << 20, vmem_est)))   # safe on v5e/v6e/v7x

    return pl.pallas_call(
        _make_conv_kernel(th, W, Cin, Cout, fuse_pool),
        out_shape=out_shape,
        grid=(N, H // th),
        in_specs=[
            # Whole padded image per batch element; its block index ignores the
            # row axis, so Pallas fetches it once per image and the row tiles
            # only re-slice it in VMEM (in-kernel im2col).
            pl.BlockSpec((1, H + 2, W + 2, Cin), lambda n, i: (n, 0, 0, 0)),
            pl.BlockSpec((9, Cin, Cout), lambda n, i: (0, 0, 0)),   # resident
            pl.BlockSpec((1, Cout), lambda n, i: (0, 0)),           # resident
        ],
        out_specs=out_spec,
        scratch_shapes=scratch,
        compiler_params=pltpu.CompilerParams(
            # Both axes independent -> megacore (v7x) can split either one.
            dimension_semantics=("parallel", "parallel"),
            vmem_limit_bytes=vmem_limit),
    )(xp, w9, b2)


# ------------------------------ VGG block ---------------------------------- #

def init_vgg_block_params(key, num_convs, in_channels, out_channels):
    """Deterministic synthetic init (PyTorch-ish uniform). Weights stored OIHW."""
    params = []
    cin = in_channels
    for _ in range(num_convs):
        key, kw, kb = jax.random.split(key, 3)
        fan_in = cin * 9
        bound = 1.0 / float(fan_in) ** 0.5
        w = jax.random.uniform(kw, (out_channels, cin, 3, 3), jnp.float32,
                               -bound, bound)
        b = jax.random.uniform(kb, (out_channels,), jnp.float32, -bound, bound)
        params.append((w, b))
        cin = out_channels
    return params


def vgg_block_forward(x_nchw, params):
    """params: list of (w_oihw, b). NCHW in/out (PyTorch convention)."""
    assert len(params) >= 1
    N, _, H, W = x_nchw.shape
    # TODO(synk): odd H/W (PyTorch MaxPool2d floors the last row/col) would need
    # an unfused pool tail; the fused-pool kernel assumes even spatial dims.
    assert H % 2 == 0 and W % 2 == 0, "fused 2x2/stride-2 pool requires even H, W"

    x = jnp.transpose(x_nchw, (0, 2, 3, 1))                     # NCHW -> NHWC
    for li, (w, b) in enumerate(params):
        last = li == len(params) - 1
        y = conv3x3_bias_relu(x, w, b, fuse_pool=last)
        x = y if last else y.reshape(N, H, W, w.shape[0])       # free row-major view
    return jnp.transpose(x, (0, 3, 1, 2)).astype(jnp.float32)   # NHWC -> NCHW


# ------------------------------ reference ---------------------------------- #

def _reference(x_nchw, params):
    x = x_nchw
    for w, b in params:
        x = jax.lax.conv_general_dilated(
            x, w, window_strides=(1, 1), padding="SAME",
            dimension_numbers=("NCHW", "OIHW", "NCHW"))
        x = jnp.maximum(x + b[None, :, None, None], 0.0)
    N, C, H, W = x.shape
    return x.reshape(N, C, H // 2, 2, W // 2, 2).max(axis=(3, 5))


if __name__ == "__main__":
    key = jax.random.PRNGKey(0)
    kx, kp = jax.random.split(key)

    N, Cin, H, W = 2, 4, 16, 16          # batch=2, in_channels=4, spatial=16
    num_convs, Cout = 2, 8               # VGGBlock(num_convs=2, 4 -> 8)

    x = jax.random.normal(kx, (N, Cin, H, W), jnp.float32)
    params = init_vgg_block_params(kp, num_convs, Cin, Cout)

    y = jax.jit(vgg_block_forward)(x, params)
    y = jax.block_until_ready(y)

    y_ref = _reference(x, params)
    assert y.shape == (N, Cout, H // 2, W // 2), y.shape
    # bf16 MXU inputs with f32 accumulation -> looser tolerance than pure f32.
    assert jnp.allclose(y, y_ref, atol=2e-2, rtol=2e-2), \
        float(jnp.max(jnp.abs(y - y_ref)))
    print("KERNEL_OK")
</pallas_src>

<mosaic_0001>
module attributes {stable_mosaic.version = 11 : i64} {
  func.func @kernel(%arg0: i32, %arg1: i32, %arg2: memref<1x18x18x4xbf16, #tpu.memory_space<vmem>>, %arg3: memref<9x4x8xbf16, #tpu.memory_space<vmem>>, %arg4: memref<1x8xf32, #tpu.memory_space<vmem>>, %arg5: memref<1x128x8xbf16, #tpu.memory_space<vmem>>) attributes {dimension_semantics = [#tpu.dimension_semantics<parallel>, #tpu.dimension_semantics<parallel>], iteration_bounds = array<i64: 2, 2>, scalar_prefetch = 0 : i64, scratch_operands = 0 : i64, tpu.core_type = #tpu.core_type<tc>, window_params = [{transform_indices = @transform_0, window_bounds = array<i64: 1, 18, 18, 4>}, {pipeline_mode = #tpu.pipeline_mode<synchronous>, transform_indices = @transform_1, window_bounds = array<i64: 9, 4, 8>}, {pipeline_mode = #tpu.pipeline_mode<synchronous>, transform_indices = @transform_2, window_bounds = array<i64: 1, 8>}, {transform_indices = @transform_3, window_bounds = array<i64: 1, 128, 8>}]} {
    %c8_i32 = arith.constant 8 : i32
    %0 = arith.muli %arg1, %c8_i32 : i32
    %1 = tpu.assume_multiple %0, 8 : i32
    %c0 = arith.constant 0 : index
    %c0_0 = arith.constant 0 : index
    %2 = vector.load %arg4[%c0, %c0_0] : memref<1x8xf32, #tpu.memory_space<vmem>>, vector<1x8xf32>
    %3 = vector.shape_cast %2 : vector<1x8xf32> to vector<1x8xf32>
    %4 = vector.broadcast %3 : vector<1x8xf32> to vector<128x8xf32>
    %c0_i32 = arith.constant 0 : i32
    %5 = arith.addi %1, %c0_i32 : i32
    %c0_1 = arith.constant 0 : index
    %6 = arith.index_cast %5 : i32 to index
    %c0_2 = arith.constant 0 : index
    %c0_3 = arith.constant 0 : index
    %7 = vector.load %arg2[%c0_1, %6, %c0_2, %c0_3] : memref<1x18x18x4xbf16, #tpu.memory_space<vmem>>, vector<1x8x16x4xbf16>
    %8 = vector.shape_cast %7 : vector<1x8x16x4xbf16> to vector<8x16x4xbf16>
    %9 = vector.shape_cast %8 : vector<8x16x4xbf16> to vector<128x4xbf16>
    %c0_4 = arith.constant 0 : index
    %c0_5 = arith.constant 0 : index
    %c0_6 = arith.constant 0 : index
    %10 = vector.load %arg3[%c0_4, %c0_5, %c0_6] : memref<9x4x8xbf16, #tpu.memory_space<vmem>>, vector<1x4x8xbf16>
    %11 = vector.shape_cast %10 : vector<1x4x8xbf16> to vector<4x8xbf16>
    %cst = arith.constant dense<0.000000e+00> : vector<128x8xf32>
    %12 = tpu.matmul %9, %11, %cst {dimension_numbers = #tpu.dot_dimension_numbers<[1], [0], [0], [1], [0, 0, 1, 1], [], []>} : vector<128x4xbf16>, vector<4x8xbf16>, vector<128x8xf32> -> vector<128x8xf32>
    %13 = arith.addf %4, %12 : vector<128x8xf32>
    %c0_i32_7 = arith.constant 0 : i32
    %14 = arith.addi %1, %c0_i32_7 : i32
    %c0_8 = arith.constant 0 : index
    %15 = arith.index_cast %14 : i32 to index
    %c1 = arith.constant 1 : index
    %c0_9 = arith.constant 0 : index
    %16 = vector.load %arg2[%c0_8, %15, %c1, %c0_9] : memref<1x18x18x4xbf16, #tpu.memory_space<vmem>>, vector<1x8x16x4xbf16>
    %17 = vector.shape_cast %16 : vector<1x8x16x4xbf16> to vector<8x16x4xbf16>
    %18 = vector.shape_cast %17 : vector<8x16x4xbf16> to vector<128x4xbf16>
    %c1_10 = arith.constant 1 : index
    %c0_11 = arith.constant 0 : index
    %c0_12 = arith.constant 0 : index
    %19 = vector.load %arg3[%c1_10, %c0_11, %c0_12] : memref<9x4x8xbf16, #tpu.memory_space<vmem>>, vector<1x4x8xbf16>
    %20 = vector.shape_cast %19 : vector<1x4x8xbf16> to vector<4x8xbf16>
    %cst_13 = arith.constant dense<0.000000e+00> : vector<128x8xf32>
    %21 = tpu.matmul %18, %20, %cst_13 {dimension_numbers = #tpu.dot_dimension_numbers<[1], [0], [0], [1], [0, 0, 1, 1], [], []>} : vector<128x4xbf16>, vector<4x8xbf16>, vector<128x8xf32> -> vector<128x8xf32>
    %22 = arith.addf %13, %21 : vector<128x8xf32>
    %c0_i32_14 = arith.constant 0 : i32
    %23 = arith.addi %1, %c0_i32_14 : i32
    %c0_15 = arith.constant 0 : index
    %24 = arith.index_cast %23 : i32 to index
    %c2 = arith.constant 2 : index
    %c0_16 = arith.constant 0 : index
    %25 = vector.load %arg2[%c0_15, %24, %c2, %c0_16] : memref<1x18x18x4xbf16, #tpu.memory_space<vmem>>, vector<1x8x16x4xbf16>
    %26 = vector.shape_cast %25 : vector<1x8x16x4xbf16> to vector<8x16x4xbf16>
    %27 = vector.shape_cast %26 : vector<8x16x4xbf16> to vector<128x4xbf16>
    %c2_17 = arith.constant 2 : index
    %c0_18 = arith.constant 0 : index
    %c0_19 = arith.constant 0 : index
    %28 = vector.load %arg3[%c2_17, %c0_18, %c0_19] : memref<9x4x8xbf16, #tpu.memory_space<vmem>>, vector<1x4x8xbf16>
    %29 = vector.shape_cast %28 : vector<1x4x8xbf16> to vector<4x8xbf16>
    %cst_20 = arith.constant dense<0.000000e+00> : vector<128x8xf32>
    %30 = tpu.matmul %27, %29, %cst_20 {dimension_numbers = #tpu.dot_dimension_numbers<[1], [0], [0], [1], [0, 0, 1, 1], [], []>} : vector<128x4xbf16>, vector<4x8xbf16>, vector<128x8xf32> -> vector<128x8xf32>
    %31 = arith.addf %22, %30 : vector<128x8xf32>
    %c1_i32 = arith.constant 1 : i32
    %32 = arith.addi %1, %c1_i32 : i32
    %c0_21 = arith.constant 0 : index
    %33 = arith.index_cast %32 : i32 to index
    %c0_22 = arith.constant 0 : index
    %c0_23 = arith.constant 0 : index
    %34 = vector.load %arg2[%c0_21, %33, %c0_22, %c0_23] : memref<1x18x18x4xbf16, #tpu.memory_space<vmem>>, vector<1x8x16x4xbf16>
    %35 = vector.shape_cast %34 : vector<1x8x16x4xbf16> to vector<8x16x4xbf16>
    %36 = vector.shape_cast %35 : vector<8x16x4xbf16> to vector<128x4xbf16>
    %c3 = arith.constant 3 : index
    %c0_24 = arith.constant 0 : index
    %c0_25 = arith.constant 0 : index
    %37 = vector.load %arg3[%c3, %c0_24, %c0_25] : memref<9x4x8xbf16, #tpu.memory_space<vmem>>, vector<1x4x8xbf16>
    %38 = vector.shape_cast %37 : vector<1x4x8xbf16> to vector<4x8xbf16>
    %cst_26 = arith.constant dense<0.000000e+00> : vector<128x8xf32>
    %39 = tpu.matmul %36, %38, %cst_26 {dimension_numbers = #tpu.dot_dimension_numbers<[1], [0], [0], [1], [0, 0, 1, 1], [], []>} : vector<128x4xbf16>, vector<4x8xbf16>, vector<128x8xf32> -> vector<128x8xf32>
    %40 = arith.addf %31, %39 : vector<128x8xf32>
    %c1_i32_27 = arith.constant 1 : i32
    %41 = arith.addi %1, %c1_i32_27 : i32
    %c0_28 = arith.constant 0 : index
    %42 = arith.index_cast %41 : i32 to index
    %c1_29 = arith.constant 1 : index
    %c0_30 = arith.constant 0 : index
    %43 = vector.load %arg2[%c0_28, %42, %c1_29, %c0_30] : memref<1x18x18x4xbf16, #tpu.memory_space<vmem>>, vector<1x8x16x4xbf16>
    %44 = vector.shape_cast %43 : vector<1x8x16x4xbf16> to vector<8x16x4xbf16>
    %45 = vector.shape_cast %44 : vector<8x16x4xbf16> to vector<128x4xbf16>
    %c4 = arith.constant 4 : index
    %c0_31 = arith.constant 0 : index
    %c0_32 = arith.constant 0 : index
    %46 = vector.load %arg3[%c4, %c0_31, %c0_32] : memref<9x4x8xbf16, #tpu.memory_space<vmem>>, vector<1x4x8xbf16>
    %47 = vector.shape_cast %46 : vector<1x4x8xbf16> to vector<4x8xbf16>
    %cst_33 = arith.constant dense<0.000000e+00> : vector<128x8xf32>
    %48 = tpu.matmul %45, %47, %cst_33 {dimension_numbers = #tpu.dot_dimension_numbers<[1], [0], [0], [1], [0, 0, 1, 1], [], []>} : vector<128x4xbf16>, vector<4x8xbf16>, vector<128x8xf32> -> vector<128x8xf32>
    %49 = arith.addf %40, %48 : vector<128x8xf32>
    %c1_i32_34 = arith.constant 1 : i32
    %50 = arith.addi %1, %c1_i32_34 : i32
    %c0_35 = arith.constant 0 : index
    %51 = arith.index_cast %50 : i32 to index
    %c2_36 = arith.constant 2 : index
    %c0_37 = arith.constant 0 : index
    %52 = vector.load %arg2[%c0_35, %51, %c2_36, %c0_37] : memref<1x18x18x4xbf16, #tpu.memory_space<vmem>>, vector<1x8x16x4xbf16>
    %53 = vector.shape_cast %52 : vector<1x8x16x4xbf16> to vector<8x16x4xbf16>
    %54 = vector.shape_cast %53 : vector<8x16x4xbf16> to vector<128x4xbf16>
    %c5 = arith.constant 5 : index
    %c0_38 = arith.constant 0 : index
    %c0_39 = arith.constant 0 : index
    %55 = vector.load %arg3[%c5, %c0_38, %c0_39] : memref<9x4x8xbf16, #tpu.memory_space<vmem>>, vector<1x4x8xbf16>
    %56 = vector.shape_cast %55 : vector<1x4x8xbf16> to vector<4x8xbf16>
    %cst_40 = arith.constant dense<0.000000e+00> : vector<128x8xf32>
    %57 = tpu.matmul %54, %56, %cst_40 {dimension_numbers = #tpu.dot_dimension_numbers<[1], [0], [0], [1], [0, 0, 1, 1], [], []>} : vector<128x4xbf16>, vector<4x8xbf16>, vector<128x8xf32> -> vector<128x8xf32>
    %58 = arith.addf %49, %57 : vector<128x8xf32>
    %c2_i32 = arith.constant 2 : i32
    %59 = arith.addi %1, %c2_i32 : i32
    %c0_41 = arith.constant 0 : index
    %60 = arith.index_cast %59 : i32 to index
    %c0_42 = arith.constant 0 : index
    %c0_43 = arith.constant 0 : index
    %61 = vector.load %arg2[%c0_41, %60, %c0_42, %c0_43] : memref<1x18x18x4xbf16, #tpu.memory_space<vmem>>, vector<1x8x16x4xbf16>
    %62 = vector.shape_cast %61 : vector<1x8x16x4xbf16> to vector<8x16x4xbf16>
    %63 = vector.shape_cast %62 : vector<8x16x4xbf16> to vector<128x4xbf16>
    %c6 = arith.constant 6 : index
    %c0_44 = arith.constant 0 : index
    %c0_45 = arith.constant 0 : index
    %64 = vector.load %arg3[%c6, %c0_44, %c0_45] : memref<9x4x8xbf16, #tpu.memory_space<vmem>>, vector<1x4x8xbf16>
    %65 = vector.shape_cast %64 : vector<1x4x8xbf16> to vector<4x8xbf16>
    %cst_46 = arith.constant dense<0.000000e+00> : vector<128x8xf32>
    %66 = tpu.matmul %63, %65, %cst_46 {dimension_numbers = #tpu.dot_dimension_numbers<[1], [0], [0], [1], [0, 0, 1, 1], [], []>} : vector<128x4xbf16>, vector<4x8xbf16>, vector<128x8xf32> -> vector<128x8xf32>
    %67 = arith.addf %58, %66 : vector<128x8xf32>
    %c2_i32_47 = arith.constant 2 : i32
    %68 = arith.addi %1, %c2_i32_47 : i32
    %c0_48 = arith.constant 0 : index
    %69 = arith.index_cast %68 : i32 to index
    %c1_49 = arith.constant 1 : index
    %c0_50 = arith.constant 0 : index
    %70 = vector.load %arg2[%c0_48, %69, %c1_49, %c0_50] : memref<1x18x18x4xbf16, #tpu.memory_space<vmem>>, vector<1x8x16x4xbf16>
    %71 = vector.shape_cast %70 : vector<1x8x16x4xbf16> to vector<8x16x4xbf16>
    %72 = vector.shape_cast %71 : vector<8x16x4xbf16> to vector<128x4xbf16>
    %c7 = arith.constant 7 : index
    %c0_51 = arith.constant 0 : index
    %c0_52 = arith.constant 0 : index
    %73 = vector.load %arg3[%c7, %c0_51, %c0_52] : memref<9x4x8xbf16, #tpu.memory_space<vmem>>, vector<1x4x8xbf16>
    %74 = vector.shape_cast %73 : vector<1x4x8xbf16> to vector<4x8xbf16>
    %cst_53 = arith.constant dense<0.000000e+00> : vector<128x8xf32>
    %75 = tpu.matmul %72, %74, %cst_53 {dimension_numbers = #tpu.dot_dimension_numbers<[1], [0], [0], [1], [0, 0, 1, 1], [], []>} : vector<128x4xbf16>, vector<4x8xbf16>, vector<128x8xf32> -> vector<128x8xf32>
    %76 = arith.addf %67, %75 : vector<128x8xf32>
    %c2_i32_54 = arith.constant 2 : i32
    %77 = arith.addi %1, %c2_i32_54 : i32
    %c0_55 = arith.constant 0 : index
    %78 = arith.index_cast %77 : i32 to index
    %c2_56 = arith.constant 2 : index
    %c0_57 = arith.constant 0 : index
    %79 = vector.load %arg2[%c0_55, %78, %c2_56, %c0_57] : memref<1x18x18x4xbf16, #tpu.memory_space<vmem>>, vector<1x8x16x4xbf16>
    %80 = vector.shape_cast %79 : vector<1x8x16x4xbf16> to vector<8x16x4xbf16>
    %81 = vector.shape_cast %80 : vector<8x16x4xbf16> to vector<128x4xbf16>
    %c8 = arith.constant 8 : index
    %c0_58 = arith.constant 0 : index
    %c0_59 = arith.constant 0 : index
    %82 = vector.load %arg3[%c8, %c0_58, %c0_59] : memref<9x4x8xbf16, #tpu.memory_space<vmem>>, vector<1x4x8xbf16>
    %83 = vector.shape_cast %82 : vector<1x4x8xbf16> to vector<4x8xbf16>
    %cst_60 = arith.constant dense<0.000000e+00> : vector<128x8xf32>
    %84 = tpu.matmul %81, %83, %cst_60 {dimension_numbers = #tpu.dot_dimension_numbers<[1], [0], [0], [1], [0, 0, 1, 1], [], []>} : vector<128x4xbf16>, vector<4x8xbf16>, vector<128x8xf32> -> vector<128x8xf32>
    %85 = arith.addf %76, %84 : vector<128x8xf32>
    %cst_61 = arith.constant 0.000000e+00 : f32
    %86 = vector.broadcast %cst_61 : f32 to vector<128x8xf32>
    %87 = arith.maximumf %85, %86 : vector<128x8xf32>
    %88 = arith.truncf %87 : vector<128x8xf32> to vector<128x8xbf16>
    %c0_62 = arith.constant 0 : index
    %c0_63 = arith.constant 0 : index
    %c0_64 = arith.constant 0 : index
    %89 = vector.load %arg5[%c0_62, %c0_63, %c0_64] : memref<1x128x8xbf16, #tpu.memory_space<vmem>>, vector<1x128x8xbf16>
    %90 = vector.shape_cast %89 : vector<1x128x8xbf16> to vector<128x8xbf16>
    %91 = vector.shape_cast %88 : vector<128x8xbf16> to vector<1x128x8xbf16>
    tpu.vector_store %arg5[%c0_62, %c0_63, %c0_64], %91 {strides = array<i32>} : memref<1x128x8xbf16, #tpu.memory_space<vmem>>, vector<1x128x8xbf16>,
    return
  }
  func.func @transform_0(%arg0: i32, %arg1: i32) -> (i32, i32, i32, i32) {
    %c0_i32 = arith.constant 0 : i32
    %c0_i32_0 = arith.constant 0 : i32
    %c0_i32_1 = arith.constant 0 : i32
    %c0_i32_2 = arith.constant 0 : i32
    return %arg0, %c0_i32, %c0_i32_0, %c0_i32_1 : i32, i32, i32, i32
  }
  func.func @transform_1(%arg0: i32, %arg1: i32) -> (i32, i32, i32) {
    %c0_i32 = arith.constant 0 : i32
    %c0_i32_0 = arith.constant 0 : i32
    %c0_i32_1 = arith.constant 0 : i32
    %c0_i32_2 = arith.constant 0 : i32
    return %c0_i32, %c0_i32_0, %c0_i32_1 : i32, i32, i32
  }
  func.func @transform_2(%arg0: i32, %arg1: i32) -> (i32, i32) {
    %c0_i32 = arith.constant 0 : i32
    %c0_i32_0 = arith.constant 0 : i32
    %c0_i32_1 = arith.constant 0 : i32
    return %c0_i32, %c0_i32_0 : i32, i32
  }
  func.func @transform_3(%arg0: i32, %arg1: i32) -> (i32, i32, i32) {
    %c0_i32 = arith.constant 0 : i32
    %c0_i32_0 = arith.constant 0 : i32
    return %arg0, %arg1, %c0_i32 : i32, i32, i32
  }
}

module attributes {stable_mosaic.version = 11 : i64} {
  func.func @kernel(%arg0: i32, %arg1: i32, %arg2: memref<1x18x18x8xbf16, #tpu.memory_space<vmem>>, %arg3: memref<9x8x8xbf16, #tpu.memory_space<vmem>>, %arg4: memref<1x8xf32, #tpu.memory_space<vmem>>, %arg5: memref<1x4x8x8xf32, #tpu.memory_space<vmem>>, %arg6: memref<128x8xf32, #tpu.memory_space<vmem>>) attributes {dimension_semantics = [#tpu.dimension_semantics<parallel>, #tpu.dimension_semantics<parallel>], iteration_bounds = array<i64: 2, 2>, scalar_prefetch = 0 : i64, scratch_operands = 1 : i64, tpu.core_type = #tpu.core_type<tc>, window_params = [{transform_indices = @transform_0, window_bounds = array<i64: 1, 18, 18, 8>}, {pipeline_mode = #tpu.pipeline_mode<synchronous>, transform_indices = @transform_1, window_bounds = array<i64: 9, 8, 8>}, {pipeline_mode = #tpu.pipeline_mode<synchronous>, transform_indices = @transform_2, window_bounds = array<i64: 1, 8>}, {transform_indices = @transform_3, window_bounds = array<i64: 1, 4, 8, 8>}]} {
    %c8_i32 = arith.constant 8 : i32
    %0 = arith.muli %arg1, %c8_i32 : i32
    %1 = tpu.assume_multiple %0, 8 : i32
    %c0 = arith.constant 0 : index
    %c0_0 = arith.constant 0 : index
    %2 = vector.load %arg4[%c0, %c0_0] : memref<1x8xf32, #tpu.memory_space<vmem>>, vector<1x8xf32>
    %3 = vector.shape_cast %2 : vector<1x8xf32> to vector<1x8xf32>
    %4 = vector.broadcast %3 : vector<1x8xf32> to vector<128x8xf32>
    %c0_i32 = arith.constant 0 : i32
    %5 = arith.addi %1, %c0_i32 : i32
    %c0_1 = arith.constant 0 : index
    %6 = arith.index_cast %5 : i32 to index
    %c0_2 = arith.constant 0 : index
    %c0_3 = arith.constant 0 : index
    %7 = vector.load %arg2[%c0_1, %6, %c0_2, %c0_3] : memref<1x18x18x8xbf16, #tpu.memory_space<vmem>>, vector<1x8x16x8xbf16>
    %8 = vector.shape_cast %7 : vector<1x8x16x8xbf16> to vector<8x16x8xbf16>
    %9 = vector.shape_cast %8 : vector<8x16x8xbf16> to vector<128x8xbf16>
    %c0_4 = arith.constant 0 : index
    %c0_5 = arith.constant 0 : index
    %c0_6 = arith.constant 0 : index
    %10 = vector.load %arg3[%c0_4, %c0_5, %c0_6] : memref<9x8x8xbf16, #tpu.memory_space<vmem>>, vector<1x8x8xbf16>
    %11 = vector.shape_cast %10 : vector<1x8x8xbf16> to vector<8x8xbf16>
    %cst = arith.constant dense<0.000000e+00> : vector<128x8xf32>
    %12 = tpu.matmul %9, %11, %cst {dimension_numbers = #tpu.dot_dimension_numbers<[1], [0], [0], [1], [0, 0, 1, 1], [], []>} : vector<128x8xbf16>, vector<8x8xbf16>, vector<128x8xf32> -> vector<128x8xf32>
    %13 = arith.addf %4, %12 : vector<128x8xf32>
    %c0_i32_7 = arith.constant 0 : i32
    %14 = arith.addi %1, %c0_i32_7 : i32
    %c0_8 = arith.constant 0 : index
    %15 = arith.index_cast %14 : i32 to index
    %c1 = arith.constant 1 : index
    %c0_9 = arith.constant 0 : index
    %16 = vector.load %arg2[%c0_8, %15, %c1, %c0_9] : memref<1x18x18x8xbf16, #tpu.memory_space<vmem>>, vector<1x8x16x8xbf16>
    %17 = vector.shape_cast %16 : vector<1x8x16x8xbf16> to vector<8x16x8xbf16>
    %18 = vector.shape_cast %17 : vector<8x16x8xbf16> to vector<128x8xbf16>
    %c1_10 = arith.constant 1 : index
    %c0_11 = arith.constant 0 : index
    %c0_12 = arith.constant 0 : index
    %19 = vector.load %arg3[%c1_10, %c0_11, %c0_12] : memref<9x8x8xbf16, #tpu.memory_space<vmem>>, vector<1x8x8xbf16>
    %20 = vector.shape_cast %19 : vector<1x8x8xbf16> to vector<8x8xbf16>
    %cst_13 = arith.constant dense<0.000000e+00> : vector<128x8xf32>
    %21 = tpu.matmul %18, %20, %cst_13 {dimension_numbers = #tpu.dot_dimension_numbers<[1], [0], [0], [1], [0, 0, 1, 1], [], []>} : vector<128x8xbf16>, vector<8x8xbf16>, vector<128x8xf32> -> vector<128x8xf32>
    %22 = arith.addf %13, %21 : vector<128x8xf32>
    %c0_i32_14 = arith.constant 0 : i32
    %23 = arith.addi %1, %c0_i32_14 : i32
    %c0_15 = arith.constant 0 : index
    %24 = arith.index_cast %23 : i32 to index
    %c2 = arith.constant 2 : index
    %c0_16 = arith.constant 0 : index
    %25 = vector.load %arg2[%c0_15, %24, %c2, %c0_16] : memref<1x18x18x8xbf16, #tpu.memory_space<vmem>>, vector<1x8x16x8xbf16>
    %26 = vector.shape_cast %25 : vector<1x8x16x8xbf16> to vector<8x16x8xbf16>
    %27 = vector.shape_cast %26 : vector<8x16x8xbf16> to vector<128x8xbf16>
    %c2_17 = arith.constant 2 : index
    %c0_18 = arith.constant 0 : index
    %c0_19 = arith.constant 0 : index
    %28 = vector.load %arg3[%c2_17, %c0_18, %c0_19] : memref<9x8x8xbf16, #tpu.memory_space<vmem>>, vector<1x8x8xbf16>
    %29 = vector.shape_cast %28 : vector<1x8x8xbf16> to vector<8x8xbf16>
    %cst_20 = arith.constant dense<0.000000e+00> : vector<128x8xf32>
    %30 = tpu.matmul %27, %29, %cst_20 {dimension_numbers = #tpu.dot_dimension_numbers<[1], [0], [0], [1], [0, 0, 1, 1], [], []>} : vector<128x8xbf16>, vector<8x8xbf16>, vector<128x8xf32> -> vector<128x8xf32>
    %31 = arith.addf %22, %30 : vector<128x8xf32>
    %c1_i32 = arith.constant 1 : i32
    %32 = arith.addi %1, %c1_i32 : i32
    %c0_21 = arith.constant 0 : index
    %33 = arith.index_cast %32 : i32 to index
    %c0_22 = arith.constant 0 : index
    %c0_23 = arith.constant 0 : index
    %34 = vector.load %arg2[%c0_21, %33, %c0_22, %c0_23] : memref<1x18x18x8xbf16, #tpu.memory_space<vmem>>, vector<1x8x16x8xbf16>
    %35 = vector.shape_cast %34 : vector<1x8x16x8xbf16> to vector<8x16x8xbf16>
    %36 = vector.shape_cast %35 : vector<8x16x8xbf16> to vector<128x8xbf16>
    %c3 = arith.constant 3 : index
    %c0_24 = arith.constant 0 : index
    %c0_25 = arith.constant 0 : index
    %37 = vector.load %arg3[%c3, %c0_24, %c0_25] : memref<9x8x8xbf16, #tpu.memory_space<vmem>>, vector<1x8x8xbf16>
    %38 = vector.shape_cast %37 : vector<1x8x8xbf16> to vector<8x8xbf16>
    %cst_26 = arith.constant dense<0.000000e+00> : vector<128x8xf32>
    %39 = tpu.matmul %36, %38, %cst_26 {dimension_numbers = #tpu.dot_dimension_numbers<[1], [0], [0], [1], [0, 0, 1, 1], [], []>} : vector<128x8xbf16>, vector<8x8xbf16>, vector<128x8xf32> -> vector<128x8xf32>
    %40 = arith.addf %31, %39 : vector<128x8xf32>
    %c1_i32_27 = arith.constant 1 : i32
    %41 = arith.addi %1, %c1_i32_27 : i32
    %c0_28 = arith.constant 0 : index
    %42 = arith.index_cast %41 : i32 to index
    %c1_29 = arith.constant 1 : index
    %c0_30 = arith.constant 0 : index
    %43 = vector.load %arg2[%c0_28, %42, %c1_29, %c0_30] : memref<1x18x18x8xbf16, #tpu.memory_space<vmem>>, vector<1x8x16x8xbf16>
    %44 = vector.shape_cast %43 : vector<1x8x16x8xbf16> to vector<8x16x8xbf16>
    %45 = vector.shape_cast %44 : vector<8x16x8xbf16> to vector<128x8xbf16>
    %c4 = arith.constant 4 : index
    %c0_31 = arith.constant 0 : index
    %c0_32 = arith.constant 0 : index
    %46 = vector.load %arg3[%c4, %c0_31, %c0_32] : memref<9x8x8xbf16, #tpu.memory_space<vmem>>, vector<1x8x8xbf16>
    %47 = vector.shape_cast %46 : vector<1x8x8xbf16> to vector<8x8xbf16>
    %cst_33 = arith.constant dense<0.000000e+00> : vector<128x8xf32>
    %48 = tpu.matmul %45, %47, %cst_33 {dimension_numbers = #tpu.dot_dimension_numbers<[1], [0], [0], [1], [0, 0, 1, 1], [], []>} : vector<128x8xbf16>, vector<8x8xbf16>, vector<128x8xf32> -> vector<128x8xf32>
    %49 = arith.addf %40, %48 : vector<128x8xf32>
    %c1_i32_34 = arith.constant 1 : i32
    %50 = arith.addi %1, %c1_i32_34 : i32
    %c0_35 = arith.constant 0 : index
    %51 = arith.index_cast %50 : i32 to index
    %c2_36 = arith.constant 2 : index
    %c0_37 = arith.constant 0 : index
    %52 = vector.load %arg2[%c0_35, %51, %c2_36, %c0_37] : memref<1x18x18x8xbf16, #tpu.memory_space<vmem>>, vector<1x8x16x8xbf16>
    %53 = vector.shape_cast %52 : vector<1x8x16x8xbf16> to vector<8x16x8xbf16>
    %54 = vector.shape_cast %53 : vector<8x16x8xbf16> to vector<128x8xbf16>
    %c5 = arith.constant 5 : index
    %c0_38 = arith.constant 0 : index
    %c0_39 = arith.constant 0 : index
    %55 = vector.load %arg3[%c5, %c0_38, %c0_39] : memref<9x8x8xbf16, #tpu.memory_space<vmem>>, vector<1x8x8xbf16>
    %56 = vector.shape_cast %55 : vector<1x8x8xbf16> to vector<8x8xbf16>
    %cst_40 = arith.constant dense<0.000000e+00> : vector<128x8xf32>
    %57 = tpu.matmul %54, %56, %cst_40 {dimension_numbers = #tpu.dot_dimension_numbers<[1], [0], [0], [1], [0, 0, 1, 1], [], []>} : vector<128x8xbf16>, vector<8x8xbf16>, vector<128x8xf32> -> vector<128x8xf32>
    %58 = arith.addf %49, %57 : vector<128x8xf32>
    %c2_i32 = arith.constant 2 : i32
    %59 = arith.addi %1, %c2_i32 : i32
    %c0_41 = arith.constant 0 : index
    %60 = arith.index_cast %59 : i32 to index
    %c0_42 = arith.constant 0 : index
    %c0_43 = arith.constant 0 : index
    %61 = vector.load %arg2[%c0_41, %60, %c0_42, %c0_43] : memref<1x18x18x8xbf16, #tpu.memory_space<vmem>>, vector<1x8x16x8xbf16>
    %62 = vector.shape_cast %61 : vector<1x8x16x8xbf16> to vector<8x16x8xbf16>
    %63 = vector.shape_cast %62 : vector<8x16x8xbf16> to vector<128x8xbf16>
    %c6 = arith.constant 6 : index
    %c0_44 = arith.constant 0 : index
    %c0_45 = arith.constant 0 : index
    %64 = vector.load %arg3[%c6, %c0_44, %c0_45] : memref<9x8x8xbf16, #tpu.memory_space<vmem>>, vector<1x8x8xbf16>
    %65 = vector.shape_cast %64 : vector<1x8x8xbf16> to vector<8x8xbf16>
    %cst_46 = arith.constant dense<0.000000e+00> : vector<128x8xf32>
    %66 = tpu.matmul %63, %65, %cst_46 {dimension_numbers = #tpu.dot_dimension_numbers<[1], [0], [0], [1], [0, 0, 1, 1], [], []>} : vector<128x8xbf16>, vector<8x8xbf16>, vector<128x8xf32> -> vector<128x8xf32>
    %67 = arith.addf %58, %66 : vector<128x8xf32>
    %c2_i32_47 = arith.constant 2 : i32
    %68 = arith.addi %1, %c2_i32_47 : i32
    %c0_48 = arith.constant 0 : index
    %69 = arith.index_cast %68 : i32 to index
    %c1_49 = arith.constant 1 : index
    %c0_50 = arith.constant 0 : index
    %70 = vector.load %arg2[%c0_48, %69, %c1_49, %c0_50] : memref<1x18x18x8xbf16, #tpu.memory_space<vmem>>, vector<1x8x16x8xbf16>
    %71 = vector.shape_cast %70 : vector<1x8x16x8xbf16> to vector<8x16x8xbf16>
    %72 = vector.shape_cast %71 : vector<8x16x8xbf16> to vector<128x8xbf16>
    %c7 = arith.constant 7 : index
    %c0_51 = arith.constant 0 : index
    %c0_52 = arith.constant 0 : index
    %73 = vector.load %arg3[%c7, %c0_51, %c0_52] : memref<9x8x8xbf16, #tpu.memory_space<vmem>>, vector<1x8x8xbf16>
    %74 = vector.shape_cast %73 : vector<1x8x8xbf16> to vector<8x8xbf16>
    %cst_53 = arith.constant dense<0.000000e+00> : vector<128x8xf32>
    %75 = tpu.matmul %72, %74, %cst_53 {dimension_numbers = #tpu.dot_dimension_numbers<[1], [0], [0], [1], [0, 0, 1, 1], [], []>} : vector<128x8xbf16>, vector<8x8xbf16>, vector<128x8xf32> -> vector<128x8xf32>
    %76 = arith.addf %67, %75 : vector<128x8xf32>
    %c2_i32_54 = arith.constant 2 : i32
    %77 = arith.addi %1, %c2_i32_54 : i32
    %c0_55 = arith.constant 0 : index
    %78 = arith.index_cast %77 : i32 to index
    %c2_56 = arith.constant 2 : index
    %c0_57 = arith.constant 0 : index
    %79 = vector.load %arg2[%c0_55, %78, %c2_56, %c0_57] : memref<1x18x18x8xbf16, #tpu.memory_space<vmem>>, vector<1x8x16x8xbf16>
    %80 = vector.shape_cast %79 : vector<1x8x16x8xbf16> to vector<8x16x8xbf16>
    %81 = vector.shape_cast %80 : vector<8x16x8xbf16> to vector<128x8xbf16>
    %c8 = arith.constant 8 : index
    %c0_58 = arith.constant 0 : index
    %c0_59 = arith.constant 0 : index
    %82 = vector.load %arg3[%c8, %c0_58, %c0_59] : memref<9x8x8xbf16, #tpu.memory_space<vmem>>, vector<1x8x8xbf16>
    %83 = vector.shape_cast %82 : vector<1x8x8xbf16> to vector<8x8xbf16>
    %cst_60 = arith.constant dense<0.000000e+00> : vector<128x8xf32>
    %84 = tpu.matmul %81, %83, %cst_60 {dimension_numbers = #tpu.dot_dimension_numbers<[1], [0], [0], [1], [0, 0, 1, 1], [], []>} : vector<128x8xbf16>, vector<8x8xbf16>, vector<128x8xf32> -> vector<128x8xf32>
    %85 = arith.addf %76, %84 : vector<128x8xf32>
    %cst_61 = arith.constant 0.000000e+00 : f32
    %86 = vector.broadcast %cst_61 : f32 to vector<128x8xf32>
    %87 = arith.maximumf %85, %86 : vector<128x8xf32>
    %c0_62 = arith.constant 0 : index
    %c0_63 = arith.constant 0 : index
    %88 = vector.load %arg6[%c0_62, %c0_63] : memref<128x8xf32, #tpu.memory_space<vmem>>, vector<128x8xf32>
    tpu.vector_store %arg6[%c0_62, %c0_63], %87 {strides = array<i32>} : memref<128x8xf32, #tpu.memory_space<vmem>>, vector<128x8xf32>,
    %c0_64 = arith.constant 0 : index
    %c0_65 = arith.constant 0 : index
    %89 = tpu.strided_load %arg6[%c0_64, %c0_65] {strides = array<i32: 2, 1>} : memref<128x8xf32, #tpu.memory_space<vmem>>, vector<64x8xf32>
    %c1_66 = arith.constant 1 : index
    %c0_67 = arith.constant 0 : index
    %90 = tpu.strided_load %arg6[%c1_66, %c0_67] {strides = array<i32: 2, 1>} : memref<128x8xf32, #tpu.memory_space<vmem>>, vector<64x8xf32>
    %91 = arith.maximumf %89, %90 : vector<64x8xf32>
    %92 = vector.shape_cast %91 : vector<64x8xf32> to vector<4x16x8xf32>
    %93 = vector.extract_strided_slice %92 {offsets = [0, 0, 0], sizes = [4, 8, 8], strides = [1, 1, 1]} : vector<4x16x8xf32> to vector<4x8x8xf32>
    %94 = vector.extract_strided_slice %92 {offsets = [0, 8, 0], sizes = [4, 8, 8], strides = [1, 1, 1]} : vector<4x16x8xf32> to vector<4x8x8xf32>
    %95 = arith.maximumf %93, %94 : vector<4x8x8xf32>
    %c0_68 = arith.constant 0 : index
    %c0_69 = arith.constant 0 : index
    %c0_70 = arith.constant 0 : index
    %c0_71 = arith.constant 0 : index
    %96 = vector.load %arg5[%c0_68, %c0_69, %c0_70, %c0_71] : memref<1x4x8x8xf32, #tpu.memory_space<vmem>>, vector<1x4x8x8xf32>
    %97 = vector.shape_cast %96 : vector<1x4x8x8xf32> to vector<4x8x8xf32>
    %98 = vector.shape_cast %95 : vector<4x8x8xf32> to vector<1x4x8x8xf32>
    tpu.vector_store %arg5[%c0_68, %c0_69, %c0_70, %c0_71], %98 {strides = array<i32>} : memref<1x4x8x8xf32, #tpu.memory_space<vmem>>, vector<1x4x8x8xf32>,
    return
  }
  func.func @transform_0(%arg0: i32, %arg1: i32) -> (i32, i32, i32, i32) {
    %c0_i32 = arith.constant 0 : i32
    %c0_i32_0 = arith.constant 0 : i32
    %c0_i32_1 = arith.constant 0 : i32
    %c0_i32_2 = arith.constant 0 : i32
    return %arg0, %c0_i32, %c0_i32_0, %c0_i32_1 : i32, i32, i32, i32
  }
  func.func @transform_1(%arg0: i32, %arg1: i32) -> (i32, i32, i32) {
    %c0_i32 = arith.constant 0 : i32
    %c0_i32_0 = arith.constant 0 : i32
    %c0_i32_1 = arith.constant 0 : i32
    %c0_i32_2 = arith.constant 0 : i32
    return %c0_i32, %c0_i32_0, %c0_i32_1 : i32, i32, i32
  }
  func.func @transform_2(%arg0: i32, %arg1: i32) -> (i32, i32) {
    %c0_i32 = arith.constant 0 : i32
    %c0_i32_0 = arith.constant 0 : i32
    %c0_i32_1 = arith.constant 0 : i32
    return %c0_i32, %c0_i32_0 : i32, i32
  }
  func.func @transform_3(%arg0: i32, %arg1: i32) -> (i32, i32, i32, i32) {
    %c0_i32 = arith.constant 0 : i32
    %c0_i32_0 = arith.constant 0 : i32
    %c0_i32_1 = arith.constant 0 : i32
    return %arg0, %arg1, %c0_i32, %c0_i32_0 : i32, i32, i32, i32
  }
}

</mosaic_0001>

<bundles_post_ra>
// kernel: vgg_block_forward.2
= control target key start
LH: loop header
LB: loop body
LE: loop exit
PB: predicated region body
PF: predicated region fallthrough
CT: control target
= control target key end

     0   :  { %s3763_s12 = smov 0   ;;  %s3765_s13 = smov 0   ;;  %s4663_s0 = inlined_call_operand.vmem [shape: bf16[2,18,18,4], index: 0, kind: input, shape index: {}]   ;;  %s4664_s1 = inlined_call_operand.vmem [shape: bf16[9,4,8], index: 1, kind: input, shape index: {}]   ;;  %s4665_s2 = inlined_call_operand.vmem [shape: f32[1,8], index: 2, kind: input, shape index: {}]   ;;  %s4666_s3 = inlined_call_operand.vmem [shape: bf16[2,256,8], index: 3, kind: output, shape index: {}]  }
   0x1   :  { %s3767_s14 = smov 0   ;;  %s3769_s15 = smov 0  }
   0x2   :  { %s3771_s16 = smov 0  }
   0x3 LB: > { %s22_s17 = sadd.s32 1, %s3733_s14  ;;  %s25_s18 = sadd.s32 1, %s3737_s15  ;;  %s3741_s16 = sphi %s3771_s16, %s13_s16   ;;  %s3737_s15 = sphi %s3769_s15, %s4674_s15   ;;  %s3733_s14 = sphi %s3767_s14, %s4673_s14   ;;  %s3729_s13 = sphi %s3765_s13, %s4672_s13   ;;  %s3725_s12 = sphi %s3763_s12, %s4671_s12  }
   0x4   : > { %p23_p0 = scmp.ge.s32.totalorder %s22_s17, 2  ;;  %p2918_p1 = scmp.ge.s32.totalorder %s3741_s16, 1 }
   0x5   : > { %p151_p2 = scmp.lt.s32.totalorder %s3741_s16, 5 }
   0x6   : > { %s4676_s17 = smov (%p23_p0, %s22_s17), 0  ;;  %s4678_s18 = smov (!%p23_p0, %s25_s18), %s3737_s15 }
   0x7   : > { %p152_p3 = pnand %p2918_p1, %p151_p2  ;;  %p27_p4 = scmp.ge.s32.totalorder %s4678_s18, 2 }
   0x8   : > { %v222_v0 = vld [vmem:[%s4664_s1] sm:$0x3] (!%p152_p3)  ;;  %vm288_vm0 = vcmask (!%p152_p3), 1041408   ;;  %p179_p5 = scmp.lt.s32.totalorder (!%p152_p3), %s3729_s13, 1  ;;  %v3044_v2 = vld [vmem:[%s4664_s1 + $0x8] sm:$0x3] (!%p152_p3) }
   0x9   : > { %s4680_s18 = smov (%p27_p4, %s4678_s18), 0  ;;  %155 = sbr.rel (%p152_p3) target bundleno = 403 (0x193), region = 32 }
   0xa   : > { %3627 = vmatprep.subr.msk.bf16.mxu1 (!%p152_p3), %vm288_vm0, %v222_v0  ;;  %v290_v1 = vsel (!%p152_p3), %vm288_vm0, %v222_v0, 0  ;;  %v2943_v3 = vld [vmem:[%s4664_s1 + $0x2] sm:$0x3] (!%p152_p3)  ;;  %3631 = vmatprep.subr.msk.bf16.mxu0 (!%p152_p3), %vm288_vm0, %v3044_v2  ;;  %v3810_v4 = vsel (!%p152_p3), %vm288_vm0, %v3044_v2, 0  ;;  %s3221_s25 = smul.u32 (!%p152_p3), 96, %s3725_s12  ;;  %vm263_vm1 = vcmask (!%p152_p3), 31744  }
   0xb   : > { %3320 = vmatpush3.bf16.msra.mxu1 (!%p152_p3), %v290_v1  ;;  %3392 = vmatpush3.bf16.msra.mxu0 (!%p152_p3), %v3810_v4  ;;  %v3077_v5 = vld [vmem:[%s4664_s1 + $0xa] sm:$0x3] (!%p152_p3)  ;;  %v3823_v6 = vld [vmem:[%s4664_s1 + $0xc] sm:$0x3] (!%p152_p3)  ;;  %v675_v7 = vsel (!%p152_p3), %vm288_vm0, %v2943_v3, 0  ;;  %vm822_vm4 = vcmask (!%p152_p3), 1042432  }
   0xc   : > { %3628 = vmatprep.subr.msk.bf16.mxu1 (!%p152_p3), %vm288_vm0, %v2943_v3  ;;  %3633 = vmatprep.subr.msk.bf16.mxu0 (!%p152_p3), %vm288_vm0, %v3077_v5  ;;  %v3830_v8 = vsel (!%p152_p3), %vm288_vm0, %v3077_v5, 0  ;;  %v2968_v9 = vld [vmem:[%s4664_s1 + $0x4] sm:$0x3] (!%p152_p3)  ;;  %vm429_vm2 = vsmask.f32 (!%p152_p3), 3328  ;;  %v3855_v14 = vsel (!%p152_p3), %vm288_vm0, %v3823_v6, 0 }
   0xd   : > { %vm430_vm3 = vsmask.f32 (!%p152_p3), 7440  ;;  %v3840_v10 = vld [vmem:[%s4664_s1 + $0xe] sm:$0x3] (!%p152_p3)  ;;  %v3845_v11 = vld [vmem:[%s4664_s1 + $0x6] sm:$0x3] (!%p152_p3) }
   0xe   : > { %v3850_v12 = vld [vmem:[%s4664_s1 + $0x10] sm:$0x3] (!%p152_p3)  ;;  %v3859_v16 = vsel (!%p152_p3), %vm288_vm0, %v2968_v9, 0  ;;  %v3865_v18 = vsel (!%p152_p3), %vm288_vm0, %v3840_v10, 0  ;;  %v3870_v19 = vsel (!%p152_p3), %vm288_vm0, %v3845_v11, 0  ;;  %vm823_vm5 = vcmask (!%p152_p3), 1046532   ;;  %vm3903_vm6 = vmor (!%p152_p3), %vm429_vm2, %vm430_vm3 }
   0xf   : > { %v3874_v20 = vsel (!%p152_p3), %vm288_vm0, %v3850_v12, 0  ;;  %vm3950_vm7 = vmor (!%p152_p3), %vm822_vm4, %vm823_vm5  ;;  %vm2803_vm8 = vcmask (!%p152_p3), 60416  }
  0x10   : > { %s4682_s13 = smov (!%p179_p5, %s3729_s13), 1 }
  0x11   : > { %s3637_s28 = smul.u32 216, %s4682_s13  ;;  %s2921_s26 = sshll.u32 %s4682_s13, 5 }
  0x13   : > { %s183_s6 = scalar_lea.vmem %s4663_s0, %s3637_s28 }
  0x14   : > { %s3835_s9 = scalar_lea.vmem %s183_s6, %s3221_s25  ;;  %s2920_s25 = sshll.u32 %s3725_s12, 4 }
  0x15   : > { %v3678_v13 = vld [vmem:[%s3835_s9] sm:$0xff]   ;;  %v3679_v15 = vld [vmem:[%s3835_s9 + $0xc] sm:$0xff]   ;;  %v3680_v17 = vld [vmem:[%s3835_s9 + $0x18] sm:$0xff]   ;;  %p187_p6 = scmp.lt.s32.totalorder %s2920_s25, 31 }
  0x16   : > { %3321 = vmatprep.mubr.msk.bf16.mxu1 %vm263_vm1, %v3678_v13  ;;  %v3020_v21 = vld [vmem:[%s3835_s9 + $0xc] sm:$0xf]  ;;  %v3879_v22 = vld [vmem:[%s3835_s9 + $0x10] sm:$0xf]  ;;  %v3882_v23 = vld [vmem:[%s3835_s9 + $0x14] sm:$0x1] }
  0x17   : > { %3322 = vmatmul.mubr.msk.bf16.vlgmr.msra.gmra.mrb[0].mxu1 %vm263_vm1, %v3679_v15  ;;  %v1274_v24 = vshrl.u32 %v3020_v21, 16  ;;  %v1277_v25 = vshll.u32 %v3020_v21, 16  ;;  %v1283_v26 = vshll.u32 %v3879_v22, 16  ;;  %v1287_v27 = vshrl.u32 %v3879_v22, 16  ;;  %v3023_v28 = vld [vmem:[%s3835_s9 + $0x18] sm:$0xf] }
  0x18   : > { %3325 = vmatprep.mubr.msk.bf16.mxu1 %vm263_vm1, %v3680_v17  ;;  %3338 = vmatpush3.bf16.msra.mxu1 %v675_v7  ;;  %v3681_v29 = vld [vmem:[%s3835_s9 + $0x24] sm:$0xff]   ;;  %v1293_v30 = vshll.u32 %v3882_v23, 16  ;;  %v1665_v31 = vrot.slane %v3879_v22, 5  ;;  %v3892_v32 = vld [vmem:[%s3835_s9 + $0x1c] sm:$0xf]  ;;  %v1298_v33 = vshrl.u32 %v3023_v28, 16 }
  0x19   : > { %3629 = vmatprep.subr.msk.bf16.mxu1 %vm288_vm0, %v2968_v9  ;;  %v1276_v34 = vrot.slane %v1274_v24, 4  ;;  %v1279_v35 = vrot.slane %v1277_v25, 5  ;;  %v1285_v36 = vrot.slane %v1283_v26, 5  ;;  %v1289_v37 = vrot.slane %v1287_v27, 4  ;;  %v3895_v38 = vld [vmem:[%s3835_s9 + $0x20] sm:$0x1] }
  0x1a   : > { %v1295_v39 = vrot.slane %v1293_v30, 5  ;;  %v1300_v40 = vrot.slane %v1298_v33, 4  ;;  %v1301_v41 = vshll.u32 %v3023_v28, 16  ;;  %v1307_v42 = vshll.u32 %v3892_v32, 16  ;;  %v3682_v47 = vld [vmem:[%s3835_s9 + $0x30] sm:$0xff]   ;;  %v3683_v9 = vld [vmem:[%s3835_s9 + $0x3c] sm:$0xff]  }
  0x1b   : > { %v1280_v43 = vor.u32 %v1279_v35, %v1276_v34  ;;  %v1290_v44 = vor.u32 %v1289_v37, %v1285_v36  ;;  %v1311_v45 = vshrl.u32 %v3892_v32, 16  ;;  %v1317_v46 = vshll.u32 %v3895_v38, 16  ;;  %v3026_v60 = vld [vmem:[%s3835_s9 + $0x24] sm:$0xf]  ;;  %v3918_v61 = vld [vmem:[%s3835_s9 + $0x28] sm:$0xf] }
  0x1c   : > { %v1668_v49 = vrot.slane %v3882_v23, 5  ;;  %v1303_v50 = vrot.slane %v1301_v41, 5  ;;  %v1309_v51 = vrot.slane %v1307_v42, 5  ;;  %v1672_v52 = vrot.slane %v3892_v32, 5  ;;  %v3925_v1 = vld [vmem:[%s3835_s9 + $0x2c] sm:$0x1] }
  0x1d   : > { %v1281_v53 = vrot.slane %v1280_v43, 4  ;;  %v1291_v54 = vrot.slane %v1290_v44, 4  ;;  %v1313_v55 = vrot.slane %v1311_v45, 4  ;;  %v1675_v56 = vrot.slane %v3895_v38, 5  ;;  %v3029_v3 = vld [vmem:[%s3835_s9 + $0x30] sm:$0xf] }
  0x1e   : > { %v1304_v57 = vor.u32 %v1303_v50, %v1300_v40  ;;  %v1319_v58 = vrot.slane %v1317_v46, 5  ;;  %v3913_v59 = vrot.slane %v1672_v52, 4  ;;  %v1322_v2 = vshrl.u32 %v3026_v60, 16  ;;  %v3931_v17 = vld [vmem:[%s3835_s9 + $0x34] sm:$0xf]  ;;  %v3684_v34 = vld [vmem:[%s3835_s9 + $0x48] sm:$0xff]  }
  0x1f   : > { %3326 = vmatmul.mubr.msk.bf16.gmra.mrb[4].mxu1 %vm263_vm1, %v3681_v29  ;;  %v1286_v62 = vsel %vm3903_vm6, %v1281_v53, %v1285_v36  ;;  %v1296_v63 = vsel %vm3903_vm6, %v1291_v54, %v1295_v39  ;;  %v1314_v0 = vor.u32 %v1313_v55, %v1309_v51  ;;  %v1325_v13 = vshll.u32 %v3026_v60, 16  ;;  %v3936_v27 = vld [vmem:[%s3835_s9 + $0x38] sm:$0x1]  ;;  %s4684_s25 = smov (!%p187_p6, %s2920_s25), 31  ;;  %v4593_v50 = vld [vmem:[%s4665_s2] ss:$0 sm:$0xff] }
  0x20   : > { %3329 = vmatprep.mubr.msk.bf16.mxu1 %vm263_vm1, %v3682_v47  ;;  %v3045_v5 = vcombine.low %v1286_v62, %v1296_v63  ;;  %v1305_v7 = vrot.slane %v1304_v57, 4  ;;  %v1331_v15 = vshll.u32 %v3918_v61, 16  ;;  %v1324_v24 = vrot.slane %v1322_v2, 4  ;;  %v405_v2 = vld [vmem:[%s3835_s9] sm:$0xf]  ;;  %v3685_v22 = vld [vmem:[%s3835_s9 + $0x54] sm:$0xff]   ;;  %s190_s29 = sadd.s32 %s2921_s26, %s4684_s25 }
  0x21   : > { %v1315_v21 = vrot.slane %v1314_v0, 4  ;;  %v1335_v25 = vshrl.u32 %v3918_v61, 16  ;;  %v1341_v26 = vshll.u32 %v3925_v1, 16  ;;  %v1327_v29 = vrot.slane %v1325_v13, 5  ;;  %s2922_s12 = sshll.u32 %s190_s29, 2 }
  0x22   : > { %3393 = vmatprep.mubr.msk.bf16.mxu0 %vm263_vm1, %v3045_v5  ;;  %v1310_v28 = vsel %vm3903_vm6, %v1305_v7, %v1309_v51  ;;  %v1333_v30 = vrot.slane %v1331_v15, 5  ;;  %v1346_v33 = vshrl.u32 %v3029_v3, 16  ;;  %v1349_v39 = vshll.u32 %v3029_v3, 16  ;;  %v3061_v51 = vld [vmem:[%s3835_s9 + $0xc] sm:$0xe]  ;;  %s4602_s4 = scalar_lea.vmem %s4666_s3, %s2922_s12 }
  0x23   : > { %v1320_v35 = vsel %vm3903_vm6, %v1315_v21, %v1319_v58  ;;  %v1337_v36 = vrot.slane %v1335_v25, 4  ;;  %v1343_v37 = vrot.slane %v1341_v26, 5  ;;  %v1328_v41 = vor.u32 %v1327_v29, %v1324_v24  ;;  %v3062_v58 = vld [vmem:[%s3835_s9 + $0x18] sm:$0xe]  ;;  %v3978_v24 = vld [vmem:[%s3835_s9 + $0x4] sm:$0xf] }
  0x24   : > { %v3046_v40 = vcombine.low %v1310_v28, %v1320_v35  ;;  %v1348_v42 = vrot.slane %v1346_v33, 4  ;;  %v1355_v43 = vshll.u32 %v3931_v17, 16  ;;  %v1351_v45 = vrot.slane %v1349_v39, 5  ;;  %v408_v26 = vld [vmem:[%s3835_s9 + $0xc] sm:$0xf] }
  0x25   : > { %v1338_v44 = vor.u32 %v1337_v36, %v1333_v30  ;;  %v1359_v46 = vshrl.u32 %v3931_v17, 16  ;;  %v1365_v47 = vshll.u32 %v3936_v27, 16  ;;  %v1329_v53 = vrot.slane %v1328_v41, 4 }
  0x26   : > { %3394 = vmatmul.mubr.msk.bf16.vlgmr.msra.gmra.mrb[0].mxu0 %vm263_vm1, %v3046_v40  ;;  %v1357_v54 = vrot.slane %v1355_v43, 5  ;;  %v3069_v55 = vrot.slane %v3061_v51, 9  ;;  %v1667_v57 = vrot.slane %v1665_v31, 4  ;;  %v1352_v62 = vor.u32 %v1351_v45, %v1348_v42  ;;  %v3063_v40 = vld [vmem:[%s3835_s9 + $0x24] sm:$0xe] }
  0x27   : > { %3330 = vmatmul.mubr.msk.bf16.gmra.mrb[8].mxu1 %vm263_vm1, %v3683_v9  ;;  %3410 = vmatpush3.bf16.msra.mxu0 %v3830_v8  ;;  %v1339_v60 = vrot.slane %v1338_v44, 4  ;;  %v1361_v63 = vrot.slane %v1359_v46, 4  ;;  %v1367_v0 = vrot.slane %v1365_v47, 5  ;;  %v1334_v3 = vsel %vm3903_vm6, %v1329_v53, %v1333_v30 }
  0x28   : > { %3333 = vmatprep.mubr.msk.bf16.mxu1 %vm263_vm1, %v3684_v34  ;;  %v1666_v5 = vsel %vm3950_vm7, %v3069_v55, %v1665_v31  ;;  %v1669_v8 = vsel %vm3950_vm7, %v1667_v57, %v1668_v49  ;;  %3634 = vmatprep.subr.msk.bf16.mxu0 %vm288_vm0, %v3823_v6  ;;  %v3070_v7 = vrot.slane %v3062_v58, 9  ;;  %v1353_v13 = vrot.slane %v1352_v62, 4  ;;  %v3981_v31 = vld [vmem:[%s3835_s9 + $0x8] sm:$0x1]  ;;  %v4009_v34 = vld [vmem:[%s3835_s9 + $0x14] sm:$0x1] }
  0x29   : > { %v1344_v9 = vsel %vm3903_vm6, %v1339_v60, %v1343_v37  ;;  %v1362_v15 = vor.u32 %v1361_v63, %v1357_v54  ;;  %v3078_v21 = vcombine.low %v1666_v5, %v1669_v8  ;;  %v3994_v49 = vsel %vm3950_vm7, %v3913_v59, %v1675_v56 }
  0x2a   : > { %v3047_v23 = vcombine.low %v1334_v3, %v1344_v9  ;;  %v3987_v6 = vsel %vm3950_vm7, %v3070_v7, %v1672_v52  ;;  %v433_v25 = vshrl.u32 %v405_v2, 16  ;;  %v1358_v28 = vsel %vm3903_vm6, %v1353_v13, %v1357_v54  ;;  %v4002_v52 = vld [vmem:[%s3835_s9 + $0x10] sm:$0xf] }
  0x2b   : > { %v1363_v29 = vrot.slane %v1362_v15, 4  ;;  %v3079_v32 = vcombine.low %v3987_v6, %v3994_v49  ;;  %v436_v30 = vshll.u32 %v405_v2, 16  ;;  %v442_v33 = vshll.u32 %v3978_v24, 16 }
  0x2c   : > { %3397 = vmatprep.mubr.msk.bf16.mxu0 %vm263_vm1, %v3047_v23  ;;  %v435_v38 = vrot.slane %v433_v25, 4  ;;  %v446_v56 = vshrl.u32 %v3978_v24, 16  ;;  %v452_v59 = vshll.u32 %v3981_v31, 16  ;;  %v457_v37 = vshrl.u32 %v408_v26, 16  ;;  %v411_v25 = vld [vmem:[%s3835_s9 + $0x18] sm:$0xf] }
  0x2d   : > { %v1368_v35 = vsel %vm3903_vm6, %v1363_v29, %v1367_v0  ;;  %v438_v36 = vrot.slane %v436_v30, 5  ;;  %v460_v39 = vshll.u32 %v408_v26, 16  ;;  %v444_v42 = vrot.slane %v442_v33, 5  ;;  %v3064_v0 = vld [vmem:[%s3835_s9 + $0x30] sm:$0xe] }
  0x2e   : > { %v3048_v41 = vcombine.low %v1358_v28, %v1368_v35  ;;  %v448_v43 = vrot.slane %v446_v56, 4  ;;  %v454_v44 = vrot.slane %v452_v59, 5  ;;  %v459_v46 = vrot.slane %v457_v37, 4  ;;  %v4032_v26 = vld [vmem:[%s3835_s9 + $0x1c] sm:$0xf] }
  0x2f   : > { %3334 = vmatmul.mubr.msk.bf16.gmra.mrb[12].mxu1 %vm263_vm1, %v3685_v22  ;;  %v439_v45 = vor.u32 %v438_v36, %v435_v38  ;;  %v462_v47 = vrot.slane %v460_v39, 5  ;;  %v466_v51 = vshll.u32 %v4002_v52, 16  ;;  %v470_v54 = vshrl.u32 %v4002_v52, 16  ;;  %v4040_v38 = vld [vmem:[%s3835_s9 + $0x20] sm:$0x1] }
  0x30   : > { %3398 = vmatmul.mubr.msk.bf16.gmra.mrb[4].mxu0 %vm263_vm1, %v3048_v41  ;;  %v449_v53 = vor.u32 %v448_v43, %v444_v42  ;;  %v476_v55 = vshll.u32 %v4009_v34, 16  ;;  %v3071_v57 = vrot.slane %v3063_v40, 9  ;;  %v1679_v63 = vrot.slane %v3918_v61, 5  ;;  %v414_v33 = vld [vmem:[%s3835_s9 + $0x24] sm:$0xf] }
  0x31   : > { %3411 = vmatprep.mubr.msk.bf16.mxu0 %vm263_vm1, %v3078_v21  ;;  %v440_v58 = vrot.slane %v439_v45, 4  ;;  %v463_v60 = vor.u32 %v462_v47, %v459_v46  ;;  %v468_v62 = vrot.slane %v466_v51, 5  ;;  %v472_v3 = vrot.slane %v470_v54, 4  ;;  %v4058_v43 = vld [vmem:[%s3835_s9 + $0x28] sm:$0xf] }
  0x32   : > { %v450_v2 = vrot.slane %v449_v53, 4  ;;  %v478_v5 = vrot.slane %v476_v55, 5  ;;  %v1682_v8 = vrot.slane %v3925_v1, 5  ;;  %v1680_v13 = vsel %vm3950_vm7, %v3071_v57, %v1679_v63  ;;  %v4066_v47 = vld [vmem:[%s3835_s9 + $0x40] sm:$0xf] }
  0x33   : > { %v445_v7 = vsel %vm3903_vm6, %v440_v58, %v444_v42  ;;  %v464_v9 = vrot.slane %v463_v60, 4  ;;  %v1681_v15 = vrot.slane %v1679_v63, 4  ;;  %v473_v61 = vor.u32 %v472_v3, %v468_v62  ;;  %v3065_v51 = vld [vmem:[%s3835_s9 + $0x3c] sm:$0xe] }
  0x34   : > { %v455_v22 = vsel %vm3903_vm6, %v450_v2, %v454_v44  ;;  %v3072_v21 = vrot.slane %v3064_v0, 9  ;;  %v1686_v23 = vrot.slane %v3931_v17, 5  ;;  %v1689_v30 = vrot.slane %v3936_v27, 5  ;;  %v4061_v44 = vld [vmem:[%s3835_s9 + $0x2c] sm:$0x1] }
  0x35   : > { %v2944_v1 = vcombine.low %v445_v7, %v455_v22  ;;  %v469_v28 = vsel %vm3903_vm6, %v464_v9, %v468_v62  ;;  %v1683_v29 = vsel %vm3950_vm7, %v1681_v15, %v1682_v8  ;;  %v474_v56 = vrot.slane %v473_v61, 4  ;;  %v4077_v2 = vld [vmem:[%s3835_s9 + $0x44] sm:$0x1] }
  0x36   : > { %v3080_v59 = vcombine.low %v1680_v13, %v1683_v29  ;;  %v1687_v17 = vsel %vm3950_vm7, %v3072_v21, %v1686_v23  ;;  %v1688_v35 = vrot.slane %v1686_v23, 4  ;;  %v481_v36 = vshrl.u32 %v411_v25, 16  ;;  %v3036_v13 = vld [vmem:[%s3835_s9 + $0x4c] sm:$0xf]  ;;  %v3037_v21 = vld [vmem:[%s3835_s9 + $0x50] sm:$0x1] }
  0x37   : > { %3339 = vmatprep.mubr.msk.bf16.mxu1 %vm263_vm1, %v2944_v1  ;;  %v484_v37 = vshll.u32 %v411_v25, 16  ;;  %v490_v39 = vshll.u32 %v4032_v26, 16  ;;  %v494_v27 = vshrl.u32 %v4032_v26, 16  ;;  %v479_v40 = vsel %vm3903_vm6, %v474_v56, %v478_v5  ;;  %v3066_v29 = vld [vmem:[%s3835_s9 + $0x48] sm:$0xe] }
  0x38   : > { %3412 = vmatmul.mubr.msk.bf16.vlgmr.msra.gmra.mrb[0].mxu0 %vm263_vm1, %v3079_v32  ;;  %v1690_v41 = vsel %vm3950_vm7, %v1688_v35, %v1689_v30  ;;  %v500_v42 = vshll.u32 %v4040_v38, 16  ;;  %v505_v45 = vshrl.u32 %v414_v33, 16  ;;  %v2945_v46 = vcombine.low %v469_v28, %v479_v40  ;;  %v417_v30 = vld [vmem:[%s3835_s9 + $0x30] sm:$0xf] }
  0x39   : > { %3428 = vmatpush3.bf16.msra.mxu0 %v3855_v14  ;;  %3415 = vmatprep.mubr.msk.bf16.mxu0 %vm263_vm1, %v3080_v59  ;;  %v3081_v6 = vcombine.low %v1687_v17, %v1690_v41  ;;  %v483_v49 = vrot.slane %v481_v36, 4  ;;  %v486_v32 = vrot.slane %v484_v37, 5  ;;  %v492_v53 = vrot.slane %v490_v39, 5  ;;  %v4095_v17 = vld [vmem:[%s3835_s9 + $0x34] sm:$0xf] }
  0x3a   : > { %v496_v54 = vrot.slane %v494_v27, 4  ;;  %v502_v55 = vrot.slane %v500_v42, 5  ;;  %v507_v57 = vrot.slane %v505_v45, 4  ;;  %3635 = vmatprep.subr.msk.bf16.mxu0 %vm288_vm0, %v3840_v10  ;;  %3340 = vmatmul.mubr.msk.bf16.vlgmr.msra.gmra.mrb[0].mxu1 %vm263_vm1, %v2945_v46  ;;  %v508_v58 = vshll.u32 %v414_v33, 16  ;;  %v4100_v27 = vld [vmem:[%s3835_s9 + $0x38] sm:$0x1] }
  0x3b   : > { %v487_v14 = vor.u32 %v486_v32, %v483_v49  ;;  %v514_v60 = vshll.u32 %v4058_v43, 16  ;;  %v518_v62 = vshrl.u32 %v4058_v43, 16  ;;  %3356 = vmatpush3.bf16.msra.mxu1 %v3859_v16  ;;  %v524_v0 = vshll.u32 %v4061_v44, 16  ;;  %v420_v45 = vld [vmem:[%s3835_s9 + $0x3c] sm:$0xf] }
  0x3c   : > { %v497_v63 = vor.u32 %v496_v54, %v492_v53  ;;  %v3073_v3 = vrot.slane %v3065_v51, 9  ;;  %v1693_v10 = vrot.slane %v4066_v47, 5  ;;  %v510_v8 = vrot.slane %v508_v58, 5  ;;  %3630 = vmatprep.subr.msk.bf16.mxu1 %vm288_vm0, %v3845_v11 }
  0x3d   : > { %v488_v5 = vrot.slane %v487_v14, 4  ;;  %v516_v7 = vrot.slane %v514_v60, 5  ;;  %v520_v9 = vrot.slane %v518_v62, 4  ;;  %v526_v16 = vrot.slane %v524_v0, 5  ;;  %v3067_v0 = vld [vmem:[%s3835_s9 + $0x54] sm:$0xe] }
  0x3e   : > { %v498_v15 = vrot.slane %v497_v63, 4  ;;  %v1694_v22 = vsel %vm3950_vm7, %v3073_v3, %v1693_v10  ;;  %v1695_v61 = vrot.slane %v1693_v10, 4  ;;  %v511_v25 = vor.u32 %v510_v8, %v507_v57  ;;  %v4116_v57 = vld [vmem:[%s3835_s9 + $0x40] sm:$0xf]  ;;  %v4122_v63 = vld [vmem:[%s3835_s9 + $0x44] sm:$0x1] }
  0x3f   : > { %v493_v23 = vsel %vm3903_vm6, %v488_v5, %v492_v53  ;;  %v521_v1 = vor.u32 %v520_v9, %v516_v7  ;;  %v1696_v28 = vrot.slane %v4077_v2, 5  ;;  %v1403_v33 = vshll.u32 %v3036_v13, 16 }
  0x40   : > { %3416 = vmatmul.mubr.msk.bf16.gmra.mrb[4].mxu0 %vm263_vm1, %v3081_v6  ;;  %v503_v11 = vsel %vm3903_vm6, %v498_v15, %v502_v55  ;;  %v1407_v56 = vshrl.u32 %v3036_v13, 16  ;;  %v1413_v59 = vshll.u32 %v3037_v21, 16  ;;  %v512_v36 = vrot.slane %v511_v25, 4 }
  0x41   : > { %v2946_v35 = vcombine.low %v493_v23, %v503_v11  ;;  %v522_v37 = vrot.slane %v521_v1, 4  ;;  %v1697_v39 = vsel %vm3950_vm7, %v1695_v61, %v1696_v28  ;;  %v4102_v41 = vrot.slane %v1403_v33, 5  ;;  %v4141_v11 = vld [vmem:[%s3835_s9 + $0x64] sm:$0xf] }
  0x42   : > { %v3082_v40 = vcombine.low %v1694_v22, %v1697_v39  ;;  %v4104_v42 = vrot.slane %v1407_v56, 4  ;;  %v517_v46 = vsel %vm3903_vm6, %v512_v36, %v516_v7  ;;  %v3074_v49 = vrot.slane %v3066_v29, 9  ;;  %v4131_v7 = vld [vmem:[%s3835_s9 + $0x58] sm:$0xf]  ;;  %v4136_v22 = vld [vmem:[%s3835_s9 + $0x5c] sm:$0x1] }
  0x43   : > { %3343 = vmatprep.mubr.msk.bf16.mxu1 %vm263_vm1, %v2946_v35  ;;  %v527_v6 = vsel %vm3903_vm6, %v522_v37, %v526_v16  ;;  %v1700_v32 = vrot.slane %v3036_v13, 5  ;;  %v4113_v53 = vrot.slane %v1413_v59, 5  ;;  %v1703_v54 = vrot.slane %v3037_v21, 5  ;;  %v4146_v36 = vld [vmem:[%s3835_s9 + $0x68] sm:$0x1] }
  0x44   : > { %v2947_v51 = vcombine.low %v517_v46, %v527_v6  ;;  %3419 = vmatprep.mubr.msk.bf16.mxu0 %vm263_vm1, %v3082_v40  ;;  %v529_v55 = vshrl.u32 %v417_v30, 16  ;;  %v532_v60 = vshll.u32 %v417_v30, 16  ;;  %v538_v62 = vshll.u32 %v4095_v17, 16  ;;  %v3068_v37 = vld [vmem:[%s3835_s9 + $0x60] sm:$0xe] }
  0x45   : > { %v1701_v14 = vsel %vm3950_vm7, %v3074_v49, %v1700_v32  ;;  %v1702_v58 = vrot.slane %v1700_v32, 4  ;;  %v1410_v3 = vor.u32 %v4104_v42, %v4102_v41  ;;  %v542_v5 = vshrl.u32 %v4095_v17, 16 }
  0x46   : > { %3344 = vmatmul.mubr.msk.bf16.gmra.mrb[4].mxu1 %vm263_vm1, %v2947_v51  ;;  %v531_v10 = vrot.slane %v529_v55, 4  ;;  %v548_v8 = vshll.u32 %v4100_v27, 16  ;;  %v534_v13 = vrot.slane %v532_v60, 5  ;;  %v540_v15 = vrot.slane %v538_v62, 5  ;;  %v4153_v55 = vld [vmem:[%s3835_s9 + $0x4c] sm:$0xf] }
  0x47   : > { %v1704_v9 = vsel %vm3950_vm7, %v1702_v58, %v1703_v54  ;;  %v553_v16 = vshrl.u32 %v420_v45, 16  ;;  %v544_v21 = vrot.slane %v542_v5, 4  ;;  %v556_v25 = vshll.u32 %v420_v45, 16  ;;  %v423_v54 = vld [vmem:[%s3835_s9 + $0x48] sm:$0xf] }
  0x48   : > { %v3083_v61 = vcombine.low %v1701_v14, %v1704_v9  ;;  %v550_v23 = vrot.slane %v548_v8, 5  ;;  %v535_v1 = vor.u32 %v534_v13, %v531_v10  ;;  %v562_v29 = vshll.u32 %v4116_v57, 16  ;;  %v4163_v9 = vld [vmem:[%s3835_s9 + $0x50] sm:$0x1] }
  0x49   : > { %v555_v28 = vrot.slane %v553_v16, 4  ;;  %v566_v30 = vshrl.u32 %v4116_v57, 16  ;;  %v545_v33 = vor.u32 %v544_v21, %v540_v15  ;;  %v558_v56 = vrot.slane %v556_v25, 5  ;;  %v426_v21 = vld [vmem:[%s3835_s9 + $0x54] sm:$0xf] }
  0x4a   : > { %3420 = vmatmul.mubr.msk.bf16.gmra.mrb[8].mxu0 %vm263_vm1, %v3083_v61  ;;  %v572_v59 = vshll.u32 %v4122_v63, 16  ;;  %v3075_v35 = vrot.slane %v3067_v0, 9  ;;  %v536_v39 = vrot.slane %v535_v1, 4  ;;  %v564_v40 = vrot.slane %v562_v29, 5 }
  0x4b   : > { %v568_v45 = vrot.slane %v566_v30, 4  ;;  %v1707_v46 = vrot.slane %v4131_v7, 5  ;;  %v546_v6 = vrot.slane %v545_v33, 4  ;;  %v559_v49 = vor.u32 %v558_v56, %v555_v28 }
  0x4c   : > { %v574_v32 = vrot.slane %v572_v59, 5  ;;  %v1710_v51 = vrot.slane %v4136_v22, 5  ;;  %v541_v14 = vsel %vm3903_vm6, %v536_v39, %v540_v15  ;;  %v3076_v5 = vrot.slane %v3068_v37, 9  ;;  %v3686_v59 = vld [vmem:[%s3835_s9 + $0x18] sm:$0xff]  }
  0x4d   : > { %v569_v58 = vor.u32 %v568_v45, %v564_v40  ;;  %v1708_v60 = vsel %vm3950_vm7, %v3075_v35, %v1707_v46  ;;  %v1709_v62 = vrot.slane %v1707_v46, 4  ;;  %v551_v0 = vsel %vm3903_vm6, %v546_v6, %v550_v23  ;;  %v4184_v45 = vld [vmem:[%s3835_s9 + $0x58] sm:$0xf]  ;;  %v4187_v46 = vld [vmem:[%s3835_s9 + $0x5c] sm:$0x1] }
  0x4e   : > { %v560_v10 = vrot.slane %v559_v49, 4  ;;  %v1714_v8 = vrot.slane %v4141_v11, 5  ;;  %v2948_v13 = vcombine.low %v541_v14, %v551_v0  ;;  %v1717_v61 = vrot.slane %v4146_v36, 5 }
  0x4f   : > { %v570_v16 = vrot.slane %v569_v58, 4  ;;  %v1711_v15 = vsel %vm3950_vm7, %v1709_v62, %v1710_v51  ;;  %v577_v30 = vshrl.u32 %v423_v54, 16  ;;  %v580_v33 = vshll.u32 %v423_v54, 16  ;;  %v790_v54 = vld [vmem:[%s3835_s9] sm:$0xe] }
  0x50   : > { %v565_v25 = vsel %vm3903_vm6, %v560_v10, %v564_v40  ;;  %v3084_v23 = vcombine.low %v1708_v60, %v1711_v15  ;;  %v1715_v1 = vsel %vm3950_vm7, %v3076_v5, %v1714_v8  ;;  %v1716_v28 = vrot.slane %v1714_v8, 4  ;;  %3347 = vmatprep.mubr.msk.bf16.mxu1 %vm263_vm1, %v2948_v13 }
  0x51   : > { %v575_v29 = vsel %vm3903_vm6, %v570_v16, %v574_v32  ;;  %v586_v56 = vshll.u32 %v4153_v55, 16  ;;  %v590_v39 = vshrl.u32 %v4153_v55, 16  ;;  %v596_v40 = vshll.u32 %v4163_v9, 16 }
  0x52   : > { %v2949_v35 = vcombine.low %v565_v25, %v575_v29  ;;  %3423 = vmatprep.mubr.msk.bf16.mxu0 %vm263_vm1, %v3084_v23  ;;  %v1718_v37 = vsel %vm3950_vm7, %v1716_v28, %v1717_v61  ;;  %v579_v49 = vrot.slane %v577_v30, 4  ;;  %v582_v32 = vrot.slane %v580_v33, 5  ;;  %v791_v25 = vld [vmem:[%s3835_s9 + $0xc] sm:$0xe]  ;;  %v3687_v29 = vld [vmem:[%s3835_s9 + $0x24] sm:$0xff]  }
  0x53   : > { %v3085_v6 = vcombine.low %v1715_v1, %v1718_v37  ;;  %v588_v51 = vrot.slane %v586_v56, 5  ;;  %v592_v14 = vrot.slane %v590_v39, 4  ;;  %v598_v58 = vrot.slane %v596_v40, 5  ;;  %v3688_v37 = vld [vmem:[%s3835_s9 + $0x30] sm:$0xff]   ;;  %v792_v39 = vld [vmem:[%s3835_s9 + $0x18] sm:$0xe] }
  0x54   : > { %3348 = vmatmul.mubr.msk.bf16.gmra.mrb[8].mxu1 %vm263_vm1, %v2949_v35  ;;  %v601_v60 = vshrl.u32 %v426_v21, 16  ;;  %v604_v62 = vshll.u32 %v426_v21, 16  ;;  %v583_v0 = vor.u32 %v582_v32, %v579_v49  ;;  %v610_v10 = vshll.u32 %v4184_v45, 16 }
  0x55   : > { %3424 = vmatmul.mubr.msk.bf16.gmra.mrb[12].mxu0 %vm263_vm1, %v3085_v6  ;;  %v614_v5 = vshrl.u32 %v4184_v45, 16  ;;  %v620_v8 = vshll.u32 %v4187_v46, 16  ;;  %v593_v13 = vor.u32 %v592_v14, %v588_v51  ;;  %v2960_v61 = vrot.slane %v790_v54, 9 }
  0x56   : > { %v603_v16 = vrot.slane %v601_v60, 4  ;;  %v606_v15 = vrot.slane %v604_v62, 5  ;;  %3429 = vmatprep.mubr.msk.bf16.mxu0 %vm263_vm1, %v3686_v59  ;;  %v584_v21 = vrot.slane %v583_v0, 4  ;;  %v612_v23 = vrot.slane %v610_v10, 5  ;;  %v793_v0 = vld [vmem:[%s3835_s9 + $0x24] sm:$0xe] }
  0x57   : > { %v616_v1 = vrot.slane %v614_v5, 4  ;;  %v622_v28 = vrot.slane %v620_v8, 5  ;;  %v594_v30 = vrot.slane %v593_v13, 4  ;;  %v827_v56 = vrot.slane %v3978_v24, 5 }
  0x58   : > { %v607_v33 = vor.u32 %v606_v15, %v603_v16  ;;  %v830_v35 = vrot.slane %v3981_v31, 5  ;;  %v589_v40 = vsel %vm3903_vm6, %v584_v21, %v588_v51  ;;  %v2961_v6 = vrot.slane %v791_v25, 9  ;;  %v795_v25 = vld [vmem:[%s3835_s9 + $0x3c] sm:$0xe] }
  0x59   : > { %v617_v59 = vor.u32 %v616_v1, %v612_v23  ;;  %v834_v49 = vrot.slane %v4002_v52, 5  ;;  %v599_v32 = vsel %vm3903_vm6, %v594_v30, %v598_v58  ;;  %v828_v14 = vsel %vm3950_vm7, %v2960_v61, %v827_v56  ;;  %v794_v61 = vld [vmem:[%s3835_s9 + $0x30] sm:$0xe] }
  0x5a   : > { %v608_v54 = vrot.slane %v607_v33, 4  ;;  %v829_v24 = vrot.slane %v827_v56, 4  ;;  %v2950_v60 = vcombine.low %v589_v40, %v599_v32  ;;  %v837_v10 = vrot.slane %v4009_v34, 5  ;;  %v3689_v56 = vld [vmem:[%s3835_s9 + $0x3c] sm:$0xff]   ;;  %v797_v32 = vld [vmem:[%s3835_s9 + $0x54] sm:$0xe] }
  0x5b   : > { %v618_v31 = vrot.slane %v617_v59, 4  ;;  %v4211_v62 = vsel %vm3950_vm7, %v2961_v6, %v834_v49  ;;  %v836_v51 = vrot.slane %v834_v49, 4  ;;  %v2962_v5 = vrot.slane %v792_v39, 9  ;;  %v796_v39 = vld [vmem:[%s3835_s9 + $0x48] sm:$0xe] }
  0x5c   : > { %v613_v52 = vsel %vm3903_vm6, %v608_v54, %v612_v23  ;;  %v831_v58 = vsel %vm3950_vm7, %v829_v24, %v830_v35  ;;  %3351 = vmatprep.mubr.msk.bf16.mxu1 %vm263_vm1, %v2950_v60  ;;  %v841_v16 = vrot.slane %v4032_v26, 5  ;;  %v844_v15 = vrot.slane %v4040_v38, 5  ;;  %v3129_v54 = vld [vmem:[%s3835_s9 + $0x18] sm:$0xf]  ;;  %v4270_v60 = vld [vmem:[%s3835_s9 + $0x1c] sm:$0xf] }
  0x5d   : > { %v623_v8 = vsel %vm3903_vm6, %v618_v31, %v622_v28  ;;  %3430 = vmatmul.mubr.msk.bf16.vlgmr.msra.gmra.mrb[0].mxu0 %vm263_vm1, %v3687_v29  ;;  %v2969_v13 = vcombine.low %v828_v14, %v831_v58  ;;  %v838_v34 = vsel %vm3950_vm7, %v836_v51, %v837_v10  ;;  %v2963_v23 = vrot.slane %v793_v0, 9  ;;  %v4273_v31 = vld [vmem:[%s3835_s9 + $0x20] sm:$0x1] }
  0x5e   : > { %v2951_v21 = vcombine.low %v613_v52, %v623_v8  ;;  %3446 = vmatpush3.bf16.msra.mxu0 %v3865_v18  ;;  %3433 = vmatprep.mubr.msk.bf16.mxu0 %vm263_vm1, %v3688_v37  ;;  %v848_v1 = vrot.slane %v4058_v43, 5  ;;  %v2970_v28 = vcombine.low %v4211_v62, %v838_v34  ;;  %v842_v26 = vsel %vm3950_vm7, %v2962_v5, %v841_v16 }
  0x5f   : > { %v843_v38 = vrot.slane %v841_v16, 4  ;;  %v851_v29 = vrot.slane %v4061_v44, 5  ;;  %3636 = vmatprep.subr.msk.bf16.mxu0 %vm288_vm0, %v3850_v12  ;;  %v2964_v30 = vrot.slane %v794_v61, 9  ;;  %v855_v33 = vrot.slane %v4095_v17, 5  ;;  %v3690_v17 = vld [vmem:[%s3835_s9 + $0x48] sm:$0xff]  }
  0x60   : > { %3352 = vmatmul.mubr.msk.bf16.gmra.mrb[12].mxu1 %vm263_vm1, %v2951_v21  ;;  %v4241_v18 = vsel %vm3950_vm7, %v2963_v23, %v848_v1  ;;  %v850_v43 = vrot.slane %v848_v1, 4  ;;  %v858_v12 = vrot.slane %v4100_v27, 5  ;;  %v2965_v35 = vrot.slane %v795_v25, 9  ;;  %v3132_v25 = vld [vmem:[%s3835_s9 + $0x24] sm:$0xf]  ;;  %v3691_v21 = vld [vmem:[%s3835_s9 + $0x54] sm:$0xff]  }
  0x61   : > { %3357 = vmatprep.mubr.msk.bf16.mxu1 %vm263_vm1, %v2969_v13  ;;  %v845_v44 = vsel %vm3950_vm7, %v843_v38, %v844_v15  ;;  %v862_v37 = vrot.slane %v4116_v57, 5  ;;  %v4258_v6 = vsel %vm3950_vm7, %v2964_v30, %v855_v33  ;;  %v857_v49 = vrot.slane %v855_v33, 4  ;;  %v4323_v30 = vld [vmem:[%s3835_s9 + $0x2c] sm:$0x1]  ;;  %v3135_v33 = vld [vmem:[%s3835_s9 + $0x30] sm:$0xf] }
  0x62   : > { %v2971_v40 = vcombine.low %v842_v26, %v845_v44  ;;  %v4253_v59 = vsel %vm3950_vm7, %v850_v43, %v851_v29  ;;  %v865_v24 = vrot.slane %v4122_v63, 5  ;;  %v2966_v51 = vrot.slane %v796_v39, 9  ;;  %v4312_v26 = vld [vmem:[%s3835_s9 + $0x28] sm:$0xf] }
  0x63   : > { %v2972_v27 = vcombine.low %v4241_v18, %v4253_v59  ;;  %v4266_v57 = vsel %vm3950_vm7, %v2965_v35, %v862_v37  ;;  %v864_v14 = vrot.slane %v862_v37, 4  ;;  %v4277_v62 = vsel %vm3950_vm7, %v857_v49, %v858_v12  ;;  %v4330_v37 = vld [vmem:[%s3835_s9 + $0x34] sm:$0xf]  ;;  %v3702_v39 = vld [vmem:[%s4664_s1 + $0x8] sm:$0x3]  ;;  %v3693_v18 = vld [vmem:[%s3835_s9 + $0x6c] sm:$0xff]  }
  0x64   : > { %v869_v0 = vrot.slane %v4153_v55, 5  ;;  %v872_v52 = vrot.slane %v4163_v9, 5  ;;  %v2973_v63 = vcombine.low %v4258_v6, %v4277_v62  ;;  %v2967_v10 = vrot.slane %v797_v32, 9 }
  0x65   : > { %3434 = vmatmul.mubr.msk.bf16.gmra.mrb[4].mxu0 %vm263_vm1, %v3689_v56  ;;  %v4286_v58 = vsel %vm3950_vm7, %v864_v14, %v865_v24  ;;  %v876_v5 = vrot.slane %v4184_v45, 5  ;;  %v879_v13 = vrot.slane %v4187_v46, 5  ;;  %v2112_v61 = vshrl.u32 %v3129_v54, 16  ;;  %v3692_v56 = vld [vmem:[%s3835_s9 + $0x60] sm:$0xff]  }
  0x66   : > { %3437 = vmatprep.mubr.msk.bf16.mxu0 %vm263_vm1, %v3690_v17  ;;  %v2974_v55 = vcombine.low %v4266_v57, %v4286_v58  ;;  %v4294_v9 = vsel %vm3950_vm7, %v2966_v51, %v869_v0  ;;  %v871_v8 = vrot.slane %v869_v0, 4  ;;  %v2115_v45 = vshll.u32 %v3129_v54, 16  ;;  %v4338_v54 = vld [vmem:[%s3835_s9 + $0x38] sm:$0x1] }
  0x67   : > { %v4299_v16 = vsel %vm3950_vm7, %v2967_v10, %v876_v5  ;;  %v878_v15 = vrot.slane %v876_v5, 4  ;;  %v2121_v46 = vshll.u32 %v4270_v60, 16  ;;  %v2125_v23 = vshrl.u32 %v4270_v60, 16 }
  0x68   : > { %3358 = vmatmul.mubr.msk.bf16.vlgmr.msra.gmra.mrb[0].mxu1 %vm263_vm1, %v2970_v28  ;;  %v4306_v34 = vsel %vm3950_vm7, %v871_v8, %v872_v52  ;;  %v2131_v1 = vshll.u32 %v4273_v31, 16  ;;  %v2114_v29 = vrot.slane %v2112_v61, 4  ;;  %v2117_v43 = vrot.slane %v2115_v45, 5 }
  0x69   : > { %3361 = vmatprep.mubr.msk.bf16.mxu1 %vm263_vm1, %v2971_v40  ;;  %3374 = vmatpush3.bf16.msra.mxu1 %v3870_v19  ;;  %v2975_v28 = vcombine.low %v4294_v9, %v4306_v34  ;;  %v4320_v38 = vsel %vm3950_vm7, %v878_v15, %v879_v13  ;;  %v2123_v12 = vrot.slane %v2121_v46, 5  ;;  %v2127_v35 = vrot.slane %v2125_v23, 4 }
  0x6a   : > { %v2976_v44 = vcombine.low %v4299_v16, %v4320_v38  ;;  %v2133_v19 = vrot.slane %v2131_v1, 5  ;;  %3632 = vmatprep.subr.msk.bf16.mxu1 %vm288_vm0, %v3702_v39  ;;  %v2118_v40 = vor.u32 %v2117_v43, %v2114_v29  ;;  %v2136_v17 = vshrl.u32 %v3132_v25, 16 }
  0x6b   : > { %v2139_v49 = vshll.u32 %v3132_v25, 16  ;;  %v2145_v32 = vshll.u32 %v4312_v26, 16  ;;  %v2128_v14 = vor.u32 %v2127_v35, %v2123_v12  ;;  %v2149_v24 = vshrl.u32 %v4312_v26, 16 }
  0x6c   : > { %v2155_v51 = vshll.u32 %v4323_v30, 16  ;;  %v2160_v0 = vshrl.u32 %v3135_v33, 16  ;;  %v2119_v52 = vrot.slane %v2118_v40, 4  ;;  %v2138_v10 = vrot.slane %v2136_v17, 4 }
  0x6d   : > { %3438 = vmatmul.mubr.msk.bf16.gmra.mrb[8].mxu0 %vm263_vm1, %v3691_v21  ;;  %v2141_v5 = vrot.slane %v2139_v49, 5  ;;  %v2147_v8 = vrot.slane %v2145_v32, 5  ;;  %v2129_v13 = vrot.slane %v2128_v14, 4  ;;  %v2151_v15 = vrot.slane %v2149_v24, 4  ;;  %v3138_v21 = vld [vmem:[%s3835_s9 + $0x3c] sm:$0xf] }
  0x6e   : > { %3441 = vmatprep.mubr.msk.bf16.mxu0 %vm263_vm1, %v3692_v56  ;;  %v2157_v61 = vrot.slane %v2155_v51, 5  ;;  %v2162_v45 = vrot.slane %v2160_v0, 4  ;;  %v2124_v25 = vsel %vm3903_vm6, %v2119_v52, %v2123_v12  ;;  %v2163_v23 = vshll.u32 %v3135_v33, 16  ;;  %v4357_v12 = vld [vmem:[%s3835_s9 + $0x40] sm:$0xf] }
  0x6f   : > { %v2142_v46 = vor.u32 %v2141_v5, %v2138_v10  ;;  %v2169_v1 = vshll.u32 %v4330_v37, 16  ;;  %v2134_v29 = vsel %vm3903_vm6, %v2129_v13, %v2133_v19  ;;  %v2152_v43 = vor.u32 %v2151_v15, %v2147_v8  ;;  %v4367_v24 = vld [vmem:[%s3835_s9 + $0x44] sm:$0x1]  ;;  %v4375_v5 = vld [vmem:[%s3835_s9 + $0x4c] sm:$0xf] }
  0x70   : > { %3362 = vmatmul.mubr.msk.bf16.gmra.mrb[4].mxu1 %vm263_vm1, %v2972_v27  ;;  %v2173_v56 = vshrl.u32 %v4330_v37, 16  ;;  %v2179_v35 = vshll.u32 %v4338_v54, 16  ;;  %v3154_v59 = vcombine.low %v2124_v25, %v2134_v29  ;;  %v2165_v33 = vrot.slane %v2163_v23, 5  ;;  %v4383_v29 = vld [vmem:[%s3835_s9 + $0x50] sm:$0x1] }
  0x71   : > { %3365 = vmatprep.mubr.msk.bf16.mxu1 %vm263_vm1, %v2973_v63  ;;  %v2143_v27 = vrot.slane %v2142_v46, 4  ;;  %v2171_v19 = vrot.slane %v2169_v1, 5  ;;  %v2153_v39 = vrot.slane %v2152_v43, 4  ;;  %v2184_v49 = vshrl.u32 %v3138_v21, 16  ;;  %v3141_v63 = vld [vmem:[%s3835_s9 + $0x48] sm:$0xf] }
  0x72   : > { %v2175_v40 = vrot.slane %v2173_v56, 4  ;;  %v2181_v17 = vrot.slane %v2179_v35, 5  ;;  %v2166_v14 = vor.u32 %v2165_v33, %v2162_v45  ;;  %v2187_v6 = vshll.u32 %v3138_v21, 16  ;;  %v3144_v35 = vld [vmem:[%s3835_s9 + $0x54] sm:$0xf] }
  0x73   : > { %v2148_v32 = vsel %vm3903_vm6, %v2143_v27, %v2147_v8  ;;  %v2193_v62 = vshll.u32 %v4357_v12, 16  ;;  %v2158_v51 = vsel %vm3903_vm6, %v2153_v39, %v2157_v61  ;;  %v2186_v52 = vrot.slane %v2184_v49, 4 }
  0x74   : > { %v2176_v0 = vor.u32 %v2175_v40, %v2171_v19  ;;  %v2197_v10 = vshrl.u32 %v4357_v12, 16  ;;  %v3155_v8 = vcombine.low %v2148_v32, %v2158_v51  ;;  %v2167_v13 = vrot.slane %v2166_v14, 4 }
  0x75   : > { %3442 = vmatmul.mubr.msk.bf16.gmra.mrb[12].mxu0 %vm263_vm1, %v3693_v18  ;;  %v2189_v15 = vrot.slane %v2187_v6, 5  ;;  %v2195_v45 = vrot.slane %v2193_v62, 5  ;;  %v2203_v61 = vshll.u32 %v4367_v24, 16  ;;  %v2208_v23 = vshrl.u32 %v3141_v63, 16  ;;  %v4405_v62 = vld [vmem:[%s3835_s9 + $0x5c] sm:$0x1] }
  0x76   : > { %3447 = vmatprep.mubr.msk.bf16.mxu0 %vm263_vm1, %v3154_v59  ;;  %v2177_v25 = vrot.slane %v2176_v0, 4  ;;  %v2199_v46 = vrot.slane %v2197_v10, 4  ;;  %v2172_v1 = vsel %vm3903_vm6, %v2167_v13, %v2171_v19  ;;  %v2211_v43 = vshll.u32 %v3141_v63, 16  ;;  %v4394_v19 = vld [vmem:[%s3835_s9 + $0x58] sm:$0xf]  ;;  %v3694_v13 = vld [vmem:[%s3835_s9 + $0xc] sm:$0xff]  }
  0x77   : > { %v2190_v21 = vor.u32 %v2189_v15, %v2186_v52  ;;  %v2217_v56 = vshll.u32 %v4375_v5, 16  ;;  %v2205_v27 = vrot.slane %v2203_v61, 5  ;;  %v2210_v33 = vrot.slane %v2208_v23, 4  ;;  %v4412_v10 = vld [vmem:[%s3835_s9 + $0x64] sm:$0xf] }
  0x78   : > { %3366 = vmatmul.mubr.msk.bf16.gmra.mrb[8].mxu1 %vm263_vm1, %v2974_v55  ;;  %v2182_v18 = vsel %vm3903_vm6, %v2177_v25, %v2181_v17  ;;  %v2200_v59 = vor.u32 %v2199_v46, %v2195_v45  ;;  %v2213_v57 = vrot.slane %v2211_v43, 5  ;;  %v2221_v17 = vshrl.u32 %v4375_v5, 16 }
  0x79   : > { %3369 = vmatprep.mubr.msk.bf16.mxu1 %vm263_vm1, %v2975_v28  ;;  %v3156_v39 = vcombine.low %v2172_v1, %v2182_v18  ;;  %v2191_v40 = vrot.slane %v2190_v21, 4  ;;  %v2219_v58 = vrot.slane %v2217_v56, 5  ;;  %v2227_v49 = vshll.u32 %v4383_v29, 16  ;;  %v3147_v28 = vld [vmem:[%s3835_s9 + $0x60] sm:$0xf] }
  0x7a   : > { %v2201_v55 = vrot.slane %v2200_v59, 4  ;;  %v2232_v32 = vshrl.u32 %v3144_v35, 16  ;;  %v2214_v6 = vor.u32 %v2213_v57, %v2210_v33  ;;  %v2235_v9 = vshll.u32 %v3144_v35, 16  ;;  %v4423_v56 = vld [vmem:[%s3835_s9 + $0x68] sm:$0x1] }
  0x7b   : > { %v2196_v14 = vsel %vm3903_vm6, %v2191_v40, %v2195_v45  ;;  %v2241_v34 = vshll.u32 %v4394_v19, 16  ;;  %v2223_v51 = vrot.slane %v2221_v17, 4  ;;  %v2229_v0 = vrot.slane %v2227_v49, 5  ;;  %v3150_v59 = vld [vmem:[%s3835_s9 + $0x6c] sm:$0xf] }
  0x7c   : > { %v2206_v63 = vsel %vm3903_vm6, %v2201_v55, %v2205_v27  ;;  %v2234_v52 = vrot.slane %v2232_v32, 4  ;;  %v2215_v45 = vrot.slane %v2214_v6, 4  ;;  %v2237_v25 = vrot.slane %v2235_v9, 5  ;;  %v3695_v32 = vld [vmem:[%s3835_s9 + $0x18] sm:$0xff]  }
  0x7d   : > { %3448 = vmatmul.mubr.msk.bf16.vlgmr.msra.gmra.mrb[0].mxu0 %vm263_vm1, %v3155_v8  ;;  %v3157_v15 = vcombine.low %v2196_v14, %v2206_v63  ;;  %v2243_v46 = vrot.slane %v2241_v34, 5  ;;  %v2224_v61 = vor.u32 %v2223_v51, %v2219_v58  ;;  %v2245_v23 = vshrl.u32 %v4394_v19, 16 }
  0x7e   : > { %3464 = vmatpush3.bf16.msra.mxu0 %v3874_v20  ;;  %3451 = vmatprep.mubr.msk.bf16.mxu0 %vm263_vm1, %v3156_v39  ;;  %v2251_v1 = vshll.u32 %v4405_v62, 16  ;;  %v2256_v21 = vshrl.u32 %v3147_v28, 16  ;;  %v2220_v43 = vsel %vm3903_vm6, %v2215_v45, %v2219_v58  ;;  %v2238_v8 = vor.u32 %v2237_v25, %v2234_v52  ;;  %v3696_v45 = vld [vmem:[%s3835_s9 + $0x24] sm:$0xff]  }
  0x7f   : > { %v2259_v35 = vshll.u32 %v3147_v28, 16  ;;  %v2265_v18 = vshll.u32 %v4412_v10, 16  ;;  %v2225_v20 = vrot.slane %v2224_v61, 4  ;;  %v2247_v27 = vrot.slane %v2245_v23, 4  ;;  %v4443_v28 = vld [vmem:[%s3835_s9 + $0x74] sm:$0x1] }
  0x80   : > { %3370 = vmatmul.mubr.msk.bf16.gmra.mrb[12].mxu1 %vm263_vm1, %v2976_v44  ;;  %v2253_v33 = vrot.slane %v2251_v1, 5  ;;  %v2258_v39 = vrot.slane %v2256_v21, 4  ;;  %v2239_v40 = vrot.slane %v2238_v8, 4  ;;  %v2269_v55 = vshrl.u32 %v4412_v10, 16  ;;  %v4437_v44 = vld [vmem:[%s3835_s9 + $0x70] sm:$0xf] }
  0x81   : > { %3375 = vmatprep.mubr.msk.bf16.mxu1 %vm263_vm1, %v3694_v13  ;;  %v2261_v57 = vrot.slane %v2259_v35, 5  ;;  %v2267_v58 = vrot.slane %v2265_v18, 5  ;;  %v2230_v17 = vsel %vm3903_vm6, %v2225_v20, %v2229_v0  ;;  %v2248_v16 = vor.u32 %v2247_v27, %v2243_v46  ;;  %v3170_v13 = vld [vmem:[%s3835_s9 + $0x18] sm:$0xe]  ;;  %v3171_v8 = vld [vmem:[%s3835_s9 + $0x24] sm:$0xe] }
  0x82   : > { %v2275_v38 = vshll.u32 %v4423_v56, 16  ;;  %v2280_v49 = vshrl.u32 %v3150_v59, 16  ;;  %v3158_v14 = vcombine.low %v2220_v43, %v2230_v17  ;;  %v2244_v6 = vsel %vm3903_vm6, %v2239_v40, %v2243_v46 }
  0x83   : > { %v2262_v9 = vor.u32 %v2261_v57, %v2258_v39  ;;  %v2271_v34 = vrot.slane %v2269_v55, 4  ;;  %v2249_v63 = vrot.slane %v2248_v16, 4  ;;  %v2283_v52 = vshll.u32 %v3150_v59, 16  ;;  %v3032_v55 = vld [vmem:[%s3835_s9 + $0x3c] sm:$0xf] }
  0x84   : > { %v2277_v51 = vrot.slane %v2275_v38, 5  ;;  %v2282_v0 = vrot.slane %v2280_v49, 4  ;;  %v2289_v23 = vshll.u32 %v4437_v44, 16  ;;  %v2293_v1 = vshrl.u32 %v4437_v44, 16 }
  0x85   : > { %3452 = vmatmul.mubr.msk.bf16.gmra.mrb[4].mxu0 %vm263_vm1, %v3157_v15  ;;  %v2263_v25 = vrot.slane %v2262_v9, 4  ;;  %v2272_v61 = vor.u32 %v2271_v34, %v2267_v58  ;;  %v4453_v46 = vrot.slane %v1410_v3, 4  ;;  %v2254_v21 = vsel %vm3903_vm6, %v2249_v63, %v2253_v33  ;;  %v3698_v63 = vld [vmem:[%s3835_s9 + $0x3c] sm:$0xff]  }
  0x86   : > { %3455 = vmatprep.mubr.msk.bf16.mxu0 %vm263_vm1, %v3158_v14  ;;  %v2285_v43 = vrot.slane %v2283_v52, 5  ;;  %v2299_v15 = vshll.u32 %v4443_v28, 16  ;;  %v2291_v59 = vrot.slane %v2289_v23, 5  ;;  %v3178_v20 = vrot.slane %v3170_v13, 9  ;;  %v3035_v13 = vld [vmem:[%s3835_s9 + $0x48] sm:$0xf] }
  0x87   : > { %v2268_v35 = vsel %vm3903_vm6, %v2263_v25, %v2267_v58  ;;  %v2273_v18 = vrot.slane %v2272_v61, 4  ;;  %v3159_v42 = vcombine.low %v2244_v6, %v2254_v21  ;;  %v2295_v27 = vrot.slane %v2293_v1, 4  ;;  %v3697_v6 = vld [vmem:[%s3835_s9 + $0x30] sm:$0xff]  }
  0x88   : > { %3376 = vmatmul.mubr.msk.bf16.vlgmr.msra.gmra.mrb[0].mxu1 %vm263_vm1, %v3695_v32  ;;  %v2286_v3 = vor.u32 %v2285_v43, %v2282_v0  ;;  %v2503_v39 = vrot.slane %v4270_v60, 5  ;;  %v2506_v40 = vrot.slane %v4273_v31, 5  ;;  %v3179_v57 = vrot.slane %v3171_v8, 9  ;;  %v3172_v1 = vld [vmem:[%s3835_s9 + $0x30] sm:$0xe] }
  0x89   : > { %3379 = vmatprep.mubr.msk.bf16.mxu1 %vm263_vm1, %v3696_v45  ;;  %3482 = vmatpush3.bf16.msra.mxu1 %v3810_v4  ;;  %v2278_v33 = vsel %vm3903_vm6, %v2273_v18, %v2277_v51  ;;  %v2510_v58 = vrot.slane %v4312_v26, 5  ;;  %v2296_v38 = vor.u32 %v2295_v27, %v2291_v59  ;;  %v2301_v49 = vrot.slane %v2299_v15, 5 }
  0x8a   : > { %v3160_v17 = vcombine.low %v2268_v35, %v2278_v33  ;;  %v2287_v16 = vrot.slane %v2286_v3, 4  ;;  %v2504_v60 = vsel %vm3950_vm7, %v3178_v20, %v2503_v39  ;;  %v2505_v32 = vrot.slane %v2503_v39, 4  ;;  %v3173_v39 = vld [vmem:[%s3835_s9 + $0x3c] sm:$0xe] }
  0x8b   : > { %v2512_v4 = vrot.slane %v2510_v58, 4  ;;  %v2513_v14 = vrot.slane %v4323_v30, 5  ;;  %v2297_v26 = vrot.slane %v2296_v38, 4  ;;  %v1370_v9 = vshrl.u32 %v3032_v55, 16 }
  0x8c   : > { %v2292_v31 = vsel %vm3903_vm6, %v2287_v16, %v2291_v59  ;;  %v1373_v34 = vshll.u32 %v3032_v55, 16  ;;  %v2507_v51 = vsel %vm3950_vm7, %v2505_v32, %v2506_v40  ;;  %v4483_v0 = vsel %vm3950_vm7, %v3179_v57, %v2510_v58  ;;  %v3038_v58 = vld [vmem:[%s3835_s9 + $0x54] sm:$0xf] }
  0x8d   : > { %3456 = vmatmul.mubr.msk.bf16.gmra.mrb[8].mxu0 %vm263_vm1, %v3159_v42  ;;  %v1379_v30 = vshll.u32 %v4066_v47, 16  ;;  %v1383_v52 = vshrl.u32 %v4066_v47, 16  ;;  %v2302_v45 = vsel %vm3903_vm6, %v2297_v26, %v2301_v49  ;;  %v3187_v25 = vcombine.low %v2504_v60, %v2507_v51  ;;  %v3700_v60 = vld [vmem:[%s3835_s9 + $0x54] sm:$0xff]  }
  0x8e   : > { %3459 = vmatprep.mubr.msk.bf16.mxu0 %vm263_vm1, %v3160_v17  ;;  %v4493_v61 = vsel %vm3950_vm7, %v2512_v4, %v2513_v14  ;;  %v1372_v23 = vrot.slane %v1370_v9, 4  ;;  %v3161_v21 = vcombine.low %v2292_v31, %v2302_v45  ;;  %v1375_v43 = vrot.slane %v1373_v34, 5 }
  0x8f   : > { %v1381_v15 = vrot.slane %v1379_v30, 5  ;;  %v1385_v8 = vrot.slane %v1383_v52, 4  ;;  %v1389_v47 = vshll.u32 %v4077_v2, 16  ;;  %v1394_v35 = vshrl.u32 %v3035_v13, 16 }
  0x90   : > { %3380 = vmatmul.mubr.msk.bf16.gmra.mrb[4].mxu1 %vm263_vm1, %v3697_v6  ;;  %v1397_v18 = vshll.u32 %v3035_v13, 16  ;;  %v1416_v59 = vsel %vm3903_vm6, %v4453_v46, %v4113_v53  ;;  %v1376_v20 = vor.u32 %v1375_v43, %v1372_v23  ;;  %v3180_v3 = vrot.slane %v3172_v1, 9  ;;  %v3699_v53 = vld [vmem:[%s3835_s9 + $0x48] sm:$0xff]   ;;  %v3041_v6 = vld [vmem:[%s3835_s9 + $0x60] sm:$0xf] }
  0x91   : > { %3383 = vmatprep.mubr.msk.bf16.mxu1 %vm263_vm1, %v3698_v63  ;;  %v1386_v42 = vor.u32 %v1385_v8, %v1381_v15  ;;  %v2517_v27 = vrot.slane %v4330_v37, 5  ;;  %v1391_v33 = vrot.slane %v1389_v47, 5  ;;  %v1396_v40 = vrot.slane %v1394_v35, 4  ;;  %v3174_v1 = vld [vmem:[%s3835_s9 + $0x48] sm:$0xe]  ;;  %v3701_v35 = vld [vmem:[%s3835_s9 + $0x60] sm:$0xff]  }
  0x92   : > { %v1399_v2 = vrot.slane %v1397_v18, 5  ;;  %v2520_v57 = vrot.slane %v4338_v54, 5  ;;  %v1377_v55 = vrot.slane %v1376_v20, 4  ;;  %v3188_v46 = vcombine.low %v4483_v0, %v4493_v61 }
  0x93   : > { %v1387_v17 = vrot.slane %v1386_v42, 4  ;;  %v2519_v16 = vrot.slane %v2517_v27, 4  ;;  %v2518_v37 = vsel %vm3950_vm7, %v3180_v3, %v2517_v27  ;;  %v2524_v49 = vrot.slane %v4357_v12, 5 }
  0x94   : > { %v1400_v38 = vor.u32 %v1399_v2, %v1396_v40  ;;  %v1382_v54 = vsel %vm3903_vm6, %v1377_v55, %v1381_v15  ;;  %v3181_v4 = vrot.slane %v3173_v39, 9  ;;  %v1418_v14 = vshrl.u32 %v3038_v58, 16 }
  0x95   : > { %3460 = vmatmul.mubr.msk.bf16.gmra.mrb[12].mxu0 %vm263_vm1, %v3161_v21  ;;  %v1392_v32 = vsel %vm3903_vm6, %v1387_v17, %v1391_v33  ;;  %v2521_v9 = vsel %vm3950_vm7, %v2519_v16, %v2520_v57  ;;  %v2527_v12 = vrot.slane %v4367_v24, 5  ;;  %v2526_v34 = vrot.slane %v2524_v49, 4 }
  0x96   : > { %3465 = vmatprep.mubr.msk.bf16.mxu0 %vm263_vm1, %v3187_v25  ;;  %v3049_v31 = vcombine.low %v1382_v54, %v1392_v32  ;;  %v1401_v26 = vrot.slane %v1400_v38, 4  ;;  %v1420_v63 = vrot.slane %v1418_v14, 4  ;;  %v1421_v51 = vshll.u32 %v3038_v58, 16  ;;  %v3175_v58 = vld [vmem:[%s3835_s9 + $0x54] sm:$0xe] }
  0x97   : > { %v1427_v0 = vshll.u32 %v4131_v7, 16  ;;  %v1431_v52 = vshrl.u32 %v4131_v7, 16  ;;  %v1437_v13 = vshll.u32 %v4136_v22, 16  ;;  %v1442_v45 = vshrl.u32 %v3041_v6, 16 }
  0x98   : > { %3384 = vmatmul.mubr.msk.bf16.gmra.mrb[8].mxu1 %vm263_vm1, %v3699_v53  ;;  %v1406_v30 = vsel %vm3903_vm6, %v1401_v26, %v4102_v41  ;;  %v3189_v25 = vcombine.low %v2518_v37, %v2521_v9  ;;  %v1423_v61 = vrot.slane %v1421_v51, 5  ;;  %v2525_v21 = vsel %vm3950_vm7, %v3181_v4, %v2524_v49  ;;  %v3176_v53 = vld [vmem:[%s3835_s9 + $0x60] sm:$0xe] }
  0x99   : > { %3387 = vmatprep.mubr.msk.bf16.mxu1 %vm263_vm1, %v3700_v60  ;;  %v3050_v24 = vcombine.low %v1406_v30, %v1416_v59  ;;  %v1429_v23 = vrot.slane %v1427_v0, 5  ;;  %v2528_v43 = vsel %vm3950_vm7, %v2526_v34, %v2527_v12  ;;  %v1433_v41 = vrot.slane %v1431_v52, 4 }
  0x9a   : > { %v1439_v15 = vrot.slane %v1437_v13, 5  ;;  %v1424_v7 = vor.u32 %v1423_v61, %v1420_v63  ;;  %v1445_v8 = vshll.u32 %v3041_v6, 16  ;;  %v1451_v22 = vshll.u32 %v4141_v11, 16  ;;  %v3177_v63 = vld [vmem:[%s3835_s9 + $0x6c] sm:$0xe] }
  0x9b   : > { %v1455_v47 = vshrl.u32 %v4141_v11, 16  ;;  %v1434_v18 = vor.u32 %v1433_v41, %v1429_v23  ;;  %v1444_v59 = vrot.slane %v1442_v45, 4  ;;  %v3182_v20 = vrot.slane %v3174_v1, 9 }
  0x9c   : > { %v2531_v42 = vrot.slane %v4375_v5, 5  ;;  %v1425_v3 = vrot.slane %v1424_v7, 4  ;;  %v1447_v27 = vrot.slane %v1445_v8, 5  ;;  %v1453_v39 = vrot.slane %v1451_v22, 5 }
  0x9d   : > { %3466 = vmatmul.mubr.msk.bf16.vlgmr.msra.gmra.mrb[0].mxu0 %vm263_vm1, %v3188_v46  ;;  %v1457_v33 = vrot.slane %v1455_v47, 4  ;;  %v1435_v40 = vrot.slane %v1434_v18, 4  ;;  %v2534_v57 = vrot.slane %v4383_v29, 5  ;;  %v3190_v5 = vcombine.low %v2525_v21, %v2528_v43 }
  0x9e   : > { %3469 = vmatprep.mubr.msk.bf16.mxu0 %vm263_vm1, %v3189_v25  ;;  %v2533_v2 = vrot.slane %v2531_v42, 4  ;;  %v2532_v11 = vsel %vm3950_vm7, %v3182_v20, %v2531_v42  ;;  %v1430_v55 = vsel %vm3903_vm6, %v1425_v3, %v1429_v23  ;;  %v1461_v17 = vshll.u32 %v4146_v36, 16 }
  0x9f   : > { %v2538_v16 = vrot.slane %v4394_v19, 5  ;;  %v1440_v46 = vsel %vm3903_vm6, %v1435_v40, %v1439_v15  ;;  %v1448_v38 = vor.u32 %v1447_v27, %v1444_v59  ;;  %v1458_v37 = vor.u32 %v1457_v33, %v1453_v39 }
  0xa0   : > { %3388 = vmatmul.mubr.msk.bf16.gmra.mrb[12].mxu1 %vm263_vm1, %v3701_v35  ;;  %v2535_v29 = vsel %vm3950_vm7, %v2533_v2, %v2534_v57  ;;  %v3183_v60 = vrot.slane %v3175_v58, 9  ;;  %v2541_v32 = vrot.slane %v4405_v62, 5  ;;  %v3184_v36 = vrot.slane %v3176_v53, 9 }
  0xa1   : > { %3401 = vmatprep.mubr.msk.bf16.mxu1 %vm263_vm1, %v3049_v31  ;;  %v3191_v49 = vcombine.low %v2532_v11, %v2535_v29  ;;  %v2540_v54 = vrot.slane %v2538_v16, 4  ;;  %v2545_v19 = vrot.slane %v4412_v10, 5  ;;  %v2548_v4 = vrot.slane %v4423_v56, 5 }
  0xa2   : > { %v1463_v14 = vrot.slane %v1461_v17, 5  ;;  %v3051_v6 = vcombine.low %v1430_v55, %v1440_v46  ;;  %v1449_v31 = vrot.slane %v1448_v38, 4  ;;  %v1459_v26 = vrot.slane %v1458_v37, 4 }
  0xa3   : > { %v2547_v9 = vrot.slane %v2545_v19, 4  ;;  %v2539_v12 = vsel %vm3950_vm7, %v3183_v60, %v2538_v16  ;;  %v2542_v62 = vsel %vm3950_vm7, %v2540_v54, %v2541_v32  ;;  %v2552_v34 = vrot.slane %v4437_v44, 5 }
  0xa4   : > { %v2546_v10 = vsel %vm3950_vm7, %v3184_v36, %v2545_v19  ;;  %v1454_v51 = vsel %vm3903_vm6, %v1449_v31, %v1453_v39  ;;  %v1464_v0 = vsel %vm3903_vm6, %v1459_v26, %v1463_v14  ;;  %v3192_v30 = vcombine.low %v2539_v12, %v2542_v62 }
  0xa5   : > { %3470 = vmatmul.mubr.msk.bf16.gmra.mrb[4].mxu0 %vm263_vm1, %v3190_v5  ;;  %v2549_v56 = vsel %vm3950_vm7, %v2547_v9, %v2548_v4  ;;  %v3185_v44 = vrot.slane %v3177_v63, 9  ;;  %v2554_v13 = vrot.slane %v2552_v34, 4  ;;  %v2555_v45 = vrot.slane %v4443_v28, 5 }
  0xa6   : > { %3473 = vmatprep.mubr.msk.bf16.mxu0 %vm263_vm1, %v3191_v49  ;;  %v3193_v52 = vcombine.low %v2546_v10, %v2549_v56  ;;  %v3052_v25 = vcombine.low %v1454_v51, %v1464_v0 }
  0xa7   : > { %v2556_v48 = vsel %vm3950_vm7, %v2554_v13, %v2555_v45 }
  0xa8   : > { %3402 = vmatmul.mubr.msk.bf16.vlgmr.msra.gmra.mrb[8].mxu1 %vm263_vm1, %v3050_v24  ;;  %v2553_v24 = vsel %vm3950_vm7, %v3185_v44, %v2552_v34 }
  0xa9   : > { %3405 = vmatprep.mubr.msk.bf16.mxu1 %vm263_vm1, %v3051_v6  ;;  %v3194_v61 = vcombine.low %v2553_v24, %v2556_v48 }
  0xad   : > { %3474 = vmatmul.mubr.msk.bf16.gmra.mrb[8].mxu0 %vm263_vm1, %v3192_v30 }
  0xae   : > { %3477 = vmatprep.mubr.msk.bf16.mxu0 %vm263_vm1, %v3193_v52 }
  0xb0   : > { %3406 = vmatmul.mubr.msk.bf16.gmra.mrb[12].mxu1 %vm263_vm1, %v3052_v25 }
  0xb5   : > { %3478 = vmatmul.mubr.msk.bf16.gmra.mrb[12].mxu0 %vm263_vm1, %v3194_v61 }
 0x15b   : > { %v3377_v23 = vpop.f32.mrb[0].mxu1 }
 0x15c   : > { %v1170_v1 = vpop.f32.mrb[1].mxu1  ;;  %v3483_v8 = vadd.f32 %v3377_v23, %v4593_v50 }
 0x15d   : > { %v3378_v28 = vpop.f32.mrb[2].mxu1  ;;  %v3485_v22 = vadd.f32 %v4593_v50, %v1170_v1 }
 0x15e   : > { %v1173_v21 = vpop.f32.mrb[3].mxu1  ;;  %v3487_v35 = vadd.f32 %v3378_v28, %v4593_v50 }
 0x15f   : > { %v3489_v20 = vadd.f32 %v4593_v50, %v1173_v21 }
 0x163   : > { %v3381_v43 = vpop.f32.mrb[4].mxu1 }
 0x164   : > { %v1186_v41 = vpop.f32.mrb[5].mxu1  ;;  %v3491_v55 = vadd.f32 %v3381_v43, %v4593_v50 }
 0x165   : > { %v3382_v15 = vpop.f32.mrb[6].mxu1  ;;  %v3493_v16 = vadd.f32 %v4593_v50, %v1186_v41 }
 0x166   : > { %v1189_v7 = vpop.f32.mrb[7].mxu1  ;;  %v3495_v38 = vadd.f32 %v3382_v15, %v4593_v50 }
 0x167   : > { %v3497_v49 = vadd.f32 %v4593_v50, %v1189_v7 }
 0x170   : > { %v3467_v47 = vpop.f32.mrb[0].mxu0 }
 0x171   : > { %v3484_v18 = vadd.f32 %v3483_v8, %v3467_v47  ;;  %v2644_v59 = vpop.f32.mrb[1].mxu0 }
 0x172   : > { %v3486_v42 = vadd.f32 %v3485_v22, %v2644_v59  ;;  %v3468_v3 = vpop.f32.mrb[2].mxu0 }
 0x173   : > { %v2725_v27 = vmax.f32 %v3484_v18, 0.0  ;;  %v3488_v39 = vadd.f32 %v3487_v35, %v3468_v3  ;;  %v2647_v33 = vpop.f32.mrb[3].mxu0 }
 0x174   : > { %v2723_v40 = vmax.f32 %v3486_v42, 0.0  ;;  %v3490_v2 = vadd.f32 %v3489_v20, %v2647_v33 }
 0x175   : > { %v3224_v11 = vpack.c.bf16 %v2725_v27, %v2725_v27  ;;  %v2726_v57 = vmax.f32 %v3488_v39, 0.0 }
 0x176   : > { %v3222_v58 = vpack.c.bf16 %v2723_v40, %v2723_v40  ;;  %v2724_v5 = vmax.f32 %v3490_v2, 0.0 }
 0x177   : > { %2806 = vst.msk [vmem:[%s4602_s4 + $0x8] sm:$0xf] %vm2803_vm8, %v3224_v11  ;;  %v3225_v17 = vpack.c.bf16 %v2726_v57, %v2726_v57 }
 0x178   : > { %2804 = vst.msk [vmem:[%s4602_s4] sm:$0xf] %vm2803_vm8, %v3222_v58  ;;  %v3223_v53 = vpack.c.bf16 %v2724_v5, %v2724_v5  ;;  %v3471_v46 = vpop.f32.mrb[4].mxu0 }
 0x179   : > { %2807 = vst.msk [vmem:[%s4602_s4 + $0xc] sm:$0xf] %vm2803_vm8, %v3225_v17  ;;  %v3492_v37 = vadd.f32 %v3491_v55, %v3471_v46  ;;  %v2660_v29 = vpop.f32.mrb[5].mxu0 }
 0x17a   : > { %2805 = vst.msk [vmem:[%s4602_s4 + $0x4] sm:$0xf] %vm2803_vm8, %v3223_v53  ;;  %v3494_v60 = vadd.f32 %v3493_v16, %v2660_v29  ;;  %v3472_v54 = vpop.f32.mrb[6].mxu0 }
 0x17b   : > { %v3403_v32 = vpop.f32.mrb[8].mxu1  ;;  %v2729_v36 = vmax.f32 %v3492_v37, 0.0  ;;  %v3496_v19 = vadd.f32 %v3495_v38, %v3472_v54  ;;  %v2663_v4 = vpop.f32.mrb[7].mxu0 }
 0x17c   : > { %v1584_v14 = vpop.f32.mrb[9].mxu1  ;;  %v2727_v6 = vmax.f32 %v3494_v60, 0.0  ;;  %v3498_v31 = vadd.f32 %v3497_v49, %v2663_v4  ;;  %v3499_v56 = vadd.f32 %v3403_v32, %v4593_v50 }
 0x17d   : > { %v3228_v26 = vpack.c.bf16 %v2729_v36, %v2729_v36  ;;  %v3404_v9 = vpop.f32.mrb[10].mxu1  ;;  %v2730_v12 = vmax.f32 %v3496_v19, 0.0  ;;  %v3501_v51 = vadd.f32 %v4593_v50, %v1584_v14 }
 0x17e   : > { %v3226_v62 = vpack.c.bf16 %v2727_v6, %v2727_v6  ;;  %v1587_v34 = vpop.f32.mrb[11].mxu1  ;;  %v2728_v10 = vmax.f32 %v3498_v31, 0.0  ;;  %v3503_v52 = vadd.f32 %v3404_v9, %v4593_v50 }
 0x17f   : > { %2810 = vst.msk [vmem:[%s4602_s4 + $0x18] sm:$0xf] %vm2803_vm8, %v3228_v26  ;;  %v3229_v63 = vpack.c.bf16 %v2730_v12, %v2730_v12  ;;  %v3505_v45 = vadd.f32 %v4593_v50, %v1587_v34 }
 0x180   : > { %2808 = vst.msk [vmem:[%s4602_s4 + $0x10] sm:$0xf] %vm2803_vm8, %v3226_v62  ;;  %v3227_v0 = vpack.c.bf16 %v2728_v10, %v2728_v10  ;;  %v3475_v30 = vpop.f32.mrb[8].mxu0 }
 0x181   : > { %2811 = vst.msk [vmem:[%s4602_s4 + $0x1c] sm:$0xf] %vm2803_vm8, %v3229_v63  ;;  %v3500_v44 = vadd.f32 %v3499_v56, %v3475_v30  ;;  %v2676_v13 = vpop.f32.mrb[9].mxu0 }
 0x182   : > { %2809 = vst.msk [vmem:[%s4602_s4 + $0x14] sm:$0xf] %vm2803_vm8, %v3227_v0  ;;  %v3502_v25 = vadd.f32 %v3501_v51, %v2676_v13  ;;  %v3476_v24 = vpop.f32.mrb[10].mxu0 }
 0x183   : > { %v3407_v48 = vpop.f32.mrb[12].mxu1  ;;  %v2733_v61 = vmax.f32 %v3500_v44, 0.0  ;;  %v3504_v23 = vadd.f32 %v3503_v52, %v3476_v24  ;;  %v2679_v1 = vpop.f32.mrb[11].mxu0 }
 0x184   : > { %v1600_v28 = vpop.f32.mrb[13].mxu1  ;;  %v2731_v21 = vmax.f32 %v3502_v25, 0.0  ;;  %v3506_v43 = vadd.f32 %v3505_v45, %v2679_v1  ;;  %v3507_v35 = vadd.f32 %v3407_v48, %v4593_v50 }
 0x185   : > { %v3232_v41 = vpack.c.bf16 %v2733_v61, %v2733_v61  ;;  %v3408_v15 = vpop.f32.mrb[14].mxu1  ;;  %v2734_v7 = vmax.f32 %v3504_v23, 0.0  ;;  %v3509_v59 = vadd.f32 %v4593_v50, %v1600_v28 }
 0x186   : > { %v3230_v8 = vpack.c.bf16 %v2731_v21, %v2731_v21  ;;  %v1603_v22 = vpop.f32.mrb[15].mxu1  ;;  %v2732_v47 = vmax.f32 %v3506_v43, 0.0  ;;  %v3511_v3 = vadd.f32 %v3408_v15, %v4593_v50 }
 0x187   : > { %2814 = vst.msk [vmem:[%s4602_s4 + $0x28] sm:$0xf] %vm2803_vm8, %v3232_v41  ;;  %v3233_v18 = vpack.c.bf16 %v2734_v7, %v2734_v7  ;;  %v3513_v33 = vadd.f32 %v4593_v50, %v1603_v22 }
 0x188   : > { %2812 = vst.msk [vmem:[%s4602_s4 + $0x20] sm:$0xf] %vm2803_vm8, %v3230_v8  ;;  %v3231_v20 = vpack.c.bf16 %v2732_v47, %v2732_v47  ;;  %v3479_v42 = vpop.f32.mrb[12].mxu0 }
 0x189   : > { %2815 = vst.msk [vmem:[%s4602_s4 + $0x2c] sm:$0xf] %vm2803_vm8, %v3233_v18  ;;  %v3508_v27 = vadd.f32 %v3507_v35, %v3479_v42  ;;  %v2692_v39 = vpop.f32.mrb[13].mxu0 }
 0x18a   : > { %2813 = vst.msk [vmem:[%s4602_s4 + $0x24] sm:$0xf] %vm2803_vm8, %v3231_v20  ;;  %v3510_v40 = vadd.f32 %v3509_v59, %v2692_v39  ;;  %v3480_v2 = vpop.f32.mrb[14].mxu0 }
 0x18b   : > { %v2737_v11 = vmax.f32 %v3508_v27, 0.0  ;;  %v3512_v57 = vadd.f32 %v3511_v3, %v3480_v2  ;;  %v2695_v58 = vpop.f32.mrb[15].mxu0 }
 0x18c   : > { %v2735_v5 = vmax.f32 %v3510_v40, 0.0  ;;  %v3514_v55 = vadd.f32 %v3513_v33, %v2695_v58 }
 0x18d   : > { %v3236_v17 = vpack.c.bf16 %v2737_v11, %v2737_v11  ;;  %v2738_v16 = vmax.f32 %v3512_v57, 0.0 }
 0x18e   : > { %v3234_v53 = vpack.c.bf16 %v2735_v5, %v2735_v5  ;;  %v2736_v46 = vmax.f32 %v3514_v55, 0.0 }
 0x18f   : > { %2818 = vst.msk [vmem:[%s4602_s4 + $0x38] sm:$0xf] %vm2803_vm8, %v3236_v17  ;;  %v3237_v38 = vpack.c.bf16 %v2738_v16, %v2738_v16 }
 0x190   : > { %2816 = vst.msk [vmem:[%s4602_s4 + $0x30] sm:$0xf] %vm2803_vm8, %v3234_v53  ;;  %v3235_v50 = vpack.c.bf16 %v2736_v46, %v2736_v46 }
 0x191   : > { %2819 = vst.msk [vmem:[%s4602_s4 + $0x3c] sm:$0xf] %vm2803_vm8, %v3237_v38 }
 0x192   : > { %2817 = vst.msk [vmem:[%s4602_s4 + $0x34] sm:$0xf] %vm2803_vm8, %v3235_v50 }
 0x193 PF: > { %s13_s16 = sadd.s32 1, %s3741_s16   ;;  %s4671_s12 = smov %s3733_s14 }
 0x194   : > { %p10_p7 = scmp.ge.s32.totalorder %s13_s16, 6   ;;  %s4672_s13 = smov %s3737_s15 }
 0x195   : > { %s4673_s14 = smov %s4676_s17  ;;  %s4674_s15 = smov %s4680_s18 }
 0x196   :  { %12 = sbr.rel (!%p10_p7) target bundleno = 3 (0x3), region = 73 }

// kernel: vgg_block_forward.3
= control target key start
LH: loop header
LB: loop body
LE: loop exit
PB: predicated region body
PF: predicated region fallthrough
CT: control target
= control target key end

     0   :  { %s3713_s12 = smov 0   ;;  %s3715_s13 = smov 0   ;;  %s4608_s0 = inlined_call_operand.vmem [shape: bf16[2,18,18,8], index: 0, kind: input, shape index: {}]   ;;  %s4609_s1 = inlined_call_operand.vmem [shape: bf16[9,8,8], index: 1, kind: input, shape index: {}]   ;;  %s4610_s2 = inlined_call_operand.vmem [shape: f32[1,8], index: 2, kind: input, shape index: {}]   ;;  %s4611_s3 = inlined_call_operand.vmem [shape: f32[2,8,8,8], index: 3, kind: output, shape index: {}]  }
   0x1   :  { %s3717_s14 = smov 0   ;;  %s3719_s15 = smov 0  }
   0x2   :  { %s3721_s16 = smov 0  }
   0x3 LB: > { %s22_s17 = sadd.s32 1, %s3683_s14  ;;  %s25_s18 = sadd.s32 1, %s3687_s15  ;;  %s3691_s16 = sphi %s3721_s16, %s13_s16   ;;  %s3687_s15 = sphi %s3719_s15, %s4619_s15   ;;  %s3683_s14 = sphi %s3717_s14, %s4618_s14   ;;  %s3679_s13 = sphi %s3715_s13, %s4617_s13   ;;  %s3675_s12 = sphi %s3713_s12, %s4616_s12  }
   0x4   : > { %p23_p0 = scmp.ge.s32.totalorder %s22_s17, 2  ;;  %p2900_p1 = scmp.ge.s32.totalorder %s3691_s16, 1 }
   0x5   : > { %p151_p2 = scmp.lt.s32.totalorder %s3691_s16, 5 }
   0x6   : > { %s4621_s17 = smov (%p23_p0, %s22_s17), 0  ;;  %s4623_s18 = smov (!%p23_p0, %s25_s18), %s3687_s15 }
   0x7   : > { %p152_p3 = pnand %p2900_p1, %p151_p2  ;;  %p27_p4 = scmp.ge.s32.totalorder %s4623_s18, 2 }
   0x8   : > { %v222_v0 = vld [vmem:[%s4609_s1] sm:$0xf] (!%p152_p3)  ;;  %vm288_vm0 = vcmask (!%p152_p3), 1043456   ;;  %p179_p5 = scmp.lt.s32.totalorder (!%p152_p3), %s3679_s13, 1  ;;  %v3026_v2 = vld [vmem:[%s4609_s1 + $0x10] sm:$0xf] (!%p152_p3) }
   0x9   : > { %s4625_s18 = smov (%p27_p4, %s4623_s18), 0  ;;  %155 = sbr.rel (%p152_p3) target bundleno = 413 (0x19d), region = 32 }
   0xa   : > { %3577 = vmatprep.subr.msk.bf16.mxu1 (!%p152_p3), %vm288_vm0, %v222_v0  ;;  %v290_v1 = vsel (!%p152_p3), %vm288_vm0, %v222_v0, 0  ;;  %v2925_v3 = vld [vmem:[%s4609_s1 + $0x4] sm:$0xf] (!%p152_p3)  ;;  %3581 = vmatprep.subr.msk.bf16.mxu0 (!%p152_p3), %vm288_vm0, %v3026_v2  ;;  %v3760_v4 = vsel (!%p152_p3), %vm288_vm0, %v3026_v2, 0  ;;  %s3187_s25 = smul.u32 (!%p152_p3), 96, %s3675_s12  ;;  %vm263_vm1 = vcmask (!%p152_p3), 64512  }
   0xb   : > { %3270 = vmatpush3.bf16.msra.mxu1 (!%p152_p3), %v290_v1  ;;  %3342 = vmatpush3.bf16.msra.mxu0 (!%p152_p3), %v3760_v4  ;;  %v3059_v5 = vld [vmem:[%s4609_s1 + $0x14] sm:$0xf] (!%p152_p3)  ;;  %v3773_v6 = vld [vmem:[%s4609_s1 + $0x18] sm:$0xf] (!%p152_p3)  ;;  %v675_v7 = vsel (!%p152_p3), %vm288_vm0, %v2925_v3, 0  ;;  %vm822_vm4 = vcmask (!%p152_p3), 1042432  }
   0xc   : > { %3578 = vmatprep.subr.msk.bf16.mxu1 (!%p152_p3), %vm288_vm0, %v2925_v3  ;;  %3583 = vmatprep.subr.msk.bf16.mxu0 (!%p152_p3), %vm288_vm0, %v3059_v5  ;;  %v3780_v8 = vsel (!%p152_p3), %vm288_vm0, %v3059_v5, 0  ;;  %v2950_v9 = vld [vmem:[%s4609_s1 + $0x8] sm:$0xf] (!%p152_p3)  ;;  %vm429_vm2 = vsmask.f32 (!%p152_p3), 3328  ;;  %v3805_v14 = vsel (!%p152_p3), %vm288_vm0, %v3773_v6, 0 }
   0xd   : > { %vm430_vm3 = vsmask.f32 (!%p152_p3), 7440  ;;  %v3790_v10 = vld [vmem:[%s4609_s1 + $0x1c] sm:$0xf] (!%p152_p3)  ;;  %v3795_v11 = vld [vmem:[%s4609_s1 + $0xc] sm:$0xf] (!%p152_p3) }
   0xe   : > { %v3800_v12 = vld [vmem:[%s4609_s1 + $0x20] sm:$0xf] (!%p152_p3)  ;;  %v3809_v16 = vsel (!%p152_p3), %vm288_vm0, %v2950_v9, 0  ;;  %v3815_v18 = vsel (!%p152_p3), %vm288_vm0, %v3790_v10, 0  ;;  %v3820_v19 = vsel (!%p152_p3), %vm288_vm0, %v3795_v11, 0  ;;  %vm823_vm5 = vcmask (!%p152_p3), 1046532   ;;  %vm3853_vm6 = vmor (!%p152_p3), %vm429_vm2, %vm430_vm3 }
   0xf   : > { %v3824_v20 = vsel (!%p152_p3), %vm288_vm0, %v3800_v12, 0  ;;  %vm3900_vm7 = vmor (!%p152_p3), %vm822_vm4, %vm823_vm5  ;;  %s2902_s27 = sshll.u32 (!%p152_p3), %s3675_s12, 2 }
  0x10   : > { %s4627_s13 = smov (!%p179_p5, %s3679_s13), 1  ;;  %p187_p6 = scmp.lt.s32.totalorder %s2902_s27, 7 }
  0x11   : > { %s3587_s28 = smul.u32 216, %s4627_s13  ;;  %s2903_s12 = sshll.u32 %s4627_s13, 3 }
  0x12   : > { %s4629_s27 = smov (!%p187_p6, %s2902_s27), 7 }
  0x13   : > { %s183_s6 = scalar_lea.vmem %s4608_s0, %s3587_s28  ;;  %s4557_s28 = sadd.s32 %s2903_s12, %s4629_s27 }
  0x14   : > { %s3785_s9 = scalar_lea.vmem %s183_s6, %s3187_s25  ;;  %s2904_s13 = sshll.u32 %s4557_s28, 3 }
  0x15   : > { %v3628_v13 = vld [vmem:[%s3785_s9] sm:$0xff]   ;;  %v3629_v15 = vld [vmem:[%s3785_s9 + $0xc] sm:$0xff]   ;;  %v3630_v17 = vld [vmem:[%s3785_s9 + $0x18] sm:$0xff]   ;;  %s4569_s4 = scalar_lea.vmem %s4611_s3, %s2904_s13 }
  0x16   : > { %3271 = vmatprep.mubr.msk.bf16.mxu1 %vm263_vm1, %v3628_v13  ;;  %v3002_v21 = vld [vmem:[%s3785_s9 + $0xc] sm:$0xf]  ;;  %v3829_v22 = vld [vmem:[%s3785_s9 + $0x10] sm:$0xf]  ;;  %v3832_v23 = vld [vmem:[%s3785_s9 + $0x14] sm:$0x1] }
  0x17   : > { %3272 = vmatmul.mubr.msk.bf16.vlgmr.msra.gmra.mrb[0].mxu1 %vm263_vm1, %v3629_v15  ;;  %v1274_v24 = vshrl.u32 %v3002_v21, 16  ;;  %v1277_v25 = vshll.u32 %v3002_v21, 16  ;;  %v1283_v26 = vshll.u32 %v3829_v22, 16  ;;  %v1287_v27 = vshrl.u32 %v3829_v22, 16  ;;  %v3005_v28 = vld [vmem:[%s3785_s9 + $0x18] sm:$0xf] }
  0x18   : > { %3275 = vmatprep.mubr.msk.bf16.mxu1 %vm263_vm1, %v3630_v17  ;;  %3288 = vmatpush3.bf16.msra.mxu1 %v675_v7  ;;  %v3631_v29 = vld [vmem:[%s3785_s9 + $0x24] sm:$0xff]   ;;  %v1293_v30 = vshll.u32 %v3832_v23, 16  ;;  %v1665_v31 = vrot.slane %v3829_v22, 5  ;;  %v3842_v32 = vld [vmem:[%s3785_s9 + $0x1c] sm:$0xf]  ;;  %v1298_v33 = vshrl.u32 %v3005_v28, 16 }
  0x19   : > { %3579 = vmatprep.subr.msk.bf16.mxu1 %vm288_vm0, %v2950_v9  ;;  %v1276_v34 = vrot.slane %v1274_v24, 4  ;;  %v1279_v35 = vrot.slane %v1277_v25, 5  ;;  %v1285_v36 = vrot.slane %v1283_v26, 5  ;;  %v1289_v37 = vrot.slane %v1287_v27, 4  ;;  %v3845_v38 = vld [vmem:[%s3785_s9 + $0x20] sm:$0x1] }
  0x1a   : > { %v1295_v39 = vrot.slane %v1293_v30, 5  ;;  %v1300_v40 = vrot.slane %v1298_v33, 4  ;;  %v1301_v41 = vshll.u32 %v3005_v28, 16  ;;  %v1307_v42 = vshll.u32 %v3842_v32, 16  ;;  %v3632_v47 = vld [vmem:[%s3785_s9 + $0x30] sm:$0xff]   ;;  %v3633_v9 = vld [vmem:[%s3785_s9 + $0x3c] sm:$0xff]  }
  0x1b   : > { %v1280_v43 = vor.u32 %v1279_v35, %v1276_v34  ;;  %v1290_v44 = vor.u32 %v1289_v37, %v1285_v36  ;;  %v1311_v45 = vshrl.u32 %v3842_v32, 16  ;;  %v1317_v46 = vshll.u32 %v3845_v38, 16  ;;  %v3008_v60 = vld [vmem:[%s3785_s9 + $0x24] sm:$0xf]  ;;  %v3868_v61 = vld [vmem:[%s3785_s9 + $0x28] sm:$0xf] }
  0x1c   : > { %v1668_v49 = vrot.slane %v3832_v23, 5  ;;  %v1303_v50 = vrot.slane %v1301_v41, 5  ;;  %v1309_v51 = vrot.slane %v1307_v42, 5  ;;  %v1672_v52 = vrot.slane %v3842_v32, 5  ;;  %v3875_v1 = vld [vmem:[%s3785_s9 + $0x2c] sm:$0x1] }
  0x1d   : > { %v1281_v53 = vrot.slane %v1280_v43, 4  ;;  %v1291_v54 = vrot.slane %v1290_v44, 4  ;;  %v1313_v55 = vrot.slane %v1311_v45, 4  ;;  %v1675_v56 = vrot.slane %v3845_v38, 5  ;;  %v3011_v3 = vld [vmem:[%s3785_s9 + $0x30] sm:$0xf] }
  0x1e   : > { %v1304_v57 = vor.u32 %v1303_v50, %v1300_v40  ;;  %v1319_v58 = vrot.slane %v1317_v46, 5  ;;  %v3863_v59 = vrot.slane %v1672_v52, 4  ;;  %v1322_v2 = vshrl.u32 %v3008_v60, 16  ;;  %v3881_v17 = vld [vmem:[%s3785_s9 + $0x34] sm:$0xf]  ;;  %v3634_v34 = vld [vmem:[%s3785_s9 + $0x48] sm:$0xff]  }
  0x1f   : > { %3276 = vmatmul.mubr.msk.bf16.gmra.mrb[4].mxu1 %vm263_vm1, %v3631_v29  ;;  %v1286_v62 = vsel %vm3853_vm6, %v1281_v53, %v1285_v36  ;;  %v1296_v63 = vsel %vm3853_vm6, %v1291_v54, %v1295_v39  ;;  %v1314_v0 = vor.u32 %v1313_v55, %v1309_v51  ;;  %v1325_v13 = vshll.u32 %v3008_v60, 16  ;;  %v3886_v27 = vld [vmem:[%s3785_s9 + $0x38] sm:$0x1] }
  0x20   : > { %3279 = vmatprep.mubr.msk.bf16.mxu1 %vm263_vm1, %v3632_v47  ;;  %v3027_v5 = vcombine.low %v1286_v62, %v1296_v63  ;;  %v1305_v7 = vrot.slane %v1304_v57, 4  ;;  %v1331_v15 = vshll.u32 %v3868_v61, 16  ;;  %v1324_v24 = vrot.slane %v1322_v2, 4  ;;  %v405_v2 = vld [vmem:[%s3785_s9] sm:$0xf]  ;;  %v3635_v22 = vld [vmem:[%s3785_s9 + $0x54] sm:$0xff]  }
  0x21   : > { %v1315_v21 = vrot.slane %v1314_v0, 4  ;;  %v1335_v25 = vshrl.u32 %v3868_v61, 16  ;;  %v1341_v26 = vshll.u32 %v3875_v1, 16  ;;  %v1327_v29 = vrot.slane %v1325_v13, 5 }
  0x22   : > { %3343 = vmatprep.mubr.msk.bf16.mxu0 %vm263_vm1, %v3027_v5  ;;  %v1310_v28 = vsel %vm3853_vm6, %v1305_v7, %v1309_v51  ;;  %v1333_v30 = vrot.slane %v1331_v15, 5  ;;  %v1346_v33 = vshrl.u32 %v3011_v3, 16  ;;  %v1349_v39 = vshll.u32 %v3011_v3, 16  ;;  %v3043_v51 = vld [vmem:[%s3785_s9 + $0xc] sm:$0xe] }
  0x23   : > { %v1320_v35 = vsel %vm3853_vm6, %v1315_v21, %v1319_v58  ;;  %v1337_v36 = vrot.slane %v1335_v25, 4  ;;  %v1343_v37 = vrot.slane %v1341_v26, 5  ;;  %v1328_v41 = vor.u32 %v1327_v29, %v1324_v24  ;;  %v3044_v58 = vld [vmem:[%s3785_s9 + $0x18] sm:$0xe]  ;;  %v3928_v24 = vld [vmem:[%s3785_s9 + $0x4] sm:$0xf] }
  0x24   : > { %v3028_v40 = vcombine.low %v1310_v28, %v1320_v35  ;;  %v1348_v42 = vrot.slane %v1346_v33, 4  ;;  %v1355_v43 = vshll.u32 %v3881_v17, 16  ;;  %v1351_v45 = vrot.slane %v1349_v39, 5  ;;  %v408_v26 = vld [vmem:[%s3785_s9 + $0xc] sm:$0xf] }
  0x25   : > { %v1338_v44 = vor.u32 %v1337_v36, %v1333_v30  ;;  %v1359_v46 = vshrl.u32 %v3881_v17, 16  ;;  %v1365_v47 = vshll.u32 %v3886_v27, 16  ;;  %v1329_v53 = vrot.slane %v1328_v41, 4 }
  0x26   : > { %3344 = vmatmul.mubr.msk.bf16.vlgmr.msra.gmra.mrb[0].mxu0 %vm263_vm1, %v3028_v40  ;;  %v1357_v54 = vrot.slane %v1355_v43, 5  ;;  %v3051_v55 = vrot.slane %v3043_v51, 9  ;;  %v1667_v57 = vrot.slane %v1665_v31, 4  ;;  %v1352_v62 = vor.u32 %v1351_v45, %v1348_v42  ;;  %v3045_v40 = vld [vmem:[%s3785_s9 + $0x24] sm:$0xe] }
  0x27   : > { %3280 = vmatmul.mubr.msk.bf16.gmra.mrb[8].mxu1 %vm263_vm1, %v3633_v9  ;;  %3360 = vmatpush3.bf16.msra.mxu0 %v3780_v8  ;;  %v1339_v60 = vrot.slane %v1338_v44, 4  ;;  %v1361_v63 = vrot.slane %v1359_v46, 4  ;;  %v1367_v0 = vrot.slane %v1365_v47, 5  ;;  %v1334_v3 = vsel %vm3853_vm6, %v1329_v53, %v1333_v30 }
  0x28   : > { %3283 = vmatprep.mubr.msk.bf16.mxu1 %vm263_vm1, %v3634_v34  ;;  %v1666_v5 = vsel %vm3900_vm7, %v3051_v55, %v1665_v31  ;;  %v1669_v8 = vsel %vm3900_vm7, %v1667_v57, %v1668_v49  ;;  %3584 = vmatprep.subr.msk.bf16.mxu0 %vm288_vm0, %v3773_v6  ;;  %v3052_v7 = vrot.slane %v3044_v58, 9  ;;  %v1353_v13 = vrot.slane %v1352_v62, 4  ;;  %v3931_v31 = vld [vmem:[%s3785_s9 + $0x8] sm:$0x1]  ;;  %v3959_v34 = vld [vmem:[%s3785_s9 + $0x14] sm:$0x1] }
  0x29   : > { %v1344_v9 = vsel %vm3853_vm6, %v1339_v60, %v1343_v37  ;;  %v1362_v15 = vor.u32 %v1361_v63, %v1357_v54  ;;  %v3060_v21 = vcombine.low %v1666_v5, %v1669_v8  ;;  %v3944_v49 = vsel %vm3900_vm7, %v3863_v59, %v1675_v56 }
  0x2a   : > { %v3029_v23 = vcombine.low %v1334_v3, %v1344_v9  ;;  %v3937_v6 = vsel %vm3900_vm7, %v3052_v7, %v1672_v52  ;;  %v433_v25 = vshrl.u32 %v405_v2, 16  ;;  %v1358_v28 = vsel %vm3853_vm6, %v1353_v13, %v1357_v54  ;;  %v3952_v52 = vld [vmem:[%s3785_s9 + $0x10] sm:$0xf] }
  0x2b   : > { %v1363_v29 = vrot.slane %v1362_v15, 4  ;;  %v3061_v32 = vcombine.low %v3937_v6, %v3944_v49  ;;  %v436_v30 = vshll.u32 %v405_v2, 16  ;;  %v442_v33 = vshll.u32 %v3928_v24, 16 }
  0x2c   : > { %3347 = vmatprep.mubr.msk.bf16.mxu0 %vm263_vm1, %v3029_v23  ;;  %v435_v38 = vrot.slane %v433_v25, 4  ;;  %v446_v56 = vshrl.u32 %v3928_v24, 16  ;;  %v452_v59 = vshll.u32 %v3931_v31, 16  ;;  %v457_v37 = vshrl.u32 %v408_v26, 16  ;;  %v411_v25 = vld [vmem:[%s3785_s9 + $0x18] sm:$0xf] }
  0x2d   : > { %v1368_v35 = vsel %vm3853_vm6, %v1363_v29, %v1367_v0  ;;  %v438_v36 = vrot.slane %v436_v30, 5  ;;  %v460_v39 = vshll.u32 %v408_v26, 16  ;;  %v444_v42 = vrot.slane %v442_v33, 5  ;;  %v3046_v0 = vld [vmem:[%s3785_s9 + $0x30] sm:$0xe] }
  0x2e   : > { %v3030_v41 = vcombine.low %v1358_v28, %v1368_v35  ;;  %v448_v43 = vrot.slane %v446_v56, 4  ;;  %v454_v44 = vrot.slane %v452_v59, 5  ;;  %v459_v46 = vrot.slane %v457_v37, 4  ;;  %v3982_v26 = vld [vmem:[%s3785_s9 + $0x1c] sm:$0xf] }
  0x2f   : > { %3284 = vmatmul.mubr.msk.bf16.gmra.mrb[12].mxu1 %vm263_vm1, %v3635_v22  ;;  %v439_v45 = vor.u32 %v438_v36, %v435_v38  ;;  %v462_v47 = vrot.slane %v460_v39, 5  ;;  %v466_v51 = vshll.u32 %v3952_v52, 16  ;;  %v470_v54 = vshrl.u32 %v3952_v52, 16  ;;  %v3990_v38 = vld [vmem:[%s3785_s9 + $0x20] sm:$0x1] }
  0x30   : > { %3348 = vmatmul.mubr.msk.bf16.gmra.mrb[4].mxu0 %vm263_vm1, %v3030_v41  ;;  %v449_v53 = vor.u32 %v448_v43, %v444_v42  ;;  %v476_v55 = vshll.u32 %v3959_v34, 16  ;;  %v3053_v57 = vrot.slane %v3045_v40, 9  ;;  %v1679_v63 = vrot.slane %v3868_v61, 5  ;;  %v414_v33 = vld [vmem:[%s3785_s9 + $0x24] sm:$0xf] }
  0x31   : > { %3361 = vmatprep.mubr.msk.bf16.mxu0 %vm263_vm1, %v3060_v21  ;;  %v440_v58 = vrot.slane %v439_v45, 4  ;;  %v463_v60 = vor.u32 %v462_v47, %v459_v46  ;;  %v468_v62 = vrot.slane %v466_v51, 5  ;;  %v472_v3 = vrot.slane %v470_v54, 4  ;;  %v4008_v43 = vld [vmem:[%s3785_s9 + $0x28] sm:$0xf] }
  0x32   : > { %v450_v2 = vrot.slane %v449_v53, 4  ;;  %v478_v5 = vrot.slane %v476_v55, 5  ;;  %v1682_v8 = vrot.slane %v3875_v1, 5  ;;  %v1680_v13 = vsel %vm3900_vm7, %v3053_v57, %v1679_v63  ;;  %v4016_v47 = vld [vmem:[%s3785_s9 + $0x40] sm:$0xf] }
  0x33   : > { %v445_v7 = vsel %vm3853_vm6, %v440_v58, %v444_v42  ;;  %v464_v9 = vrot.slane %v463_v60, 4  ;;  %v1681_v15 = vrot.slane %v1679_v63, 4  ;;  %v473_v61 = vor.u32 %v472_v3, %v468_v62  ;;  %v3047_v51 = vld [vmem:[%s3785_s9 + $0x3c] sm:$0xe] }
  0x34   : > { %v455_v22 = vsel %vm3853_vm6, %v450_v2, %v454_v44  ;;  %v3054_v21 = vrot.slane %v3046_v0, 9  ;;  %v1686_v23 = vrot.slane %v3881_v17, 5  ;;  %v1689_v30 = vrot.slane %v3886_v27, 5  ;;  %v4011_v44 = vld [vmem:[%s3785_s9 + $0x2c] sm:$0x1] }
  0x35   : > { %v2926_v1 = vcombine.low %v445_v7, %v455_v22  ;;  %v469_v28 = vsel %vm3853_vm6, %v464_v9, %v468_v62  ;;  %v1683_v29 = vsel %vm3900_vm7, %v1681_v15, %v1682_v8  ;;  %v474_v56 = vrot.slane %v473_v61, 4  ;;  %v4027_v2 = vld [vmem:[%s3785_s9 + $0x44] sm:$0x1] }
  0x36   : > { %v3062_v59 = vcombine.low %v1680_v13, %v1683_v29  ;;  %v1687_v17 = vsel %vm3900_vm7, %v3054_v21, %v1686_v23  ;;  %v1688_v35 = vrot.slane %v1686_v23, 4  ;;  %v481_v36 = vshrl.u32 %v411_v25, 16  ;;  %v3018_v13 = vld [vmem:[%s3785_s9 + $0x4c] sm:$0xf]  ;;  %v3019_v21 = vld [vmem:[%s3785_s9 + $0x50] sm:$0x1] }
  0x37   : > { %3289 = vmatprep.mubr.msk.bf16.mxu1 %vm263_vm1, %v2926_v1  ;;  %v484_v37 = vshll.u32 %v411_v25, 16  ;;  %v490_v39 = vshll.u32 %v3982_v26, 16  ;;  %v494_v27 = vshrl.u32 %v3982_v26, 16  ;;  %v479_v40 = vsel %vm3853_vm6, %v474_v56, %v478_v5  ;;  %v3048_v29 = vld [vmem:[%s3785_s9 + $0x48] sm:$0xe] }
  0x38   : > { %3362 = vmatmul.mubr.msk.bf16.vlgmr.msra.gmra.mrb[0].mxu0 %vm263_vm1, %v3061_v32  ;;  %v1690_v41 = vsel %vm3900_vm7, %v1688_v35, %v1689_v30  ;;  %v500_v42 = vshll.u32 %v3990_v38, 16  ;;  %v505_v45 = vshrl.u32 %v414_v33, 16  ;;  %v2927_v46 = vcombine.low %v469_v28, %v479_v40  ;;  %v417_v30 = vld [vmem:[%s3785_s9 + $0x30] sm:$0xf] }
  0x39   : > { %3378 = vmatpush3.bf16.msra.mxu0 %v3805_v14  ;;  %3365 = vmatprep.mubr.msk.bf16.mxu0 %vm263_vm1, %v3062_v59  ;;  %v3063_v6 = vcombine.low %v1687_v17, %v1690_v41  ;;  %v483_v49 = vrot.slane %v481_v36, 4  ;;  %v486_v32 = vrot.slane %v484_v37, 5  ;;  %v492_v53 = vrot.slane %v490_v39, 5  ;;  %v4045_v17 = vld [vmem:[%s3785_s9 + $0x34] sm:$0xf] }
  0x3a   : > { %v496_v54 = vrot.slane %v494_v27, 4  ;;  %v502_v55 = vrot.slane %v500_v42, 5  ;;  %v507_v57 = vrot.slane %v505_v45, 4  ;;  %3585 = vmatprep.subr.msk.bf16.mxu0 %vm288_vm0, %v3790_v10  ;;  %3290 = vmatmul.mubr.msk.bf16.vlgmr.msra.gmra.mrb[0].mxu1 %vm263_vm1, %v2927_v46  ;;  %v508_v58 = vshll.u32 %v414_v33, 16  ;;  %v4050_v27 = vld [vmem:[%s3785_s9 + $0x38] sm:$0x1] }
  0x3b   : > { %v487_v14 = vor.u32 %v486_v32, %v483_v49  ;;  %v514_v60 = vshll.u32 %v4008_v43, 16  ;;  %v518_v62 = vshrl.u32 %v4008_v43, 16  ;;  %3306 = vmatpush3.bf16.msra.mxu1 %v3809_v16  ;;  %v524_v0 = vshll.u32 %v4011_v44, 16  ;;  %v420_v45 = vld [vmem:[%s3785_s9 + $0x3c] sm:$0xf] }
  0x3c   : > { %v497_v63 = vor.u32 %v496_v54, %v492_v53  ;;  %v3055_v3 = vrot.slane %v3047_v51, 9  ;;  %v1693_v10 = vrot.slane %v4016_v47, 5  ;;  %v510_v8 = vrot.slane %v508_v58, 5  ;;  %3580 = vmatprep.subr.msk.bf16.mxu1 %vm288_vm0, %v3795_v11 }
  0x3d   : > { %v488_v5 = vrot.slane %v487_v14, 4  ;;  %v516_v7 = vrot.slane %v514_v60, 5  ;;  %v520_v9 = vrot.slane %v518_v62, 4  ;;  %v526_v16 = vrot.slane %v524_v0, 5  ;;  %v3049_v0 = vld [vmem:[%s3785_s9 + $0x54] sm:$0xe] }
  0x3e   : > { %v498_v15 = vrot.slane %v497_v63, 4  ;;  %v1694_v22 = vsel %vm3900_vm7, %v3055_v3, %v1693_v10  ;;  %v1695_v61 = vrot.slane %v1693_v10, 4  ;;  %v511_v25 = vor.u32 %v510_v8, %v507_v57  ;;  %v4066_v57 = vld [vmem:[%s3785_s9 + $0x40] sm:$0xf]  ;;  %v4072_v63 = vld [vmem:[%s3785_s9 + $0x44] sm:$0x1] }
  0x3f   : > { %v493_v23 = vsel %vm3853_vm6, %v488_v5, %v492_v53  ;;  %v521_v1 = vor.u32 %v520_v9, %v516_v7  ;;  %v1696_v28 = vrot.slane %v4027_v2, 5  ;;  %v1403_v33 = vshll.u32 %v3018_v13, 16 }
  0x40   : > { %3366 = vmatmul.mubr.msk.bf16.gmra.mrb[4].mxu0 %vm263_vm1, %v3063_v6  ;;  %v503_v11 = vsel %vm3853_vm6, %v498_v15, %v502_v55  ;;  %v1407_v56 = vshrl.u32 %v3018_v13, 16  ;;  %v1413_v59 = vshll.u32 %v3019_v21, 16  ;;  %v512_v36 = vrot.slane %v511_v25, 4 }
  0x41   : > { %v2928_v35 = vcombine.low %v493_v23, %v503_v11  ;;  %v522_v37 = vrot.slane %v521_v1, 4  ;;  %v1697_v39 = vsel %vm3900_vm7, %v1695_v61, %v1696_v28  ;;  %v4052_v41 = vrot.slane %v1403_v33, 5  ;;  %v4091_v11 = vld [vmem:[%s3785_s9 + $0x64] sm:$0xf] }
  0x42   : > { %v3064_v40 = vcombine.low %v1694_v22, %v1697_v39  ;;  %v4054_v42 = vrot.slane %v1407_v56, 4  ;;  %v517_v46 = vsel %vm3853_vm6, %v512_v36, %v516_v7  ;;  %v3056_v49 = vrot.slane %v3048_v29, 9  ;;  %v4081_v7 = vld [vmem:[%s3785_s9 + $0x58] sm:$0xf]  ;;  %v4086_v22 = vld [vmem:[%s3785_s9 + $0x5c] sm:$0x1] }
  0x43   : > { %3293 = vmatprep.mubr.msk.bf16.mxu1 %vm263_vm1, %v2928_v35  ;;  %v527_v6 = vsel %vm3853_vm6, %v522_v37, %v526_v16  ;;  %v1700_v32 = vrot.slane %v3018_v13, 5  ;;  %v4063_v53 = vrot.slane %v1413_v59, 5  ;;  %v1703_v54 = vrot.slane %v3019_v21, 5  ;;  %v4096_v36 = vld [vmem:[%s3785_s9 + $0x68] sm:$0x1] }
  0x44   : > { %v2929_v51 = vcombine.low %v517_v46, %v527_v6  ;;  %3369 = vmatprep.mubr.msk.bf16.mxu0 %vm263_vm1, %v3064_v40  ;;  %v529_v55 = vshrl.u32 %v417_v30, 16  ;;  %v532_v60 = vshll.u32 %v417_v30, 16  ;;  %v538_v62 = vshll.u32 %v4045_v17, 16  ;;  %v3050_v37 = vld [vmem:[%s3785_s9 + $0x60] sm:$0xe] }
  0x45   : > { %v1701_v14 = vsel %vm3900_vm7, %v3056_v49, %v1700_v32  ;;  %v1702_v58 = vrot.slane %v1700_v32, 4  ;;  %v1410_v3 = vor.u32 %v4054_v42, %v4052_v41  ;;  %v542_v5 = vshrl.u32 %v4045_v17, 16 }
  0x46   : > { %3294 = vmatmul.mubr.msk.bf16.gmra.mrb[4].mxu1 %vm263_vm1, %v2929_v51  ;;  %v531_v10 = vrot.slane %v529_v55, 4  ;;  %v548_v8 = vshll.u32 %v4050_v27, 16  ;;  %v534_v13 = vrot.slane %v532_v60, 5  ;;  %v540_v15 = vrot.slane %v538_v62, 5  ;;  %v4103_v55 = vld [vmem:[%s3785_s9 + $0x4c] sm:$0xf] }
  0x47   : > { %v1704_v9 = vsel %vm3900_vm7, %v1702_v58, %v1703_v54  ;;  %v553_v16 = vshrl.u32 %v420_v45, 16  ;;  %v544_v21 = vrot.slane %v542_v5, 4  ;;  %v556_v25 = vshll.u32 %v420_v45, 16  ;;  %v423_v54 = vld [vmem:[%s3785_s9 + $0x48] sm:$0xf] }
  0x48   : > { %v3065_v61 = vcombine.low %v1701_v14, %v1704_v9  ;;  %v550_v23 = vrot.slane %v548_v8, 5  ;;  %v535_v1 = vor.u32 %v534_v13, %v531_v10  ;;  %v562_v29 = vshll.u32 %v4066_v57, 16  ;;  %v4113_v9 = vld [vmem:[%s3785_s9 + $0x50] sm:$0x1] }
  0x49   : > { %v555_v28 = vrot.slane %v553_v16, 4  ;;  %v566_v30 = vshrl.u32 %v4066_v57, 16  ;;  %v545_v33 = vor.u32 %v544_v21, %v540_v15  ;;  %v558_v56 = vrot.slane %v556_v25, 5  ;;  %v426_v21 = vld [vmem:[%s3785_s9 + $0x54] sm:$0xf] }
  0x4a   : > { %3370 = vmatmul.mubr.msk.bf16.gmra.mrb[8].mxu0 %vm263_vm1, %v3065_v61  ;;  %v572_v59 = vshll.u32 %v4072_v63, 16  ;;  %v3057_v35 = vrot.slane %v3049_v0, 9  ;;  %v536_v39 = vrot.slane %v535_v1, 4  ;;  %v564_v40 = vrot.slane %v562_v29, 5 }
  0x4b   : > { %v568_v45 = vrot.slane %v566_v30, 4  ;;  %v1707_v46 = vrot.slane %v4081_v7, 5  ;;  %v546_v6 = vrot.slane %v545_v33, 4  ;;  %v559_v49 = vor.u32 %v558_v56, %v555_v28 }
  0x4c   : > { %v574_v32 = vrot.slane %v572_v59, 5  ;;  %v1710_v51 = vrot.slane %v4086_v22, 5  ;;  %v541_v14 = vsel %vm3853_vm6, %v536_v39, %v540_v15  ;;  %v3058_v5 = vrot.slane %v3050_v37, 9  ;;  %v3636_v59 = vld [vmem:[%s3785_s9 + $0x18] sm:$0xff]  }
  0x4d   : > { %v569_v58 = vor.u32 %v568_v45, %v564_v40  ;;  %v1708_v60 = vsel %vm3900_vm7, %v3057_v35, %v1707_v46  ;;  %v1709_v62 = vrot.slane %v1707_v46, 4  ;;  %v551_v0 = vsel %vm3853_vm6, %v546_v6, %v550_v23  ;;  %v4134_v45 = vld [vmem:[%s3785_s9 + $0x58] sm:$0xf]  ;;  %v4137_v46 = vld [vmem:[%s3785_s9 + $0x5c] sm:$0x1] }
  0x4e   : > { %v560_v10 = vrot.slane %v559_v49, 4  ;;  %v1714_v8 = vrot.slane %v4091_v11, 5  ;;  %v2930_v13 = vcombine.low %v541_v14, %v551_v0  ;;  %v1717_v61 = vrot.slane %v4096_v36, 5 }
  0x4f   : > { %v570_v16 = vrot.slane %v569_v58, 4  ;;  %v1711_v15 = vsel %vm3900_vm7, %v1709_v62, %v1710_v51  ;;  %v577_v30 = vshrl.u32 %v423_v54, 16  ;;  %v580_v33 = vshll.u32 %v423_v54, 16  ;;  %v790_v54 = vld [vmem:[%s3785_s9] sm:$0xe] }
  0x50   : > { %v565_v25 = vsel %vm3853_vm6, %v560_v10, %v564_v40  ;;  %v3066_v23 = vcombine.low %v1708_v60, %v1711_v15  ;;  %v1715_v1 = vsel %vm3900_vm7, %v3058_v5, %v1714_v8  ;;  %v1716_v28 = vrot.slane %v1714_v8, 4  ;;  %3297 = vmatprep.mubr.msk.bf16.mxu1 %vm263_vm1, %v2930_v13 }
  0x51   : > { %v575_v29 = vsel %vm3853_vm6, %v570_v16, %v574_v32  ;;  %v586_v56 = vshll.u32 %v4103_v55, 16  ;;  %v590_v39 = vshrl.u32 %v4103_v55, 16  ;;  %v596_v40 = vshll.u32 %v4113_v9, 16 }
  0x52   : > { %v2931_v35 = vcombine.low %v565_v25, %v575_v29  ;;  %3373 = vmatprep.mubr.msk.bf16.mxu0 %vm263_vm1, %v3066_v23  ;;  %v1718_v37 = vsel %vm3900_vm7, %v1716_v28, %v1717_v61  ;;  %v579_v49 = vrot.slane %v577_v30, 4  ;;  %v582_v32 = vrot.slane %v580_v33, 5  ;;  %v791_v25 = vld [vmem:[%s3785_s9 + $0xc] sm:$0xe]  ;;  %v3637_v29 = vld [vmem:[%s3785_s9 + $0x24] sm:$0xff]  }
  0x53   : > { %v3067_v6 = vcombine.low %v1715_v1, %v1718_v37  ;;  %v588_v51 = vrot.slane %v586_v56, 5  ;;  %v592_v14 = vrot.slane %v590_v39, 4  ;;  %v598_v58 = vrot.slane %v596_v40, 5  ;;  %v3638_v37 = vld [vmem:[%s3785_s9 + $0x30] sm:$0xff]   ;;  %v792_v39 = vld [vmem:[%s3785_s9 + $0x18] sm:$0xe] }
  0x54   : > { %3298 = vmatmul.mubr.msk.bf16.gmra.mrb[8].mxu1 %vm263_vm1, %v2931_v35  ;;  %v601_v60 = vshrl.u32 %v426_v21, 16  ;;  %v604_v62 = vshll.u32 %v426_v21, 16  ;;  %v583_v0 = vor.u32 %v582_v32, %v579_v49  ;;  %v610_v10 = vshll.u32 %v4134_v45, 16 }
  0x55   : > { %3374 = vmatmul.mubr.msk.bf16.gmra.mrb[12].mxu0 %vm263_vm1, %v3067_v6  ;;  %v614_v5 = vshrl.u32 %v4134_v45, 16  ;;  %v620_v8 = vshll.u32 %v4137_v46, 16  ;;  %v593_v13 = vor.u32 %v592_v14, %v588_v51  ;;  %v2942_v61 = vrot.slane %v790_v54, 9 }
  0x56   : > { %v603_v16 = vrot.slane %v601_v60, 4  ;;  %v606_v15 = vrot.slane %v604_v62, 5  ;;  %3379 = vmatprep.mubr.msk.bf16.mxu0 %vm263_vm1, %v3636_v59  ;;  %v584_v21 = vrot.slane %v583_v0, 4  ;;  %v612_v23 = vrot.slane %v610_v10, 5  ;;  %v793_v0 = vld [vmem:[%s3785_s9 + $0x24] sm:$0xe] }
  0x57   : > { %v616_v1 = vrot.slane %v614_v5, 4  ;;  %v622_v28 = vrot.slane %v620_v8, 5  ;;  %v594_v30 = vrot.slane %v593_v13, 4  ;;  %v827_v56 = vrot.slane %v3928_v24, 5 }
  0x58   : > { %v607_v33 = vor.u32 %v606_v15, %v603_v16  ;;  %v830_v35 = vrot.slane %v3931_v31, 5  ;;  %v589_v40 = vsel %vm3853_vm6, %v584_v21, %v588_v51  ;;  %v2943_v6 = vrot.slane %v791_v25, 9  ;;  %v795_v25 = vld [vmem:[%s3785_s9 + $0x3c] sm:$0xe] }
  0x59   : > { %v617_v59 = vor.u32 %v616_v1, %v612_v23  ;;  %v834_v49 = vrot.slane %v3952_v52, 5  ;;  %v599_v32 = vsel %vm3853_vm6, %v594_v30, %v598_v58  ;;  %v828_v14 = vsel %vm3900_vm7, %v2942_v61, %v827_v56  ;;  %v794_v61 = vld [vmem:[%s3785_s9 + $0x30] sm:$0xe] }
  0x5a   : > { %v608_v54 = vrot.slane %v607_v33, 4  ;;  %v829_v24 = vrot.slane %v827_v56, 4  ;;  %v2932_v60 = vcombine.low %v589_v40, %v599_v32  ;;  %v837_v10 = vrot.slane %v3959_v34, 5  ;;  %v3639_v56 = vld [vmem:[%s3785_s9 + $0x3c] sm:$0xff]   ;;  %v797_v32 = vld [vmem:[%s3785_s9 + $0x54] sm:$0xe] }
  0x5b   : > { %v618_v31 = vrot.slane %v617_v59, 4  ;;  %v4161_v62 = vsel %vm3900_vm7, %v2943_v6, %v834_v49  ;;  %v836_v51 = vrot.slane %v834_v49, 4  ;;  %v2944_v5 = vrot.slane %v792_v39, 9  ;;  %v796_v39 = vld [vmem:[%s3785_s9 + $0x48] sm:$0xe] }
  0x5c   : > { %v613_v52 = vsel %vm3853_vm6, %v608_v54, %v612_v23  ;;  %v831_v58 = vsel %vm3900_vm7, %v829_v24, %v830_v35  ;;  %3301 = vmatprep.mubr.msk.bf16.mxu1 %vm263_vm1, %v2932_v60  ;;  %v841_v16 = vrot.slane %v3982_v26, 5  ;;  %v844_v15 = vrot.slane %v3990_v38, 5  ;;  %v3111_v54 = vld [vmem:[%s3785_s9 + $0x18] sm:$0xf]  ;;  %v4220_v60 = vld [vmem:[%s3785_s9 + $0x1c] sm:$0xf] }
  0x5d   : > { %v623_v8 = vsel %vm3853_vm6, %v618_v31, %v622_v28  ;;  %3380 = vmatmul.mubr.msk.bf16.vlgmr.msra.gmra.mrb[0].mxu0 %vm263_vm1, %v3637_v29  ;;  %v2951_v13 = vcombine.low %v828_v14, %v831_v58  ;;  %v838_v34 = vsel %vm3900_vm7, %v836_v51, %v837_v10  ;;  %v2945_v23 = vrot.slane %v793_v0, 9  ;;  %v4223_v31 = vld [vmem:[%s3785_s9 + $0x20] sm:$0x1] }
  0x5e   : > { %v2933_v21 = vcombine.low %v613_v52, %v623_v8  ;;  %3396 = vmatpush3.bf16.msra.mxu0 %v3815_v18  ;;  %3383 = vmatprep.mubr.msk.bf16.mxu0 %vm263_vm1, %v3638_v37  ;;  %v848_v1 = vrot.slane %v4008_v43, 5  ;;  %v2952_v28 = vcombine.low %v4161_v62, %v838_v34  ;;  %v842_v26 = vsel %vm3900_vm7, %v2944_v5, %v841_v16 }
  0x5f   : > { %v843_v38 = vrot.slane %v841_v16, 4  ;;  %v851_v29 = vrot.slane %v4011_v44, 5  ;;  %3586 = vmatprep.subr.msk.bf16.mxu0 %vm288_vm0, %v3800_v12  ;;  %v2946_v30 = vrot.slane %v794_v61, 9  ;;  %v855_v33 = vrot.slane %v4045_v17, 5  ;;  %v3640_v17 = vld [vmem:[%s3785_s9 + $0x48] sm:$0xff]  }
  0x60   : > { %3302 = vmatmul.mubr.msk.bf16.gmra.mrb[12].mxu1 %vm263_vm1, %v2933_v21  ;;  %v4191_v18 = vsel %vm3900_vm7, %v2945_v23, %v848_v1  ;;  %v850_v43 = vrot.slane %v848_v1, 4  ;;  %v858_v12 = vrot.slane %v4050_v27, 5  ;;  %v2947_v35 = vrot.slane %v795_v25, 9  ;;  %v3114_v25 = vld [vmem:[%s3785_s9 + $0x24] sm:$0xf]  ;;  %v3641_v21 = vld [vmem:[%s3785_s9 + $0x54] sm:$0xff]  }
  0x61   : > { %3307 = vmatprep.mubr.msk.bf16.mxu1 %vm263_vm1, %v2951_v13  ;;  %v845_v44 = vsel %vm3900_vm7, %v843_v38, %v844_v15  ;;  %v862_v37 = vrot.slane %v4066_v57, 5  ;;  %v4208_v6 = vsel %vm3900_vm7, %v2946_v30, %v855_v33  ;;  %v857_v49 = vrot.slane %v855_v33, 4  ;;  %v4273_v30 = vld [vmem:[%s3785_s9 + $0x2c] sm:$0x1]  ;;  %v3117_v33 = vld [vmem:[%s3785_s9 + $0x30] sm:$0xf] }
  0x62   : > { %v2953_v40 = vcombine.low %v842_v26, %v845_v44  ;;  %v4203_v59 = vsel %vm3900_vm7, %v850_v43, %v851_v29  ;;  %v865_v24 = vrot.slane %v4072_v63, 5  ;;  %v2948_v51 = vrot.slane %v796_v39, 9  ;;  %v4262_v26 = vld [vmem:[%s3785_s9 + $0x28] sm:$0xf]  ;;  %v3652_v39 = vld [vmem:[%s4609_s1 + $0x10] sm:$0xf] }
  0x63   : > { %v2954_v27 = vcombine.low %v4191_v18, %v4203_v59  ;;  %v4216_v57 = vsel %vm3900_vm7, %v2947_v35, %v862_v37  ;;  %v864_v14 = vrot.slane %v862_v37, 4  ;;  %v4227_v62 = vsel %vm3900_vm7, %v857_v49, %v858_v12  ;;  %v4280_v37 = vld [vmem:[%s3785_s9 + $0x34] sm:$0xf]  ;;  %v3643_v18 = vld [vmem:[%s3785_s9 + $0x6c] sm:$0xff]  }
  0x64   : > { %v869_v0 = vrot.slane %v4103_v55, 5  ;;  %v872_v52 = vrot.slane %v4113_v9, 5  ;;  %v2955_v63 = vcombine.low %v4208_v6, %v4227_v62  ;;  %v2949_v10 = vrot.slane %v797_v32, 9 }
  0x65   : > { %3384 = vmatmul.mubr.msk.bf16.gmra.mrb[4].mxu0 %vm263_vm1, %v3639_v56  ;;  %v4236_v58 = vsel %vm3900_vm7, %v864_v14, %v865_v24  ;;  %v876_v5 = vrot.slane %v4134_v45, 5  ;;  %v879_v13 = vrot.slane %v4137_v46, 5  ;;  %v2112_v61 = vshrl.u32 %v3111_v54, 16  ;;  %v3642_v56 = vld [vmem:[%s3785_s9 + $0x60] sm:$0xff]  }
  0x66   : > { %3387 = vmatprep.mubr.msk.bf16.mxu0 %vm263_vm1, %v3640_v17  ;;  %v2956_v55 = vcombine.low %v4216_v57, %v4236_v58  ;;  %v4244_v9 = vsel %vm3900_vm7, %v2948_v51, %v869_v0  ;;  %v871_v8 = vrot.slane %v869_v0, 4  ;;  %v2115_v45 = vshll.u32 %v3111_v54, 16  ;;  %v4288_v54 = vld [vmem:[%s3785_s9 + $0x38] sm:$0x1] }
  0x67   : > { %v4249_v16 = vsel %vm3900_vm7, %v2949_v10, %v876_v5  ;;  %v878_v15 = vrot.slane %v876_v5, 4  ;;  %v2121_v46 = vshll.u32 %v4220_v60, 16  ;;  %v2125_v23 = vshrl.u32 %v4220_v60, 16 }
  0x68   : > { %3308 = vmatmul.mubr.msk.bf16.vlgmr.msra.gmra.mrb[0].mxu1 %vm263_vm1, %v2952_v28  ;;  %v4256_v34 = vsel %vm3900_vm7, %v871_v8, %v872_v52  ;;  %v2131_v1 = vshll.u32 %v4223_v31, 16  ;;  %v2114_v29 = vrot.slane %v2112_v61, 4  ;;  %v2117_v43 = vrot.slane %v2115_v45, 5 }
  0x69   : > { %3311 = vmatprep.mubr.msk.bf16.mxu1 %vm263_vm1, %v2953_v40  ;;  %3324 = vmatpush3.bf16.msra.mxu1 %v3820_v19  ;;  %v2957_v28 = vcombine.low %v4244_v9, %v4256_v34  ;;  %v4270_v38 = vsel %vm3900_vm7, %v878_v15, %v879_v13  ;;  %v2123_v12 = vrot.slane %v2121_v46, 5  ;;  %v2127_v35 = vrot.slane %v2125_v23, 4 }
  0x6a   : > { %v2958_v44 = vcombine.low %v4249_v16, %v4270_v38  ;;  %v2133_v19 = vrot.slane %v2131_v1, 5  ;;  %3582 = vmatprep.subr.msk.bf16.mxu1 %vm288_vm0, %v3652_v39  ;;  %v2118_v40 = vor.u32 %v2117_v43, %v2114_v29  ;;  %v2136_v17 = vshrl.u32 %v3114_v25, 16 }
  0x6b   : > { %v2139_v49 = vshll.u32 %v3114_v25, 16  ;;  %v2145_v32 = vshll.u32 %v4262_v26, 16  ;;  %v2128_v14 = vor.u32 %v2127_v35, %v2123_v12  ;;  %v2149_v24 = vshrl.u32 %v4262_v26, 16 }
  0x6c   : > { %v2155_v51 = vshll.u32 %v4273_v30, 16  ;;  %v2160_v0 = vshrl.u32 %v3117_v33, 16  ;;  %v2119_v52 = vrot.slane %v2118_v40, 4  ;;  %v2138_v10 = vrot.slane %v2136_v17, 4 }
  0x6d   : > { %3388 = vmatmul.mubr.msk.bf16.gmra.mrb[8].mxu0 %vm263_vm1, %v3641_v21  ;;  %v2141_v5 = vrot.slane %v2139_v49, 5  ;;  %v2147_v8 = vrot.slane %v2145_v32, 5  ;;  %v2129_v13 = vrot.slane %v2128_v14, 4  ;;  %v2151_v15 = vrot.slane %v2149_v24, 4  ;;  %v3120_v21 = vld [vmem:[%s3785_s9 + $0x3c] sm:$0xf] }
  0x6e   : > { %3391 = vmatprep.mubr.msk.bf16.mxu0 %vm263_vm1, %v3642_v56  ;;  %v2157_v61 = vrot.slane %v2155_v51, 5  ;;  %v2162_v45 = vrot.slane %v2160_v0, 4  ;;  %v2124_v25 = vsel %vm3853_vm6, %v2119_v52, %v2123_v12  ;;  %v2163_v23 = vshll.u32 %v3117_v33, 16  ;;  %v4307_v12 = vld [vmem:[%s3785_s9 + $0x40] sm:$0xf] }
  0x6f   : > { %v2142_v46 = vor.u32 %v2141_v5, %v2138_v10  ;;  %v2169_v1 = vshll.u32 %v4280_v37, 16  ;;  %v2134_v29 = vsel %vm3853_vm6, %v2129_v13, %v2133_v19  ;;  %v2152_v43 = vor.u32 %v2151_v15, %v2147_v8  ;;  %v4317_v24 = vld [vmem:[%s3785_s9 + $0x44] sm:$0x1]  ;;  %v4325_v5 = vld [vmem:[%s3785_s9 + $0x4c] sm:$0xf] }
  0x70   : > { %3312 = vmatmul.mubr.msk.bf16.gmra.mrb[4].mxu1 %vm263_vm1, %v2954_v27  ;;  %v2173_v56 = vshrl.u32 %v4280_v37, 16  ;;  %v2179_v35 = vshll.u32 %v4288_v54, 16  ;;  %v3136_v59 = vcombine.low %v2124_v25, %v2134_v29  ;;  %v2165_v33 = vrot.slane %v2163_v23, 5  ;;  %v4333_v29 = vld [vmem:[%s3785_s9 + $0x50] sm:$0x1] }
  0x71   : > { %3315 = vmatprep.mubr.msk.bf16.mxu1 %vm263_vm1, %v2955_v63  ;;  %v2143_v27 = vrot.slane %v2142_v46, 4  ;;  %v2171_v19 = vrot.slane %v2169_v1, 5  ;;  %v2153_v39 = vrot.slane %v2152_v43, 4  ;;  %v2184_v49 = vshrl.u32 %v3120_v21, 16  ;;  %v3123_v63 = vld [vmem:[%s3785_s9 + $0x48] sm:$0xf] }
  0x72   : > { %v2175_v40 = vrot.slane %v2173_v56, 4  ;;  %v2181_v17 = vrot.slane %v2179_v35, 5  ;;  %v2166_v14 = vor.u32 %v2165_v33, %v2162_v45  ;;  %v2187_v6 = vshll.u32 %v3120_v21, 16  ;;  %v3126_v35 = vld [vmem:[%s3785_s9 + $0x54] sm:$0xf] }
  0x73   : > { %v2148_v32 = vsel %vm3853_vm6, %v2143_v27, %v2147_v8  ;;  %v2193_v62 = vshll.u32 %v4307_v12, 16  ;;  %v2158_v51 = vsel %vm3853_vm6, %v2153_v39, %v2157_v61  ;;  %v2186_v52 = vrot.slane %v2184_v49, 4 }
  0x74   : > { %v2176_v0 = vor.u32 %v2175_v40, %v2171_v19  ;;  %v2197_v10 = vshrl.u32 %v4307_v12, 16  ;;  %v3137_v8 = vcombine.low %v2148_v32, %v2158_v51  ;;  %v2167_v13 = vrot.slane %v2166_v14, 4 }
  0x75   : > { %3392 = vmatmul.mubr.msk.bf16.gmra.mrb[12].mxu0 %vm263_vm1, %v3643_v18  ;;  %v2189_v15 = vrot.slane %v2187_v6, 5  ;;  %v2195_v45 = vrot.slane %v2193_v62, 5  ;;  %v2203_v61 = vshll.u32 %v4317_v24, 16  ;;  %v2208_v23 = vshrl.u32 %v3123_v63, 16  ;;  %v4355_v62 = vld [vmem:[%s3785_s9 + $0x5c] sm:$0x1] }
  0x76   : > { %3397 = vmatprep.mubr.msk.bf16.mxu0 %vm263_vm1, %v3136_v59  ;;  %v2177_v25 = vrot.slane %v2176_v0, 4  ;;  %v2199_v46 = vrot.slane %v2197_v10, 4  ;;  %v2172_v1 = vsel %vm3853_vm6, %v2167_v13, %v2171_v19  ;;  %v2211_v43 = vshll.u32 %v3123_v63, 16  ;;  %v4344_v19 = vld [vmem:[%s3785_s9 + $0x58] sm:$0xf]  ;;  %v3644_v13 = vld [vmem:[%s3785_s9 + $0xc] sm:$0xff]  }
  0x77   : > { %v2190_v21 = vor.u32 %v2189_v15, %v2186_v52  ;;  %v2217_v56 = vshll.u32 %v4325_v5, 16  ;;  %v2205_v27 = vrot.slane %v2203_v61, 5  ;;  %v2210_v33 = vrot.slane %v2208_v23, 4  ;;  %v4362_v10 = vld [vmem:[%s3785_s9 + $0x64] sm:$0xf] }
  0x78   : > { %3316 = vmatmul.mubr.msk.bf16.gmra.mrb[8].mxu1 %vm263_vm1, %v2956_v55  ;;  %v2182_v18 = vsel %vm3853_vm6, %v2177_v25, %v2181_v17  ;;  %v2200_v59 = vor.u32 %v2199_v46, %v2195_v45  ;;  %v2213_v57 = vrot.slane %v2211_v43, 5  ;;  %v2221_v17 = vshrl.u32 %v4325_v5, 16 }
  0x79   : > { %3319 = vmatprep.mubr.msk.bf16.mxu1 %vm263_vm1, %v2957_v28  ;;  %v3138_v39 = vcombine.low %v2172_v1, %v2182_v18  ;;  %v2191_v40 = vrot.slane %v2190_v21, 4  ;;  %v2219_v58 = vrot.slane %v2217_v56, 5  ;;  %v2227_v49 = vshll.u32 %v4333_v29, 16  ;;  %v3129_v28 = vld [vmem:[%s3785_s9 + $0x60] sm:$0xf] }
  0x7a   : > { %v2201_v55 = vrot.slane %v2200_v59, 4  ;;  %v2232_v32 = vshrl.u32 %v3126_v35, 16  ;;  %v2214_v6 = vor.u32 %v2213_v57, %v2210_v33  ;;  %v2235_v9 = vshll.u32 %v3126_v35, 16  ;;  %v4373_v56 = vld [vmem:[%s3785_s9 + $0x68] sm:$0x1] }
  0x7b   : > { %v2196_v14 = vsel %vm3853_vm6, %v2191_v40, %v2195_v45  ;;  %v2241_v34 = vshll.u32 %v4344_v19, 16  ;;  %v2223_v51 = vrot.slane %v2221_v17, 4  ;;  %v2229_v0 = vrot.slane %v2227_v49, 5  ;;  %v3132_v59 = vld [vmem:[%s3785_s9 + $0x6c] sm:$0xf] }
  0x7c   : > { %v2206_v63 = vsel %vm3853_vm6, %v2201_v55, %v2205_v27  ;;  %v2234_v52 = vrot.slane %v2232_v32, 4  ;;  %v2215_v45 = vrot.slane %v2214_v6, 4  ;;  %v2237_v25 = vrot.slane %v2235_v9, 5  ;;  %v3645_v32 = vld [vmem:[%s3785_s9 + $0x18] sm:$0xff]  }
  0x7d   : > { %3398 = vmatmul.mubr.msk.bf16.vlgmr.msra.gmra.mrb[0].mxu0 %vm263_vm1, %v3137_v8  ;;  %v3139_v15 = vcombine.low %v2196_v14, %v2206_v63  ;;  %v2243_v46 = vrot.slane %v2241_v34, 5  ;;  %v2224_v61 = vor.u32 %v2223_v51, %v2219_v58  ;;  %v2245_v23 = vshrl.u32 %v4344_v19, 16 }
  0x7e   : > { %3414 = vmatpush3.bf16.msra.mxu0 %v3824_v20  ;;  %3401 = vmatprep.mubr.msk.bf16.mxu0 %vm263_vm1, %v3138_v39  ;;  %v2251_v1 = vshll.u32 %v4355_v62, 16  ;;  %v2256_v21 = vshrl.u32 %v3129_v28, 16  ;;  %v2220_v43 = vsel %vm3853_vm6, %v2215_v45, %v2219_v58  ;;  %v2238_v8 = vor.u32 %v2237_v25, %v2234_v52  ;;  %v3646_v45 = vld [vmem:[%s3785_s9 + $0x24] sm:$0xff]  }
  0x7f   : > { %v2259_v35 = vshll.u32 %v3129_v28, 16  ;;  %v2265_v18 = vshll.u32 %v4362_v10, 16  ;;  %v2225_v20 = vrot.slane %v2224_v61, 4  ;;  %v2247_v27 = vrot.slane %v2245_v23, 4  ;;  %v4393_v28 = vld [vmem:[%s3785_s9 + $0x74] sm:$0x1] }
  0x80   : > { %3320 = vmatmul.mubr.msk.bf16.gmra.mrb[12].mxu1 %vm263_vm1, %v2958_v44  ;;  %v2253_v33 = vrot.slane %v2251_v1, 5  ;;  %v2258_v39 = vrot.slane %v2256_v21, 4  ;;  %v2239_v40 = vrot.slane %v2238_v8, 4  ;;  %v2269_v55 = vshrl.u32 %v4362_v10, 16  ;;  %v4387_v44 = vld [vmem:[%s3785_s9 + $0x70] sm:$0xf] }
  0x81   : > { %3325 = vmatprep.mubr.msk.bf16.mxu1 %vm263_vm1, %v3644_v13  ;;  %v2261_v57 = vrot.slane %v2259_v35, 5  ;;  %v2267_v58 = vrot.slane %v2265_v18, 5  ;;  %v2230_v17 = vsel %vm3853_vm6, %v2225_v20, %v2229_v0  ;;  %v2248_v16 = vor.u32 %v2247_v27, %v2243_v46  ;;  %v3152_v13 = vld [vmem:[%s3785_s9 + $0x18] sm:$0xe]  ;;  %v3153_v8 = vld [vmem:[%s3785_s9 + $0x24] sm:$0xe] }
  0x82   : > { %v2275_v38 = vshll.u32 %v4373_v56, 16  ;;  %v2280_v49 = vshrl.u32 %v3132_v59, 16  ;;  %v3140_v14 = vcombine.low %v2220_v43, %v2230_v17  ;;  %v2244_v6 = vsel %vm3853_vm6, %v2239_v40, %v2243_v46 }
  0x83   : > { %v2262_v9 = vor.u32 %v2261_v57, %v2258_v39  ;;  %v2271_v34 = vrot.slane %v2269_v55, 4  ;;  %v2249_v63 = vrot.slane %v2248_v16, 4  ;;  %v2283_v52 = vshll.u32 %v3132_v59, 16  ;;  %v3014_v55 = vld [vmem:[%s3785_s9 + $0x3c] sm:$0xf] }
  0x84   : > { %v2277_v51 = vrot.slane %v2275_v38, 5  ;;  %v2282_v0 = vrot.slane %v2280_v49, 4  ;;  %v2289_v23 = vshll.u32 %v4387_v44, 16  ;;  %v2293_v1 = vshrl.u32 %v4387_v44, 16 }
  0x85   : > { %3402 = vmatmul.mubr.msk.bf16.gmra.mrb[4].mxu0 %vm263_vm1, %v3139_v15  ;;  %v2263_v25 = vrot.slane %v2262_v9, 4  ;;  %v2272_v61 = vor.u32 %v2271_v34, %v2267_v58  ;;  %v4403_v46 = vrot.slane %v1410_v3, 4  ;;  %v2254_v21 = vsel %vm3853_vm6, %v2249_v63, %v2253_v33  ;;  %v3648_v63 = vld [vmem:[%s3785_s9 + $0x3c] sm:$0xff]  }
  0x86   : > { %3405 = vmatprep.mubr.msk.bf16.mxu0 %vm263_vm1, %v3140_v14  ;;  %v2285_v43 = vrot.slane %v2283_v52, 5  ;;  %v2299_v15 = vshll.u32 %v4393_v28, 16  ;;  %v2291_v59 = vrot.slane %v2289_v23, 5  ;;  %v3160_v20 = vrot.slane %v3152_v13, 9  ;;  %v3017_v13 = vld [vmem:[%s3785_s9 + $0x48] sm:$0xf] }
  0x87   : > { %v2268_v35 = vsel %vm3853_vm6, %v2263_v25, %v2267_v58  ;;  %v2273_v18 = vrot.slane %v2272_v61, 4  ;;  %v3141_v42 = vcombine.low %v2244_v6, %v2254_v21  ;;  %v2295_v27 = vrot.slane %v2293_v1, 4  ;;  %v3647_v6 = vld [vmem:[%s3785_s9 + $0x30] sm:$0xff]  }
  0x88   : > { %3326 = vmatmul.mubr.msk.bf16.vlgmr.msra.gmra.mrb[0].mxu1 %vm263_vm1, %v3645_v32  ;;  %v2286_v3 = vor.u32 %v2285_v43, %v2282_v0  ;;  %v2503_v39 = vrot.slane %v4220_v60, 5  ;;  %v2506_v40 = vrot.slane %v4223_v31, 5  ;;  %v3161_v57 = vrot.slane %v3153_v8, 9  ;;  %v3154_v1 = vld [vmem:[%s3785_s9 + $0x30] sm:$0xe] }
  0x89   : > { %3329 = vmatprep.mubr.msk.bf16.mxu1 %vm263_vm1, %v3646_v45  ;;  %3432 = vmatpush3.bf16.msra.mxu1 %v3760_v4  ;;  %v2278_v33 = vsel %vm3853_vm6, %v2273_v18, %v2277_v51  ;;  %v2510_v58 = vrot.slane %v4262_v26, 5  ;;  %v2296_v38 = vor.u32 %v2295_v27, %v2291_v59  ;;  %v2301_v49 = vrot.slane %v2299_v15, 5 }
  0x8a   : > { %v3142_v17 = vcombine.low %v2268_v35, %v2278_v33  ;;  %v2287_v16 = vrot.slane %v2286_v3, 4  ;;  %v2504_v60 = vsel %vm3900_vm7, %v3160_v20, %v2503_v39  ;;  %v2505_v32 = vrot.slane %v2503_v39, 4  ;;  %v3155_v39 = vld [vmem:[%s3785_s9 + $0x3c] sm:$0xe] }
  0x8b   : > { %v2512_v4 = vrot.slane %v2510_v58, 4  ;;  %v2513_v14 = vrot.slane %v4273_v30, 5  ;;  %v2297_v26 = vrot.slane %v2296_v38, 4  ;;  %v1370_v9 = vshrl.u32 %v3014_v55, 16 }
  0x8c   : > { %v2292_v31 = vsel %vm3853_vm6, %v2287_v16, %v2291_v59  ;;  %v1373_v34 = vshll.u32 %v3014_v55, 16  ;;  %v2507_v51 = vsel %vm3900_vm7, %v2505_v32, %v2506_v40  ;;  %v4433_v0 = vsel %vm3900_vm7, %v3161_v57, %v2510_v58  ;;  %v3020_v58 = vld [vmem:[%s3785_s9 + $0x54] sm:$0xf] }
  0x8d   : > { %3406 = vmatmul.mubr.msk.bf16.gmra.mrb[8].mxu0 %vm263_vm1, %v3141_v42  ;;  %v1379_v30 = vshll.u32 %v4016_v47, 16  ;;  %v1383_v52 = vshrl.u32 %v4016_v47, 16  ;;  %v2302_v45 = vsel %vm3853_vm6, %v2297_v26, %v2301_v49  ;;  %v3169_v25 = vcombine.low %v2504_v60, %v2507_v51  ;;  %v3650_v60 = vld [vmem:[%s3785_s9 + $0x54] sm:$0xff]  }
  0x8e   : > { %3409 = vmatprep.mubr.msk.bf16.mxu0 %vm263_vm1, %v3142_v17  ;;  %v4443_v61 = vsel %vm3900_vm7, %v2512_v4, %v2513_v14  ;;  %v1372_v23 = vrot.slane %v1370_v9, 4  ;;  %v3143_v21 = vcombine.low %v2292_v31, %v2302_v45  ;;  %v1375_v43 = vrot.slane %v1373_v34, 5 }
  0x8f   : > { %v1381_v15 = vrot.slane %v1379_v30, 5  ;;  %v1385_v8 = vrot.slane %v1383_v52, 4  ;;  %v1389_v47 = vshll.u32 %v4027_v2, 16  ;;  %v1394_v35 = vshrl.u32 %v3017_v13, 16 }
  0x90   : > { %3330 = vmatmul.mubr.msk.bf16.gmra.mrb[4].mxu1 %vm263_vm1, %v3647_v6  ;;  %v1397_v18 = vshll.u32 %v3017_v13, 16  ;;  %v1416_v59 = vsel %vm3853_vm6, %v4403_v46, %v4063_v53  ;;  %v1376_v20 = vor.u32 %v1375_v43, %v1372_v23  ;;  %v3162_v3 = vrot.slane %v3154_v1, 9  ;;  %v3649_v53 = vld [vmem:[%s3785_s9 + $0x48] sm:$0xff]   ;;  %v3023_v6 = vld [vmem:[%s3785_s9 + $0x60] sm:$0xf] }
  0x91   : > { %3333 = vmatprep.mubr.msk.bf16.mxu1 %vm263_vm1, %v3648_v63  ;;  %v1386_v42 = vor.u32 %v1385_v8, %v1381_v15  ;;  %v2517_v27 = vrot.slane %v4280_v37, 5  ;;  %v1391_v33 = vrot.slane %v1389_v47, 5  ;;  %v1396_v40 = vrot.slane %v1394_v35, 4  ;;  %v3156_v1 = vld [vmem:[%s3785_s9 + $0x48] sm:$0xe]  ;;  %v3651_v35 = vld [vmem:[%s3785_s9 + $0x60] sm:$0xff]  }
  0x92   : > { %v1399_v2 = vrot.slane %v1397_v18, 5  ;;  %v2520_v57 = vrot.slane %v4288_v54, 5  ;;  %v1377_v55 = vrot.slane %v1376_v20, 4  ;;  %v3170_v46 = vcombine.low %v4433_v0, %v4443_v61 }
  0x93   : > { %v1387_v17 = vrot.slane %v1386_v42, 4  ;;  %v2519_v16 = vrot.slane %v2517_v27, 4  ;;  %v2518_v37 = vsel %vm3900_vm7, %v3162_v3, %v2517_v27  ;;  %v2524_v49 = vrot.slane %v4307_v12, 5 }
  0x94   : > { %v1400_v38 = vor.u32 %v1399_v2, %v1396_v40  ;;  %v1382_v54 = vsel %vm3853_vm6, %v1377_v55, %v1381_v15  ;;  %v3163_v4 = vrot.slane %v3155_v39, 9  ;;  %v1418_v14 = vshrl.u32 %v3020_v58, 16 }
  0x95   : > { %3410 = vmatmul.mubr.msk.bf16.gmra.mrb[12].mxu0 %vm263_vm1, %v3143_v21  ;;  %v1392_v32 = vsel %vm3853_vm6, %v1387_v17, %v1391_v33  ;;  %v2521_v9 = vsel %vm3900_vm7, %v2519_v16, %v2520_v57  ;;  %v2527_v12 = vrot.slane %v4317_v24, 5  ;;  %v2526_v34 = vrot.slane %v2524_v49, 4 }
  0x96   : > { %3415 = vmatprep.mubr.msk.bf16.mxu0 %vm263_vm1, %v3169_v25  ;;  %v3031_v31 = vcombine.low %v1382_v54, %v1392_v32  ;;  %v1401_v26 = vrot.slane %v1400_v38, 4  ;;  %v1420_v63 = vrot.slane %v1418_v14, 4  ;;  %v1421_v51 = vshll.u32 %v3020_v58, 16  ;;  %v3157_v58 = vld [vmem:[%s3785_s9 + $0x54] sm:$0xe] }
  0x97   : > { %v1427_v0 = vshll.u32 %v4081_v7, 16  ;;  %v1431_v52 = vshrl.u32 %v4081_v7, 16  ;;  %v1437_v13 = vshll.u32 %v4086_v22, 16  ;;  %v1442_v45 = vshrl.u32 %v3023_v6, 16 }
  0x98   : > { %3334 = vmatmul.mubr.msk.bf16.gmra.mrb[8].mxu1 %vm263_vm1, %v3649_v53  ;;  %v1406_v30 = vsel %vm3853_vm6, %v1401_v26, %v4052_v41  ;;  %v3171_v25 = vcombine.low %v2518_v37, %v2521_v9  ;;  %v1423_v61 = vrot.slane %v1421_v51, 5  ;;  %v2525_v21 = vsel %vm3900_vm7, %v3163_v4, %v2524_v49  ;;  %v3158_v53 = vld [vmem:[%s3785_s9 + $0x60] sm:$0xe] }
  0x99   : > { %3337 = vmatprep.mubr.msk.bf16.mxu1 %vm263_vm1, %v3650_v60  ;;  %v3032_v24 = vcombine.low %v1406_v30, %v1416_v59  ;;  %v1429_v23 = vrot.slane %v1427_v0, 5  ;;  %v2528_v43 = vsel %vm3900_vm7, %v2526_v34, %v2527_v12  ;;  %v1433_v41 = vrot.slane %v1431_v52, 4 }
  0x9a   : > { %v1439_v15 = vrot.slane %v1437_v13, 5  ;;  %v1424_v7 = vor.u32 %v1423_v61, %v1420_v63  ;;  %v1445_v8 = vshll.u32 %v3023_v6, 16  ;;  %v1451_v22 = vshll.u32 %v4091_v11, 16  ;;  %v3159_v63 = vld [vmem:[%s3785_s9 + $0x6c] sm:$0xe] }
  0x9b   : > { %v1455_v47 = vshrl.u32 %v4091_v11, 16  ;;  %v1434_v18 = vor.u32 %v1433_v41, %v1429_v23  ;;  %v1444_v59 = vrot.slane %v1442_v45, 4  ;;  %v3164_v20 = vrot.slane %v3156_v1, 9 }
  0x9c   : > { %v2531_v42 = vrot.slane %v4325_v5, 5  ;;  %v1425_v3 = vrot.slane %v1424_v7, 4  ;;  %v1447_v27 = vrot.slane %v1445_v8, 5  ;;  %v1453_v39 = vrot.slane %v1451_v22, 5  ;;  %v4541_v8 = vld [vmem:[%s4610_s2] ss:$0 sm:$0xff] }
  0x9d   : > { %3416 = vmatmul.mubr.msk.bf16.vlgmr.msra.gmra.mrb[0].mxu0 %vm263_vm1, %v3170_v46  ;;  %v1457_v33 = vrot.slane %v1455_v47, 4  ;;  %v1435_v40 = vrot.slane %v1434_v18, 4  ;;  %v2534_v57 = vrot.slane %v4333_v29, 5  ;;  %v3172_v5 = vcombine.low %v2525_v21, %v2528_v43 }
  0x9e   : > { %3419 = vmatprep.mubr.msk.bf16.mxu0 %vm263_vm1, %v3171_v25  ;;  %v2533_v2 = vrot.slane %v2531_v42, 4  ;;  %v2532_v11 = vsel %vm3900_vm7, %v3164_v20, %v2531_v42  ;;  %v1430_v55 = vsel %vm3853_vm6, %v1425_v3, %v1429_v23  ;;  %v1461_v17 = vshll.u32 %v4096_v36, 16 }
  0x9f   : > { %v2538_v16 = vrot.slane %v4344_v19, 5  ;;  %v1440_v46 = vsel %vm3853_vm6, %v1435_v40, %v1439_v15  ;;  %v1448_v38 = vor.u32 %v1447_v27, %v1444_v59  ;;  %v1458_v37 = vor.u32 %v1457_v33, %v1453_v39 }
  0xa0   : > { %3338 = vmatmul.mubr.msk.bf16.gmra.mrb[12].mxu1 %vm263_vm1, %v3651_v35  ;;  %v2535_v29 = vsel %vm3900_vm7, %v2533_v2, %v2534_v57  ;;  %v3165_v60 = vrot.slane %v3157_v58, 9  ;;  %v2541_v32 = vrot.slane %v4355_v62, 5  ;;  %v3166_v36 = vrot.slane %v3158_v53, 9 }
  0xa1   : > { %3351 = vmatprep.mubr.msk.bf16.mxu1 %vm263_vm1, %v3031_v31  ;;  %v3173_v49 = vcombine.low %v2532_v11, %v2535_v29  ;;  %v2540_v54 = vrot.slane %v2538_v16, 4  ;;  %v2545_v19 = vrot.slane %v4362_v10, 5  ;;  %v2548_v4 = vrot.slane %v4373_v56, 5 }
  0xa2   : > { %v1463_v14 = vrot.slane %v1461_v17, 5  ;;  %v3033_v6 = vcombine.low %v1430_v55, %v1440_v46  ;;  %v1449_v31 = vrot.slane %v1448_v38, 4  ;;  %v1459_v26 = vrot.slane %v1458_v37, 4 }
  0xa3   : > { %v2547_v9 = vrot.slane %v2545_v19, 4  ;;  %v2539_v12 = vsel %vm3900_vm7, %v3165_v60, %v2538_v16  ;;  %v2542_v62 = vsel %vm3900_vm7, %v2540_v54, %v2541_v32  ;;  %v2552_v34 = vrot.slane %v4387_v44, 5 }
  0xa4   : > { %v2546_v10 = vsel %vm3900_vm7, %v3166_v36, %v2545_v19  ;;  %v1454_v51 = vsel %vm3853_vm6, %v1449_v31, %v1453_v39  ;;  %v1464_v0 = vsel %vm3853_vm6, %v1459_v26, %v1463_v14  ;;  %v3174_v30 = vcombine.low %v2539_v12, %v2542_v62 }
  0xa5   : > { %3420 = vmatmul.mubr.msk.bf16.gmra.mrb[4].mxu0 %vm263_vm1, %v3172_v5  ;;  %v2549_v56 = vsel %vm3900_vm7, %v2547_v9, %v2548_v4  ;;  %v3167_v44 = vrot.slane %v3159_v63, 9  ;;  %v2554_v13 = vrot.slane %v2552_v34, 4  ;;  %v2555_v45 = vrot.slane %v4393_v28, 5 }
  0xa6   : > { %3423 = vmatprep.mubr.msk.bf16.mxu0 %vm263_vm1, %v3173_v49  ;;  %v3175_v52 = vcombine.low %v2546_v10, %v2549_v56  ;;  %v3034_v25 = vcombine.low %v1454_v51, %v1464_v0 }
  0xa7   : > { %v2556_v61 = vsel %vm3900_vm7, %v2554_v13, %v2555_v45 }
  0xa8   : > { %3352 = vmatmul.mubr.msk.bf16.vlgmr.msra.gmra.mrb[8].mxu1 %vm263_vm1, %v3032_v24  ;;  %v2553_v24 = vsel %vm3900_vm7, %v3167_v44, %v2552_v34 }
  0xa9   : > { %3355 = vmatprep.mubr.msk.bf16.mxu1 %vm263_vm1, %v3033_v6  ;;  %v3176_v48 = vcombine.low %v2553_v24, %v2556_v61 }
  0xad   : > { %3424 = vmatmul.mubr.msk.bf16.gmra.mrb[8].mxu0 %vm263_vm1, %v3174_v30 }
  0xae   : > { %3427 = vmatprep.mubr.msk.bf16.mxu0 %vm263_vm1, %v3175_v52 }
  0xb0   : > { %3356 = vmatmul.mubr.msk.bf16.gmra.mrb[12].mxu1 %vm263_vm1, %v3034_v25 }
  0xb5   : > { %3428 = vmatmul.mubr.msk.bf16.gmra.mrb[12].mxu0 %vm263_vm1, %v3176_v48 }
 0x15b   : > { %v3327_v23 = vpop.f32.mrb[0].mxu1 }
 0x15c   : > { %v1170_v1 = vpop.f32.mrb[1].mxu1  ;;  %v3433_v50 = vadd.f32 %v3327_v23, %v4541_v8 }
 0x15d   : > { %v3328_v28 = vpop.f32.mrb[2].mxu1  ;;  %v3435_v22 = vadd.f32 %v4541_v8, %v1170_v1 }
 0x15e   : > { %v1173_v21 = vpop.f32.mrb[3].mxu1  ;;  %v3437_v35 = vadd.f32 %v3328_v28, %v4541_v8 }
 0x15f   : > { %v3439_v20 = vadd.f32 %v4541_v8, %v1173_v21 }
 0x163   : > { %v3331_v43 = vpop.f32.mrb[4].mxu1 }
 0x164   : > { %v1186_v41 = vpop.f32.mrb[5].mxu1  ;;  %v3441_v58 = vadd.f32 %v3331_v43, %v4541_v8 }
 0x165   : > { %v3332_v15 = vpop.f32.mrb[6].mxu1  ;;  %v3443_v5 = vadd.f32 %v4541_v8, %v1186_v41 }
 0x166   : > { %v1189_v7 = vpop.f32.mrb[7].mxu1  ;;  %v3445_v17 = vadd.f32 %v3332_v15, %v4541_v8 }
 0x167   : > { %v3447_v46 = vadd.f32 %v4541_v8, %v1189_v7 }
 0x170   : > { %v3417_v47 = vpop.f32.mrb[0].mxu0 }
 0x171   : > { %v3434_v18 = vadd.f32 %v3433_v50, %v3417_v47  ;;  %v2644_v59 = vpop.f32.mrb[1].mxu0 }
 0x172   : > { %v3436_v42 = vadd.f32 %v3435_v22, %v2644_v59  ;;  %v3418_v3 = vpop.f32.mrb[2].mxu0 }
 0x173   : > { %v2725_v27 = vmax.f32 %v3434_v18, 0.0  ;;  %v3438_v39 = vadd.f32 %v3437_v35, %v3418_v3  ;;  %v2647_v33 = vpop.f32.mrb[3].mxu0 }
 0x174   : > { %v2723_v40 = vmax.f32 %v3436_v42, 0.0  ;;  %v3440_v2 = vadd.f32 %v3439_v20, %v2647_v33 }
 0x175   : > { %2741 = vst.msk [vmem:[#allocation2 + $0x10] sm:$0xff] %vm263_vm1, %v2725_v27  ;;  %v2726_v11 = vmax.f32 %v3438_v39, 0.0 }
 0x176   : > { %2739 = vst.msk [vmem:[#allocation2] sm:$0xff] %vm263_vm1, %v2723_v40  ;;  %v2724_v57 = vmax.f32 %v3440_v2, 0.0 }
 0x177   : > { %2742 = vst.msk [vmem:[#allocation2 + $0x18] sm:$0xff] %vm263_vm1, %v2726_v11 }
 0x178   : > { %2740 = vst.msk [vmem:[#allocation2 + $0x8] sm:$0xff] %vm263_vm1, %v2724_v57  ;;  %v3421_v55 = vpop.f32.mrb[4].mxu0 }
 0x179   : > { %v3442_v16 = vadd.f32 %v3441_v58, %v3421_v55  ;;  %v2660_v53 = vpop.f32.mrb[5].mxu0 }
 0x17a   : > { %v3444_v38 = vadd.f32 %v3443_v5, %v2660_v53  ;;  %v3422_v37 = vpop.f32.mrb[6].mxu0 }
 0x17b   : > { %v3353_v29 = vpop.f32.mrb[8].mxu1  ;;  %v2729_v49 = vmax.f32 %v3442_v16, 0.0  ;;  %v3446_v60 = vadd.f32 %v3445_v17, %v3422_v37  ;;  %v2663_v54 = vpop.f32.mrb[7].mxu0 }
 0x17c   : > { %v1584_v32 = vpop.f32.mrb[9].mxu1  ;;  %v2727_v36 = vmax.f32 %v3444_v38, 0.0  ;;  %v3448_v19 = vadd.f32 %v3447_v46, %v2663_v54  ;;  %v3449_v10 = vadd.f32 %v3353_v29, %v4541_v8 }
 0x17d   : > { %2745 = vst.msk [vmem:[#allocation2 + $0x30] sm:$0xff] %vm263_vm1, %v2729_v49  ;;  %v3354_v4 = vpop.f32.mrb[10].mxu1  ;;  %v2730_v14 = vmax.f32 %v3446_v60, 0.0  ;;  %v3451_v63 = vadd.f32 %v4541_v8, %v1584_v32 }
 0x17e   : > { %v2757_v6 = vld [vmem:[#allocation2 + $0x10] ss:$2 sm:$0xff]  ;;  %v2773_v31 = vld [vmem:[#allocation2 + $0x11] ss:$2 sm:$0xff]  ;;  %2743 = vst.msk [vmem:[#allocation2 + $0x20] sm:$0xff] %vm263_vm1, %v2727_v36  ;;  %v1587_v26 = vpop.f32.mrb[11].mxu1  ;;  %v3453_v0 = vadd.f32 %v3354_v4, %v4541_v8 }
 0x17f   : > { %v2728_v9 = vmax.f32 %v3448_v19, 0.0  ;;  %v2787_v12 = vmax.f32 %v2757_v6, %v2773_v31  ;;  %v2755_v62 = vld [vmem:[#allocation2] ss:$2 sm:$0xff]  ;;  %v2771_v34 = vld [vmem:[#allocation2 + $0x1] ss:$2 sm:$0xff]  ;;  %2746 = vst.msk [vmem:[#allocation2 + $0x38] sm:$0xff] %vm263_vm1, %v2730_v14  ;;  %v3455_v13 = vadd.f32 %v4541_v8, %v1587_v26 }
 0x180   : > { %v2786_v56 = vmax.f32 %v2755_v62, %v2771_v34  ;;  %v3425_v51 = vpop.f32.mrb[8].mxu0 }
 0x181   : > { %2744 = vst.msk [vmem:[#allocation2 + $0x28] sm:$0xff] %vm263_vm1, %v2728_v9  ;;  %v3450_v30 = vadd.f32 %v3449_v10, %v3425_v51  ;;  %v2676_v52 = vpop.f32.mrb[9].mxu0 }
 0x182   : > { %v2794_v44 = vmax.f32 %v2786_v56, %v2787_v12  ;;  %v3452_v45 = vadd.f32 %v3451_v63, %v2676_v52  ;;  %v3426_v25 = vpop.f32.mrb[10].mxu0 }
 0x183   : > { %v3357_v24 = vpop.f32.mrb[12].mxu1  ;;  %v2733_v61 = vmax.f32 %v3450_v30, 0.0  ;;  %v3454_v48 = vadd.f32 %v3453_v0, %v3426_v25  ;;  %v2679_v23 = vpop.f32.mrb[11].mxu0 }
 0x184   : > { %2798 = vst.msk [vmem:[%s4569_s4] sm:$0xff] %vm263_vm1, %v2794_v44  ;;  %v1600_v1 = vpop.f32.mrb[13].mxu1  ;;  %v2731_v28 = vmax.f32 %v3452_v45, 0.0  ;;  %v3456_v21 = vadd.f32 %v3455_v13, %v2679_v23  ;;  %v3457_v59 = vadd.f32 %v3357_v24, %v4541_v8 }
 0x185   : > { %2749 = vst.msk [vmem:[#allocation2 + $0x50] sm:$0xff] %vm263_vm1, %v2733_v61  ;;  %v3358_v43 = vpop.f32.mrb[14].mxu1  ;;  %v2734_v41 = vmax.f32 %v3454_v48, 0.0  ;;  %v3459_v42 = vadd.f32 %v4541_v8, %v1600_v1 }
 0x186   : > { %v2761_v15 = vld [vmem:[#allocation2 + $0x30] ss:$2 sm:$0xff]  ;;  %v2777_v7 = vld [vmem:[#allocation2 + $0x31] ss:$2 sm:$0xff]  ;;  %2747 = vst.msk [vmem:[#allocation2 + $0x40] sm:$0xff] %vm263_vm1, %v2731_v28  ;;  %v1603_v50 = vpop.f32.mrb[15].mxu1  ;;  %v3461_v27 = vadd.f32 %v3358_v43, %v4541_v8 }
 0x187   : > { %v2732_v22 = vmax.f32 %v3456_v21, 0.0  ;;  %v2789_v47 = vmax.f32 %v2761_v15, %v2777_v7  ;;  %2750 = vst.msk [vmem:[#allocation2 + $0x58] sm:$0xff] %vm263_vm1, %v2734_v41  ;;  %v3463_v2 = vadd.f32 %v4541_v8, %v1603_v50 }
 0x188   : > { %v2759_v35 = vld [vmem:[#allocation2 + $0x20] ss:$2 sm:$0xff]  ;;  %v2775_v18 = vld [vmem:[#allocation2 + $0x21] ss:$2 sm:$0xff]  ;;  %v3429_v3 = vpop.f32.mrb[12].mxu0 }
 0x189   : > { %v2788_v20 = vmax.f32 %v2759_v35, %v2775_v18  ;;  %2748 = vst.msk [vmem:[#allocation2 + $0x48] sm:$0xff] %vm263_vm1, %v2732_v22  ;;  %v3458_v39 = vadd.f32 %v3457_v59, %v3429_v3  ;;  %v2692_v33 = vpop.f32.mrb[13].mxu0 }
 0x18a   : > { %v3460_v11 = vadd.f32 %v3459_v42, %v2692_v33  ;;  %v3430_v57 = vpop.f32.mrb[14].mxu0 }
 0x18b   : > { %v2795_v40 = vmax.f32 %v2788_v20, %v2789_v47  ;;  %v2737_v58 = vmax.f32 %v3458_v39, 0.0  ;;  %v3462_v5 = vadd.f32 %v3461_v27, %v3430_v57  ;;  %v2695_v55 = vpop.f32.mrb[15].mxu0 }
 0x18c   : > { %v2735_v17 = vmax.f32 %v3460_v11, 0.0  ;;  %v3464_v16 = vadd.f32 %v3463_v2, %v2695_v55 }
 0x18d   : > { %2799 = vst.msk [vmem:[%s4569_s4 + $0x8] sm:$0xff] %vm263_vm1, %v2795_v40  ;;  %2753 = vst.msk [vmem:[#allocation2 + $0x70] sm:$0xff] %vm263_vm1, %v2737_v58  ;;  %v2738_v53 = vmax.f32 %v3462_v5, 0.0 }
 0x18e   : > { %v2765_v46 = vld [vmem:[#allocation2 + $0x50] ss:$2 sm:$0xff]  ;;  %v2781_v38 = vld [vmem:[#allocation2 + $0x51] ss:$2 sm:$0xff]  ;;  %2751 = vst.msk [vmem:[#allocation2 + $0x60] sm:$0xff] %vm263_vm1, %v2735_v17  ;;  %v2736_v37 = vmax.f32 %v3464_v16, 0.0 }
 0x18f   : > { %v2791_v8 = vmax.f32 %v2765_v46, %v2781_v38  ;;  %2754 = vst.msk [vmem:[#allocation2 + $0x78] sm:$0xff] %vm263_vm1, %v2738_v53 }
 0x190   : > { %v2763_v29 = vld [vmem:[#allocation2 + $0x40] ss:$2 sm:$0xff]  ;;  %v2779_v49 = vld [vmem:[#allocation2 + $0x41] ss:$2 sm:$0xff]  ;;  %2752 = vst.msk [vmem:[#allocation2 + $0x68] sm:$0xff] %vm263_vm1, %v2736_v37 }
 0x191   : > { %v2790_v60 = vmax.f32 %v2763_v29, %v2779_v49 }
 0x193   : > { %v2796_v54 = vmax.f32 %v2790_v60, %v2791_v8 }
 0x195   : > { %2800 = vst.msk [vmem:[%s4569_s4 + $0x10] sm:$0xff] %vm263_vm1, %v2796_v54 }
 0x196   : > { %v2769_v32 = vld [vmem:[#allocation2 + $0x70] ss:$2 sm:$0xff]  ;;  %v2785_v36 = vld [vmem:[#allocation2 + $0x71] ss:$2 sm:$0xff] }
 0x197   : > { %v2793_v19 = vmax.f32 %v2769_v32, %v2785_v36  ;;  %v2767_v4 = vld [vmem:[#allocation2 + $0x60] ss:$2 sm:$0xff]  ;;  %v2783_v14 = vld [vmem:[#allocation2 + $0x61] ss:$2 sm:$0xff] }
 0x198   : > { %v2792_v6 = vmax.f32 %v2767_v4, %v2783_v14 }
 0x19a   : > { %v2797_v31 = vmax.f32 %v2792_v6, %v2793_v19 }
 0x19c   : > { %2801 = vst.msk [vmem:[%s4569_s4 + $0x18] sm:$0xff] %vm263_vm1, %v2797_v31 }
 0x19d PF: > { %s13_s16 = sadd.s32 1, %s3691_s16   ;;  %s4616_s12 = smov %s3683_s14 }
 0x19e   : > { %p10_p7 = scmp.ge.s32.totalorder %s13_s16, 6   ;;  %s4617_s13 = smov %s3687_s15 }
 0x19f   : > { %s4618_s14 = smov %s4621_s17  ;;  %s4619_s15 = smov %s4625_s18 }
 0x1a0   :  { %12 = sbr.rel (!%p10_p7) target bundleno = 3 (0x3), region = 88 }

</bundles_post_ra>
